<compile_context>
chip_gen: v5e
topology: v5e:2x2
jax: 0.10.0
libtpu: 0.0.40
codegen_flags: <defaults>
</compile_context>

<pallas_src>
import jax
import jax.numpy as jnp
from jax.experimental import pallas as pl
from jax.experimental.pallas import tpu as pltpu

C = 128                    # Conv1d out_channels (fixed by the module)
EXP_DTYPE = jnp.bfloat16   # softmax-pipeline dtype: bf16 on v6e/v7x (bf16 VALU/EUP);
                           # set to jnp.float32 on v5e (no bf16 VPU/EUP there).


def _att_combine_kernel(qv_ref, k_ref, p_ref, o_ref):
    """One grid step == TB batch rows.

    qv_ref, k_ref, o_ref : (TB, L) blocks, L == C == 128
    p_ref                : (C, 4) grid-invariant packed params [wq | bq | wk | bk]
    """
    params = p_ref[...]                                   # (C, 4) f32, resident
    wq = params[:, 0:1][None]                             # (1, C, 1)
    bq = params[:, 1:2][None]
    wk = params[:, 2:3][None]
    bk = params[:, 3:4][None]

    qv = qv_ref[...]                                      # (TB, L) f32
    kk = k_ref[...]                                       # (TB, L) f32
    qv3 = qv[:, None, :]                                  # (TB, 1, L)
    kk3 = kk[:, None, :]

    # Conv1d(1, C, kernel=1) + ReLU  ==  relu(w[c] * x[l] + b[c])  -> (TB, C, L).
    # Affine in f32 (safe on v5e), operands cast to bf16 for the MXU.
    q_ = jnp.maximum(wq * qv3 + bq, 0.0).astype(jnp.bfloat16)
    k_ = jnp.maximum(wk * kk3 + bk, 0.0).astype(jnp.bfloat16)

    # torch.bmm(q_, k_): contracts q_'s position axis against k_'s channel axis
    # (well-formed only because L == C == 128).  f32 MXU accumulation.
    f_ = jnp.einsum("bcl,blm->bcm", q_, k_,
                    preferred_element_type=jnp.float32)   # (TB, C, L) f32

    # value = qv_flatten * f_ ; softmax over channels (torch dim=1), sum over channels.
    value = (qv3 * f_).astype(EXP_DTYPE)                  # (TB, C, L)
    m = jnp.max(value, axis=1, keepdims=True)             # (TB, 1, L)
    e = jnp.exp(value - m)                                # (TB, C, L)
    denom = jnp.sum(e, axis=1).astype(jnp.float32)        # (TB, L), >= 1 always

    # softmax(ch).sum(ch) == denom / denom: fold the final channel-sum into the
    # normalization (reuses denom).  Exact reciprocal: the normalize array is a
    # single vreg per step, so approx buys nothing and exact maximizes accuracy.
    o_ref[...] = (denom * pl.reciprocal(denom)).astype(o_ref.dtype)


def _pick_tb(batch):
    # Fatter batch tiles amortize the ~0.35 us/grid-step overhead; keep >= 2 grid
    # steps so the "parallel" axis can use both v7x TensorCores, and cap TB so the
    # (TB, 128, 128) in-kernel temps stay well inside default scoped-VMEM limits.
    for tb in (32, 16, 8):
        if batch >= 2 * tb:
            return tb
    return 8


def att_combine_forward(qv, k, wq, bq, wk, bk):
    """qv, k: (S, B, H) f32; Conv1d params wq/wk: (128,1,1) or (128,), bq/bk: (128,).

    Returns (S, B, H) f32, matching att_combine.forward."""
    S, B, H = qv.shape
    L = S * H
    assert L == C, f"att_combine requires S*H == {C} (got {L}) for torch.bmm to be valid"

    # Plain-JAX layout glue, exactly mirroring the torch permute/flatten.
    qv_flat = jnp.transpose(qv, (1, 0, 2)).reshape(B, L)       # (B, L)
    k_flat = jnp.transpose(k, (1, 0, 2)).reshape(B, L)         # (B, L)

    # Pack the four (C,) parameter vectors into one grid-invariant (C, 4) block
    # (single resident VMEM buffer, DMA'd once for the whole grid).
    params = jnp.stack(
        [wq.reshape(C), bq.reshape(C), wk.reshape(C), bk.reshape(C)], axis=1
    ).astype(jnp.float32)                                       # (C, 4)

    tb = _pick_tb(B)
    nb = pl.cdiv(B, tb)
    b_pad = nb * tb
    if b_pad != B:  # zero-pad batch to a whole number of (tb, L) tiles (harmless rows)
        qv_flat = jnp.pad(qv_flat, ((0, b_pad - B), (0, 0)))
        k_flat = jnp.pad(k_flat, ((0, b_pad - B), (0, 0)))

    out_flat = pl.pallas_call(
        _att_combine_kernel,
        out_shape=jax.ShapeDtypeStruct((b_pad, L), jnp.float32),
        grid_spec=pltpu.PrefetchScalarGridSpec(
            num_scalar_prefetch=0,
            grid=(nb,),
            in_specs=[
                pl.BlockSpec((tb, L), lambda b: (b, 0)),   # qv rows
                pl.BlockSpec((tb, L), lambda b: (b, 0)),   # k rows
                pl.BlockSpec((C, 4), lambda b: (0, 0)),    # packed params (resident)
            ],
            out_specs=pl.BlockSpec((tb, L), lambda b: (b, 0)),
        ),
        compiler_params=pltpu.CompilerParams(
            dimension_semantics=("parallel",),
        ),
    )(qv_flat, k_flat, params)

    # torch.reshape(value, k.shape): raw row-major reshape of the (B, L) result.
    # TODO(synk): confirm this reshape (not the inverse of the input permute) is intended.
    return out_flat[:B].reshape(S, B, H)


def _reference(qv, k, wq, bq, wk, bk):
    # Pure-JAX reference mirroring the torch code (exact f32 math).
    S, B, H = qv.shape
    L = S * H
    qv_flat = jnp.transpose(qv, (1, 0, 2)).reshape(B, 1, L)
    k_flat = jnp.transpose(k, (1, 0, 2)).reshape(B, 1, L)
    q_ = jax.nn.relu(wq.reshape(1, C, 1) * qv_flat + bq.reshape(1, C, 1))
    k_ = jax.nn.relu(wk.reshape(1, C, 1) * k_flat + bk.reshape(1, C, 1))
    f_ = jnp.einsum("bcl,blm->bcm", q_, k_)
    value = qv_flat * f_
    value = jax.nn.softmax(value, axis=1).sum(axis=1)
    return value.reshape(S, B, H)


if __name__ == "__main__":
    # Shapes must satisfy S*H == 128 for the module's bmm to be well-formed.
    # B=16 -> TB=8, a 2-step "parallel" grid (keeps both v7x TensorCores busy).
    S, B, H = 8, 16, 16

    key = jax.random.PRNGKey(0)
    k_qv, k_k, k_wq, k_bq, k_wk, k_bk = jax.random.split(key, 6)

    qv = jax.random.normal(k_qv, (S, B, H), dtype=jnp.float32)
    k = jax.random.normal(k_k, (S, B, H), dtype=jnp.float32)

    # Synthetic Conv1d(1, 128, kernel_size=1) parameters:
    # weight (128, 1, 1) -> flattened (128,), bias (128,).
    wq = jax.random.normal(k_wq, (C,), dtype=jnp.float32) * 0.1
    bq = jax.random.normal(k_bq, (C,), dtype=jnp.float32) * 0.1
    wk = jax.random.normal(k_wk, (C,), dtype=jnp.float32) * 0.1
    bk = jax.random.normal(k_bk, (C,), dtype=jnp.float32) * 0.1

    fwd = jax.jit(att_combine_forward)
    out = jax.block_until_ready(fwd(qv, k, wq, bq, wk, bk))

    ref = _reference(qv, k, wq, bq, wk, bk)
    assert out.shape == (S, B, H)
    max_err = float(jnp.max(jnp.abs(out - ref)))
    # Output is denom * 1/denom in f32 (mathematically 1.0); error is a few ulps,
    # far inside this bound even with the bf16 exp pipeline.
    assert max_err < 1e-3, f"mismatch vs reference (max abs err {max_err})"

    print("KERNEL_OK")
</pallas_src>

<mosaic_0001>
module attributes {stable_mosaic.version = 11 : i64} {
  func.func @_att_combine_kernel(%arg0: i32, %arg1: memref<8x128xf32, #tpu.memory_space<vmem>>, %arg2: memref<8x128xf32, #tpu.memory_space<vmem>>, %arg3: memref<128x4xf32, #tpu.memory_space<vmem>>, %arg4: memref<8x128xf32, #tpu.memory_space<vmem>>) attributes {dimension_semantics = [#tpu.dimension_semantics<parallel>], iteration_bounds = array<i64: 2>, scalar_prefetch = 0 : i64, scratch_operands = 0 : i64, tpu.core_type = #tpu.core_type<tc>, window_params = [{transform_indices = @transform_0, window_bounds = array<i64: 8, 128>}, {transform_indices = @transform_1, window_bounds = array<i64: 8, 128>}, {pipeline_mode = #tpu.pipeline_mode<synchronous>, transform_indices = @transform_2, window_bounds = array<i64: 128, 4>}, {transform_indices = @transform_3, window_bounds = array<i64: 8, 128>}]} {
    %c0 = arith.constant 0 : index
    %c0_0 = arith.constant 0 : index
    %0 = vector.load %arg3[%c0, %c0_0] : memref<128x4xf32, #tpu.memory_space<vmem>>, vector<128x4xf32>
    %1 = vector.extract_strided_slice %0 {offsets = [0, 0], sizes = [128, 1], strides = [1, 1]} : vector<128x4xf32> to vector<128x1xf32>
    %2 = vector.shape_cast %1 : vector<128x1xf32> to vector<1x128x1xf32>
    %3 = vector.extract_strided_slice %0 {offsets = [0, 1], sizes = [128, 1], strides = [1, 1]} : vector<128x4xf32> to vector<128x1xf32>
    %4 = vector.shape_cast %3 : vector<128x1xf32> to vector<1x128x1xf32>
    %5 = vector.extract_strided_slice %0 {offsets = [0, 2], sizes = [128, 1], strides = [1, 1]} : vector<128x4xf32> to vector<128x1xf32>
    %6 = vector.shape_cast %5 : vector<128x1xf32> to vector<1x128x1xf32>
    %7 = vector.extract_strided_slice %0 {offsets = [0, 3], sizes = [128, 1], strides = [1, 1]} : vector<128x4xf32> to vector<128x1xf32>
    %8 = vector.shape_cast %7 : vector<128x1xf32> to vector<1x128x1xf32>
    %c0_1 = arith.constant 0 : index
    %c0_2 = arith.constant 0 : index
    %9 = vector.load %arg1[%c0_1, %c0_2] : memref<8x128xf32, #tpu.memory_space<vmem>>, vector<8x128xf32>
    %c0_3 = arith.constant 0 : index
    %c0_4 = arith.constant 0 : index
    %10 = vector.load %arg2[%c0_3, %c0_4] : memref<8x128xf32, #tpu.memory_space<vmem>>, vector<8x128xf32>
    %11 = vector.shape_cast %9 : vector<8x128xf32> to vector<8x1x128xf32>
    %12 = vector.shape_cast %10 : vector<8x128xf32> to vector<8x1x128xf32>
    %13 = vector.broadcast %2 : vector<1x128x1xf32> to vector<8x128x128xf32>
    %14 = vector.broadcast %11 : vector<8x1x128xf32> to vector<8x128x128xf32>
    %15 = arith.mulf %13, %14 : vector<8x128x128xf32>
    %16 = vector.broadcast %4 : vector<1x128x1xf32> to vector<8x128x128xf32>
    %17 = arith.addf %15, %16 : vector<8x128x128xf32>
    %cst = arith.constant 0.000000e+00 : f32
    %18 = vector.broadcast %cst : f32 to vector<8x128x128xf32>
    %19 = arith.maximumf %17, %18 : vector<8x128x128xf32>
    %20 = arith.truncf %19 : vector<8x128x128xf32> to vector<8x128x128xbf16>
    %21 = vector.broadcast %6 : vector<1x128x1xf32> to vector<8x128x128xf32>
    %22 = vector.broadcast %12 : vector<8x1x128xf32> to vector<8x128x128xf32>
    %23 = arith.mulf %21, %22 : vector<8x128x128xf32>
    %24 = vector.broadcast %8 : vector<1x128x1xf32> to vector<8x128x128xf32>
    %25 = arith.addf %23, %24 : vector<8x128x128xf32>
    %cst_5 = arith.constant 0.000000e+00 : f32
    %26 = vector.broadcast %cst_5 : f32 to vector<8x128x128xf32>
    %27 = arith.maximumf %25, %26 : vector<8x128x128xf32>
    %28 = arith.truncf %27 : vector<8x128x128xf32> to vector<8x128x128xbf16>
    "tpu.trace_start"() <{level = 10 : i32, message = "bcl,blm->bcm"}> : () -> ()
    %cst_6 = arith.constant dense<0.000000e+00> : vector<8x128x128xf32>
    %29 = tpu.matmul %20, %28, %cst_6 {dimension_numbers = #tpu.dot_dimension_numbers<[2], [1], [1], [2], [0, 0, 0, 1, 1, 2], [0], [0]>} : vector<8x128x128xbf16>, vector<8x128x128xbf16>, vector<8x128x128xf32> -> vector<8x128x128xf32>
    "tpu.trace_stop"() : () -> ()
    %30 = vector.broadcast %11 : vector<8x1x128xf32> to vector<8x128x128xf32>
    %31 = arith.mulf %30, %29 : vector<8x128x128xf32>
    %32 = arith.truncf %31 : vector<8x128x128xf32> to vector<8x128x128xbf16>
    %cst_7 = arith.constant dense<0xFF80> : vector<8x128xbf16>
    %33 = vector.multi_reduction <maximumf>, %32, %cst_7 [1] : vector<8x128x128xbf16> to vector<8x128xbf16>
    %34 = vector.shape_cast %33 : vector<8x128xbf16> to vector<8x1x128xbf16>
    %35 = vector.broadcast %34 : vector<8x1x128xbf16> to vector<8x128x128xbf16>
    %36 = arith.subf %32, %35 : vector<8x128x128xbf16>
    %37 = math.exp %36 : vector<8x128x128xbf16>
    %38 = arith.extf %37 : vector<8x128x128xbf16> to vector<8x128x128xf32>
    %cst_8 = arith.constant dense<0.000000e+00> : vector<8x128xf32>
    %39 = vector.multi_reduction <add>, %38, %cst_8 [1] : vector<8x128x128xf32> to vector<8x128xf32>
    %40 = arith.truncf %39 : vector<8x128xf32> to vector<8x128xbf16>
    %41 = arith.extf %40 : vector<8x128xbf16> to vector<8x128xf32>
    %42 = tpu.reciprocal %41 : vector<8x128xf32> -> vector<8x128xf32>
    %43 = arith.mulf %41, %42 : vector<8x128xf32>
    %c0_9 = arith.constant 0 : index
    %c0_10 = arith.constant 0 : index
    %44 = vector.load %arg4[%c0_9, %c0_10] : memref<8x128xf32, #tpu.memory_space<vmem>>, vector<8x128xf32>
    tpu.vector_store %arg4[%c0_9, %c0_10], %43 {strides = array<i32>} : memref<8x128xf32, #tpu.memory_space<vmem>>, vector<8x128xf32>,
    return
  }
  func.func @transform_0(%arg0: i32) -> (i32, i32) {
    %c0_i32 = arith.constant 0 : i32
    %c0_i32_0 = arith.constant 0 : i32
    return %arg0, %c0_i32 : i32, i32
  }
  func.func @transform_1(%arg0: i32) -> (i32, i32) {
    %c0_i32 = arith.constant 0 : i32
    %c0_i32_0 = arith.constant 0 : i32
    return %arg0, %c0_i32 : i32, i32
  }
  func.func @transform_2(%arg0: i32) -> (i32, i32) {
    %c0_i32 = arith.constant 0 : i32
    %c0_i32_0 = arith.constant 0 : i32
    %c0_i32_1 = arith.constant 0 : i32
    return %c0_i32, %c0_i32_0 : i32, i32
  }
  func.func @transform_3(%arg0: i32) -> (i32, i32) {
    %c0_i32 = arith.constant 0 : i32
    %c0_i32_0 = arith.constant 0 : i32
    return %arg0, %c0_i32 : i32, i32
  }
}

</mosaic_0001>

<bundles_post_ra>
// kernel: att_combine_forward.1
= control target key start
LH: loop header
LB: loop body
LE: loop exit
PB: predicated region body
PF: predicated region fallthrough
CT: control target
= control target key end

     0   :  { %s4801_s12 = smov 0   ;;  %s7406_s0 = inlined_call_operand.vmem [shape: f32[16,128], index: 0, kind: input, shape index: {}]   ;;  %s7407_s1 = inlined_call_operand.vmem [shape: f32[16,128], index: 1, kind: input, shape index: {}]   ;;  %s7408_s2 = inlined_call_operand.vmem [shape: f32[128,4], index: 2, kind: input, shape index: {}]   ;;  %s7409_s3 = inlined_call_operand.vmem [shape: f32[16,128], index: 3, kind: output, shape index: {}]  }
   0x1 LB: > { %s4434_s13 = sadd.s32 4294967295, %s4775_s12   ;;  %p4438_p0 = scmp.ge.s32.totalorder %s4775_s12, 1  ;;  %s4775_s12 = sphi %s4801_s12, %s13_s12  }
   0x2   : > { %p145_p1 = scmp.lt.s32.totalorder %s4775_s12, 3 }
   0x4   : > { %p146_p2 = pnand %p4438_p0, %p145_p1 }
   0x6   : > { %149 = sbr.rel (%p146_p2) target bundleno = 1021 (0x3fd), region = 32 }
   0xb   : > { %v4812_v0 = vld [vmem:[%s7408_s2 + $0x70] sm:$0xff]  ;;  %v7410_v1 = vmov 3   ;;  %v4778_v2 = vmov 2   ;;  %v4819_v3 = vld [vmem:[%s7408_s2 + $0x60] sm:$0xff]  ;;  %v198_v4 = vld [vmem:[%s7408_s2 + $0x78] sm:$0xff]  ;;  %v7411_v18 = vmov 0  }
   0xc   : > { %7516 = vst [vmem:[#allocation2_spill] sm:$0xff] %v4812_v0  ;;  %4457 = vset.pattern.permute.xlu1 %v7410_v1  ;;  %4456 = vset.pattern.permute.xlu0 %v4778_v2  ;;  %v4831_v5 = vld [vmem:[%s7408_s2 + $0x68] sm:$0xff]  ;;  %v4837_v6 = vld [vmem:[%s7408_s2 + $0x38] sm:$0xff]  ;;  %v4842_v7 = vld [vmem:[%s7408_s2 + $0x50] sm:$0xff]  ;;  %v7420_v19 = vmov 1   ;;  %p171_p3 = scmp.lt.s32.totalorder %s4434_s13, 1 }
   0xd   : > { %1154 = vperm.xlu1 %4457, %v4812_v0   ;;  %946 = vperm.xlu0 %4456, %v4812_v0   ;;  %v4850_v8 = vld [vmem:[%s7408_s2 + $0x58] sm:$0xff]  ;;  %v4861_v9 = vld [vmem:[%s7408_s2 + $0x40] sm:$0xff]  ;;  %v4868_v10 = vld [vmem:[%s7408_s2 + $0x48] sm:$0xff]  ;;  %vm4353_vm7 = vcmask 1041409   ;;  %vm4355_vm13 = vcmask 1042434  }
   0xe   : > { %4458 = vset.pattern.permute.xlu2 %v4778_v2  ;;  %v4877_v11 = vld [vmem:[%s7408_s2 + $0x30] sm:$0xff]  ;;  %v4884_v12 = vld [vmem:[%s7408_s2 + $0x20] sm:$0xff]  ;;  %v4893_v13 = vld [vmem:[%s7408_s2 + $0x18] sm:$0xff]  ;;  %s7688_s13 = smov (!%p171_p3, %s4434_s13), 1 }
   0xf   : > { %938 = vperm.xlu2 %4458, %v4819_v3   ;;  %v4901_v14 = vld [vmem:[%s7408_s2 + $0x28] sm:$0xff]  ;;  %v183_v15 = vld [vmem:[%s7408_s2] sm:$0xff]  ;;  %v185_v16 = vld [vmem:[%s7408_s2 + $0x10] sm:$0xff]  ;;  %s4930_s21 = sshll.u32 %s7688_s13, 3 }
  0x10   : > { %v184_v17 = vld [vmem:[%s7408_s2 + $0x8] sm:$0xff]  ;;  %s178_s24 = scalar_lea.vmem %s7407_s1, %s4930_s21  ;;  %s4951_s26 = scalar_lea.vmem %s7406_s0, %s4930_s21 }
  0x11   : > { %v4940_v22 = vld [vmem:[%s178_s24] sm:$0xff]  ;;  %s182_s4 = scalar_lea.vmem %s7409_s3, %s4930_s21 }
  0x12   : > { %v210_v23 = vrot.slane %v4940_v22, 1  ;;  %v211_v24 = vrot.slane %v4940_v22, 2  ;;  %v212_v25 = vrot.slane %v4940_v22, 3  ;;  %v4954_v26 = vperm.slane %v4940_v22, 0  ;;  %v4965_v30 = vld [vmem:[%s4951_s26] sm:$0xff] }
  0x13   : > { %7520 = vst [vmem:[#allocation6_spill] sm:$0xff] %v4965_v30  ;;  %v213_v32 = vrot.slane %v4940_v22, 4  ;;  %v202_v34 = vrot.slane %v4965_v30, 1  ;;  %v203_v35 = vrot.slane %v4965_v30, 2  ;;  %v4987_v39 = vperm.slane %v4965_v30, 0 }
  0x14   : > { %v4959_v28 = vperm.slane %v210_v23, 0  ;;  %v4961_v29 = vperm.slane %v211_v24, 0  ;;  %v4967_v31 = vperm.slane %v212_v25, 0 }
  0x15   : > { %1158 = vperm.xlu1 %4457, %v198_v4   ;;  %950 = vperm.xlu0 %4456, %v198_v4   ;;  %7521 = vst [vmem:[#allocation7_spill] sm:$0xff] %v4987_v39  ;;  %v4993_v41 = vperm.slane %v213_v32, 0  ;;  %v5017_v52 = vperm.slane %v202_v34, 0  ;;  %v5019_v53 = vperm.slane %v203_v35, 0 }
  0x17   : > { %942 = vperm.xlu2 %4458, %v4831_v5   ;;  %7522 = vst [vmem:[#allocation8_spill] sm:$0xff] %v4993_v41 }
  0x18   : > { %7523 = vst [vmem:[#allocation9_spill] sm:$0xff] %v5017_v52 }
  0x19   : > { %7524 = vst [vmem:[#allocation10_spill] sm:$0xff] %v5019_v53 }
  0x1d   : > { %1150 = vperm.xlu1 %4457, %v4831_v5   ;;  %918 = vperm.xlu0 %4456, %v4837_v6  }
  0x1f   : > { %930 = vperm.xlu2 %4458, %v4842_v7  }
  0x25   : > { %4459 = vset.pattern.permute.xlu1 %v4778_v2  ;;  %4463 = vset.pattern.permute.xlu0 %v7410_v1 }
  0x26   : > { %934 = vperm.xlu1 %4459, %v4850_v8   ;;  %1146 = vperm.xlu0 %4463, %v4819_v3  }
  0x27   : > { %4460 = vset.pattern.permute.xlu2 %v7410_v1 }
  0x28   : > { %1138 = vperm.xlu2 %4460, %v4842_v7  }
  0x2e   : > { %922 = vperm.xlu1 %4459, %v4861_v9   ;;  %1142 = vperm.xlu0 %4463, %v4850_v8  }
  0x30   : > { %4461 = vset.pattern.permute.xlu2 %v4778_v2 }
  0x31   : > { %926 = vperm.xlu2 %4461, %v4868_v10  }
  0x36   : > { %4462 = vset.pattern.permute.xlu1 %v7410_v1  ;;  %1130 = vperm.xlu0 %4463, %v4861_v9  }
  0x37   : > { %1134 = vperm.xlu1 %4462, %v4868_v10  }
  0x39   : > { %914 = vperm.xlu2 %4461, %v4877_v11  }
  0x3e   : > { %1114 = vperm.xlu0 %4463, %v4884_v12  }
  0x3f   : > { %1122 = vperm.xlu1 %4462, %v4877_v11  }
  0x41   : > { %4464 = vset.pattern.permute.xlu2 %v7410_v1 }
  0x42   : > { %1126 = vperm.xlu2 %4464, %v4837_v6  }
  0x46   : > { %1110 = vperm.xlu0 %4463, %v4893_v13  }
  0x47   : > { %4465 = vset.pattern.permute.xlu1 %v4778_v2 }
  0x48   : > { %906 = vperm.xlu1 %4465, %v4884_v12  }
  0x4a   : > { %4466 = vset.pattern.permute.xlu2 %v4778_v2 }
  0x4b   : > { %910 = vperm.xlu2 %4466, %v4901_v14  }
  0x4e   : > { %1098 = vperm.xlu0 %4463, %v183_v15  }
  0x50   : > { %4467 = vset.pattern.permute.xlu1 %v7410_v1 }
  0x51   : > { %1118 = vperm.xlu1 %4467, %v4901_v14  }
  0x53   : > { %898 = vperm.xlu2 %4466, %v185_v16  }
  0x56   : > { %4473 = vset.pattern.permute.xlu0 %v7411_v18 }
  0x57   : > { %224 = vperm.xlu0 %4473, %v184_v17  }
  0x59   : > { %4468 = vset.pattern.permute.xlu1 %v4778_v2 }
  0x5a   : > { %902 = vperm.xlu1 %4468, %v4893_v13  }
  0x5b   : > { %4469 = vset.pattern.permute.xlu2 %v7410_v1 }
  0x5c   : > { %1106 = vperm.xlu2 %4469, %v185_v16  }
  0x5f   : > { %4478 = vset.pattern.permute.xlu0 %v7420_v19 }
  0x60   : > { %450 = vperm.xlu0 %4478, %v185_v16  }
  0x62   : > { %890 = vperm.xlu1 %4468, %v183_v15  }
  0x64   : > { %4470 = vset.pattern.permute.xlu2 %v4778_v2 }
  0x65   : > { %894 = vperm.xlu2 %4470, %v184_v17  }
  0x68   : > { %462 = vperm.xlu0 %4478, %v4901_v14  }
  0x69   : > { %v4927_v20 = vpop.permute.xlu2 %938 }
  0x6a   : > { %7517 = vst [vmem:[#allocation3_spill] sm:$0xff] %v4927_v20  ;;  %4471 = vset.pattern.permute.xlu1 %v7410_v1  ;;  %v4973_v33 = vmul.f32 %v4954_v26, %v4927_v20  ;;  %v4979_v36 = vmul.f32 %v4959_v28, %v4927_v20  ;;  %v4983_v37 = vmul.f32 %v4961_v29, %v4927_v20 }
  0x6b   : > { %1102 = vperm.xlu1 %4471, %v184_v17   ;;  %v4991_v40 = vmul.f32 %v4967_v31, %v4927_v20 }
  0x6d   : > { %4472 = vset.pattern.permute.xlu2 %v7411_v18 }
  0x6e   : > { %219 = vperm.xlu2 %4472, %v183_v15  }
  0x70   : > { %466 = vperm.xlu0 %4478, %v4877_v11  }
  0x71   : > { %v4938_v21 = vpop.permute.xlu2 %942 }
  0x72   : > { %7518 = vst [vmem:[#allocation4_spill] sm:$0xff] %v4938_v21  ;;  %v5023_v54 = vmul.f32 %v4954_v26, %v4938_v21  ;;  %v5027_v55 = vmul.f32 %v4959_v28, %v4938_v21 }
  0x73   : > { %4474 = vset.pattern.permute.xlu1 %v7420_v19 }
  0x74   : > { %442 = vperm.xlu1 %4474, %v183_v15  }
  0x76   : > { %4475 = vset.pattern.permute.xlu2 %v7420_v19 }
  0x77   : > { %446 = vperm.xlu2 %4475, %v184_v17  }
  0x78   : > { %4484 = vset.pattern.permute.xlu0 %v7411_v18 }
  0x79   : > { %v4957_v27 = vpop.permute.xlu2 %930  ;;  %264 = vperm.xlu0 %4484, %v4868_v10  }
  0x7a   : > { %7519 = vst [vmem:[#allocation5_spill] sm:$0xff] %v4957_v27  ;;  %v979_v44 = vmul.f32 %v4954_v26, %v4957_v27  ;;  %v995_v45 = vmul.f32 %v4959_v28, %v4957_v27  ;;  %v1011_v46 = vmul.f32 %v4961_v29, %v4957_v27  ;;  %v1027_v47 = vmul.f32 %v4967_v31, %v4957_v27 }
  0x7c   : > { %4476 = vset.pattern.permute.xlu1 %v7411_v18 }
  0x7d   : > { %229 = vperm.xlu1 %4476, %v185_v16  }
  0x7f   : > { %v4995_v42 = vpop.permute.xlu1 %1154  ;;  %v4997_v43 = vpop.permute.xlu0 %946  ;;  %4477 = vset.pattern.permute.xlu2 %v7411_v18 }
  0x80   : > { %234 = vperm.xlu2 %4477, %v4893_v13   ;;  %v983_v48 = vmul.f32 %v4954_v26, %v4997_v43  ;;  %v999_v49 = vmul.f32 %v4959_v28, %v4997_v43  ;;  %v1015_v50 = vmul.f32 %v4961_v29, %v4997_v43  ;;  %v1031_v51 = vmul.f32 %v4967_v31, %v4997_v43 }
  0x81   : > { %4488 = vset.pattern.permute.xlu0 %v7420_v19 }
  0x82   : > { %v5030_v56 = vpop.permute.xlu2 %1138  ;;  %v1175_v57 = vadd.f32 %v4995_v42, %v983_v48  ;;  %v1191_v58 = vadd.f32 %v4995_v42, %v999_v49  ;;  %v1207_v59 = vadd.f32 %v4995_v42, %v1015_v50  ;;  %v1223_v60 = vadd.f32 %v4995_v42, %v1031_v51  ;;  %482 = vperm.xlu0 %4488, %v4842_v7  }
  0x83   : > { %7525 = vst [vmem:[#allocation11_spill] sm:$0xff] %v5030_v56  ;;  %v1171_v61 = vadd.f32 %v5030_v56, %v979_v44  ;;  %v1187_v62 = vadd.f32 %v5030_v56, %v995_v45  ;;  %v1203_v63 = vadd.f32 %v5030_v56, %v1011_v46  ;;  %v1219_v2 = vadd.f32 %v5030_v56, %v1027_v47 }
  0x84   : > { %v1303_v4 = vmax.f32 %v1175_v57, 0.0  ;;  %v1319_v15 = vmax.f32 %v1191_v58, 0.0  ;;  %v1335_v16 = vmax.f32 %v1207_v59, 0.0  ;;  %v1351_v17 = vmax.f32 %v1223_v60, 0.0 }
  0x85   : > { %4479 = vset.pattern.permute.xlu1 %v7420_v19  ;;  %v1299_v23 = vmax.f32 %v1171_v61, 0.0  ;;  %v1315_v24 = vmax.f32 %v1187_v62, 0.0  ;;  %v1331_v25 = vmax.f32 %v1203_v63, 0.0  ;;  %v1347_v32 = vmax.f32 %v1219_v2, 0.0 }
  0x86   : > { %454 = vperm.xlu1 %4479, %v4893_v13   ;;  %v1431_v34 = vpack.c.bf16 %v1303_v4, %v1303_v4  ;;  %v1447_v35 = vpack.c.bf16 %v1319_v15, %v1319_v15  ;;  %v5043_v44 = vpack.c.bf16 %v1335_v16, %v1335_v16  ;;  %v1014_v45 = vmul.f32 %v4961_v29, %v4938_v21 }
  0x87   : > { %v5047_v46 = vpop.permute.xlu1 %1158  ;;  %v5049_v47 = vpop.permute.xlu0 %950  ;;  %v1479_v48 = vpack.c.bf16 %v1351_v17, %v1351_v17  ;;  %v1030_v49 = vmul.f32 %v4967_v31, %v4938_v21  ;;  %v5053_v50 = vpack.c.bf16 %v1299_v23, %v1299_v23  ;;  %v1047_v13 = vmul.f32 %v4993_v41, %v4997_v43 }
  0x88   : > { %v984_v51 = vmul.f32 %v4954_v26, %v5049_v47  ;;  %v1000_v57 = vmul.f32 %v4959_v28, %v5049_v47  ;;  %239 = vperm.xlu2 %4477, %v4884_v12   ;;  %v5062_v58 = vpack.c.bf16 %v1315_v24, %v1315_v24  ;;  %v5064_v59 = vpack.c.bf16 %v1331_v25, %v1331_v25 }
  0x89   : > { %v1623_v60 = vunpack.c.l.b16 %v1431_v34  ;;  %v1016_v61 = vmul.f32 %v4961_v29, %v5049_v47  ;;  %v1032_v62 = vmul.f32 %v4967_v31, %v5049_v47  ;;  %v5070_v63 = vpack.c.bf16 %v1347_v32, %v1347_v32 }
  0x8a   : > { %v1176_v2 = vadd.f32 %v5047_v46, %v984_v51  ;;  %v1192_v4 = vadd.f32 %v5047_v46, %v1000_v57  ;;  %v1768_v15 = vunpack.c.l.b16 %v1447_v35  ;;  %v1913_v16 = vunpack.c.l.b16 %v5043_v44  ;;  %494 = vperm.xlu0 %4488, %v4831_v5  }
  0x8b   : > { %v5076_v17 = vpop.permute.xlu2 %926  ;;  %v1208_v23 = vadd.f32 %v5047_v46, %v1016_v61  ;;  %v1224_v24 = vadd.f32 %v5047_v46, %v1032_v62  ;;  %v2058_v25 = vunpack.c.l.b16 %v1479_v48 }
  0x8c   : > { %7526 = vst [vmem:[#allocation12_spill] sm:$0xff] %v5076_v17  ;;  %v1304_v32 = vmax.f32 %v1176_v2, 0.0  ;;  %v1320_v38 = vmax.f32 %v1192_v4, 0.0  ;;  %v5085_v44 = vmul.f32 %v4954_v26, %v5076_v17  ;;  %v5089_v61 = vmul.f32 %v4959_v28, %v5076_v17 }
  0x8d   : > { %v1336_v35 = vmax.f32 %v1208_v23, 0.0  ;;  %v1352_v1 = vmax.f32 %v1224_v24, 0.0  ;;  %v5094_v2 = vmul.f32 %v4961_v29, %v5076_v17  ;;  %v5098_v4 = vmul.f32 %v4967_v31, %v5076_v17 }
  0x8e   : > { %4480 = vset.pattern.permute.xlu1 %v7411_v18  ;;  %v1432_v48 = vpack.c.bf16 %v1304_v32, %v1304_v32  ;;  %v1448_v62 = vpack.c.bf16 %v1320_v38, %v1320_v38  ;;  %v1048_v32 = vmul.f32 %v4993_v41, %v5049_v47  ;;  %v1239_v38 = vadd.f32 %v4995_v42, %v1047_v13 }
  0x8f   : > { %v5100_v23 = vpop.permute.xlu1 %1150  ;;  %244 = vperm.xlu1 %4480, %v4901_v14   ;;  %v5103_v24 = vpop.permute.xlu0 %918  ;;  %v1464_v57 = vpack.c.bf16 %v1336_v35, %v1336_v35  ;;  %v1480_v51 = vpack.c.bf16 %v1352_v1, %v1352_v1  ;;  %v7535_v41 = vmov 1  }
  0x90   : > { %7527 = vst [vmem:[#allocation13_spill] sm:$0xff] %v5100_v23  ;;  %v1624_v34 = vunpack.c.l.b16 %v1432_v48  ;;  %v1769_v18 = vunpack.c.l.b16 %v1448_v62  ;;  %4481 = vset.pattern.permute.xlu2 %v7420_v19  ;;  %v1174_v17 = vadd.f32 %v5100_v23, %v5023_v54  ;;  %v1190_v56 = vadd.f32 %v5100_v23, %v5027_v55 }
  0x91   : > { %7528 = vst [vmem:[#allocation14_spill] sm:$0xff] %v5103_v24  ;;  %v1914_v14 = vunpack.c.l.b16 %v1464_v57  ;;  %v2059_v27 = vunpack.c.l.b16 %v1480_v51  ;;  %458 = vperm.xlu2 %4481, %v4884_v12   ;;  %v1206_v1 = vadd.f32 %v5100_v23, %v1014_v45  ;;  %v1222_v35 = vadd.f32 %v5100_v23, %v1030_v49 }
  0x92   : > { %v1632_v53 = vpack.c.b16 %v1624_v34, %v1623_v60  ;;  %v1777_v13 = vpack.c.b16 %v1769_v18, %v1768_v15  ;;  %v1302_v48 = vmax.f32 %v1174_v17, 0.0  ;;  %v1318_v62 = vmax.f32 %v1190_v56, 0.0  ;;  %498 = vperm.xlu0 %4488, %v4812_v0  }
  0x93   : > { %v1922_v19 = vpack.c.b16 %v1914_v14, %v1913_v16  ;;  %v2067_v52 = vpack.c.b16 %v2059_v27, %v2058_v25  ;;  %v5117_v54 = vpop.permute.xlu2 %914  ;;  %v1334_v39 = vmax.f32 %v1206_v1, 0.0  ;;  %v1350_v55 = vmax.f32 %v1222_v35, 0.0 }
  0x94   : > { %7529 = vst [vmem:[#allocation15_spill] sm:$0xff] %v5117_v54  ;;  %1641 = vmatpush.bf16.msra.mxu0 %v1632_v53  ;;  %1786 = vmatpush.bf16.msra.mxu1 %v1777_v13  ;;  %v5119_v51 = vpack.c.bf16 %v1302_v48, %v1302_v48  ;;  %v5121_v12 = vpack.c.bf16 %v1318_v62, %v1318_v62  ;;  %v1367_v18 = vmax.f32 %v1239_v38, 0.0  ;;  %v214_v17 = vrot.slane %v4940_v22, 5 }
  0x95   : > { %v5125_v45 = vmul.f32 %v4954_v26, %v5117_v54  ;;  %1931 = vmatpush.bf16.msra.mxu2 %v1922_v19  ;;  %2076 = vmatpush.bf16.msra.mxu3 %v2067_v52  ;;  %v1462_v56 = vpack.c.bf16 %v1334_v39, %v1334_v39  ;;  %v1478_v49 = vpack.c.bf16 %v1350_v55, %v1350_v55  ;;  %v7532_v55 = vmov 0  }
  0x96   : > { %v976_v60 = vmul.f32 %v4954_v26, %v5103_v24  ;;  %v1622_v53 = vunpack.c.l.b16 %v5119_v51  ;;  %v1767_v15 = vunpack.c.l.b16 %v5121_v12  ;;  %v5134_v16 = vmul.f32 %v4959_v28, %v5117_v54 }
  0x97   : > { %249 = vperm.xlu1 %4480, %v4877_v11   ;;  %v1912_v19 = vunpack.c.l.b16 %v1462_v56  ;;  %v2057_v39 = vunpack.c.l.b16 %v1478_v49  ;;  %v992_v52 = vmul.f32 %v4959_v28, %v5103_v24  ;;  %v5142_v25 = vmul.f32 %v4961_v29, %v5117_v54 }
  0x98   : > { %v5144_v34 = vpop.permute.xlu1 %934  ;;  %v5146_v57 = vpop.permute.xlu0 %1146  ;;  %v1008_v38 = vmul.f32 %v4961_v29, %v5103_v24  ;;  %v5152_v14 = vmul.f32 %v4967_v31, %v5117_v54  ;;  %v5155_v11 = vadd.f32 %v5047_v46, %v1048_v32  ;;  %v5157_v1 = vpack.c.bf16 %v1367_v18, %v1367_v18 }
  0x99   : > { %7530 = vst [vmem:[#allocation16_spill] sm:$0xff] %v5144_v34  ;;  %v1173_v35 = vadd.f32 %v5146_v57, %v4973_v33  ;;  %v1189_v13 = vadd.f32 %v5146_v57, %v4979_v36  ;;  %v1205_v48 = vadd.f32 %v5146_v57, %v4983_v37  ;;  %v1221_v62 = vadd.f32 %v5146_v57, %v4991_v40 }
  0x9a   : > { %7531 = vst [vmem:[#allocation17_spill] sm:$0xff] %v5146_v57  ;;  %4482 = vset.pattern.permute.xlu2 %v7532_v55  ;;  %v980_v32 = vmul.f32 %v4954_v26, %v5144_v34  ;;  %v996_v51 = vmul.f32 %v4959_v28, %v5144_v34  ;;  %v1012_v33 = vmul.f32 %v4961_v29, %v5144_v34  ;;  %v7533_v56 = vmov 3  }
  0x9b   : > { %254 = vperm.xlu2 %4482, %v4837_v6   ;;  %v1024_v36 = vmul.f32 %v4967_v31, %v5103_v24  ;;  %v1301_v37 = vmax.f32 %v1173_v35, 0.0  ;;  %v1317_v12 = vmax.f32 %v1189_v13, 0.0  ;;  %v1333_v18 = vmax.f32 %v1205_v48, 0.0  ;;  %4494 = vset.pattern.permute.xlu0 %v7533_v56 }
  0x9c   : > { %v1349_v40 = vmax.f32 %v1221_v62, 0.0  ;;  %v5178_v49 = vpop.permute.xlu2 %1126  ;;  %v1028_v27 = vmul.f32 %v4967_v31, %v5144_v34  ;;  %v5184_v23 = vperm.slane %v214_v17, 0 }
  0x9d   : > { %7534 = vst [vmem:[#allocation18_spill] sm:$0xff] %v5178_v49  ;;  %v1429_v57 = vpack.c.bf16 %v1301_v37, %v1301_v37  ;;  %v1445_v21 = vpack.c.bf16 %v1317_v12, %v1317_v12  ;;  %v1461_v24 = vpack.c.bf16 %v1333_v18, %v1333_v18  ;;  %v1168_v13 = vadd.f32 %v5178_v49, %v976_v60 }
  0x9e   : > { %v1477_v35 = vpack.c.bf16 %v1349_v40, %v1349_v40  ;;  %v1184_v48 = vadd.f32 %v5178_v49, %v992_v52  ;;  %v1200_v62 = vadd.f32 %v5178_v49, %v1008_v38  ;;  %v1216_v56 = vadd.f32 %v5178_v49, %v1024_v36 }
  0x9f   : > { %4483 = vset.pattern.permute.xlu1 %v7535_v41  ;;  %v1621_v34 = vunpack.c.l.b16 %v1429_v57  ;;  %v1766_v54 = vunpack.c.l.b16 %v1445_v21  ;;  %v1911_v20 = vunpack.c.l.b16 %v1461_v24  ;;  %v1296_v12 = vmax.f32 %v1168_v13, 0.0 }
  0xa0   : > { %v2056_v30 = vunpack.c.l.b16 %v1477_v35  ;;  %v5191_v17 = vpop.permute.xlu1 %922  ;;  %v5193_v37 = vpop.permute.xlu0 %1142  ;;  %470 = vperm.xlu1 %4483, %v4837_v6   ;;  %v1312_v60 = vmax.f32 %v1184_v48, 0.0  ;;  %v1328_v18 = vmax.f32 %v1200_v62, 0.0  ;;  %v1344_v52 = vmax.f32 %v1216_v56, 0.0 }
  0xa1   : > { %v1631_v40 = vpack.c.b16 %v1622_v53, %v1621_v34  ;;  %v1776_v38 = vpack.c.b16 %v1767_v15, %v1766_v54  ;;  %v1921_v0 = vpack.c.b16 %v1912_v19, %v1911_v20  ;;  %v1172_v49 = vadd.f32 %v5193_v37, %v980_v32 }
  0xa2   : > { %v2066_v36 = vpack.c.b16 %v2057_v39, %v2056_v30  ;;  %v1188_v21 = vadd.f32 %v5193_v37, %v996_v51  ;;  %v1204_v24 = vadd.f32 %v5193_v37, %v1012_v33  ;;  %v1220_v57 = vadd.f32 %v5193_v37, %v1028_v27 }
  0xa3   : > { %259 = vperm.xlu2 %4482, %v4861_v9   ;;  %1642 = vmatpush.bf16.msra.mxu0 %v1631_v40  ;;  %v977_v6 = vmul.f32 %v4954_v26, %v5191_v17  ;;  %v993_v54 = vmul.f32 %v4959_v28, %v5191_v17  ;;  %v1009_v20 = vmul.f32 %v4961_v29, %v5191_v17  ;;  %v215_v30 = vrot.slane %v4940_v22, 6 }
  0xa4   : > { %1787 = vmatpush.bf16.msra.mxu1 %v1776_v38  ;;  %1932 = vmatpush.bf16.msra.mxu2 %v1921_v0  ;;  %v1300_v53 = vmax.f32 %v1172_v49, 0.0  ;;  %v1316_v15 = vmax.f32 %v1188_v21, 0.0  ;;  %v1332_v27 = vmax.f32 %v1204_v24, 0.0  ;;  %v1348_v19 = vmax.f32 %v1220_v57, 0.0 }
  0xa5   : > { %2077 = vmatpush.bf16.msra.mxu3 %v2066_v36  ;;  %v5208_v39 = vpop.permute.xlu2 %910  ;;  %v1025_v34 = vmul.f32 %v4967_v31, %v5191_v17  ;;  %v5212_v32 = vpack.c.bf16 %v1296_v12, %v1296_v12  ;;  %v5214_v51 = vpack.c.bf16 %v1312_v60, %v1312_v60  ;;  %v5216_v33 = vpack.c.bf16 %v1328_v18, %v1328_v18 }
  0xa6   : > { %v1428_v35 = vpack.c.bf16 %v1300_v53, %v1300_v53  ;;  %v1444_v13 = vpack.c.bf16 %v1316_v15, %v1316_v15  ;;  %v1460_v48 = vpack.c.bf16 %v1332_v27, %v1332_v27  ;;  %v1476_v0 = vpack.c.bf16 %v1348_v19, %v1348_v19 }
  0xa7   : > { %v1616_v49 = vunpack.c.l.b16 %v5212_v32  ;;  %v1761_v62 = vunpack.c.l.b16 %v5214_v51  ;;  %v1906_v56 = vunpack.c.l.b16 %v5216_v33  ;;  %v5221_v40 = vpack.c.bf16 %v1344_v52, %v1344_v52 }
  0xa8   : > { %v5223_v38 = vpop.permute.xlu0 %1130  ;;  %474 = vperm.xlu1 %4483, %v4861_v9   ;;  %v1620_v12 = vunpack.c.l.b16 %v1428_v35  ;;  %v1765_v60 = vunpack.c.l.b16 %v1444_v13  ;;  %v1910_v18 = vunpack.c.l.b16 %v1460_v48  ;;  %v2055_v36 = vunpack.c.l.b16 %v1476_v0 }
  0xa9   : > { %v5226_v21 = vpop.permute.xlu1 %1134  ;;  %v1169_v24 = vadd.f32 %v5223_v38, %v977_v6  ;;  %v1185_v57 = vadd.f32 %v5223_v38, %v993_v54  ;;  %v1201_v53 = vadd.f32 %v5223_v38, %v1009_v20  ;;  %v1217_v15 = vadd.f32 %v5223_v38, %v1025_v34 }
  0xaa   : > { %v7536_v52 = vunpack.c.l.b16 %v5053_v50  ;;  %v7537_v19 = vunpack.c.l.b16 %v5062_v58  ;;  %v7538_v35 = vunpack.c.l.b16 %v5064_v59  ;;  %v7539_v48 = vunpack.c.l.b16 %v5070_v63 }
  0xab   : > { %4485 = vset.pattern.permute.xlu2 %v7535_v41  ;;  %v1170_v6 = vadd.f32 %v5226_v21, %v5085_v44  ;;  %v1297_v54 = vmax.f32 %v1169_v24, 0.0  ;;  %v1186_v20 = vadd.f32 %v5226_v21, %v5089_v61  ;;  %v1313_v50 = vmax.f32 %v1185_v57, 0.0 }
  0xac   : > { %v1630_v27 = vpack.c.b16 %v1620_v12, %v7536_v52  ;;  %v1775_v9 = vpack.c.b16 %v1765_v60, %v7537_v19  ;;  %v1920_v13 = vpack.c.b16 %v1910_v18, %v7538_v35  ;;  %v2065_v0 = vpack.c.b16 %v2055_v36, %v7539_v48  ;;  %478 = vperm.xlu2 %4485, %v4868_v10  }
  0xad   : > { %v1202_v58 = vadd.f32 %v5226_v21, %v5094_v2  ;;  %v1329_v59 = vmax.f32 %v1201_v53, 0.0  ;;  %v1218_v63 = vadd.f32 %v5226_v21, %v5098_v4  ;;  %v1345_v34 = vmax.f32 %v1217_v15, 0.0  ;;  %v5250_v61 = vpop.permute.xlu2 %898 }
  0xae   : > { %1643 = vmatpush.bf16.msra.mxu0 %v1630_v27  ;;  %1788 = vmatpush.bf16.msra.mxu1 %v1775_v9  ;;  %v1298_v44 = vmax.f32 %v1170_v6, 0.0  ;;  %v1425_v12 = vpack.c.bf16 %v1297_v54, %v1297_v54  ;;  %v1314_v60 = vmax.f32 %v1186_v20, 0.0  ;;  %v1441_v18 = vpack.c.bf16 %v1313_v50, %v1313_v50 }
  0xaf   : > { %1933 = vmatpush.bf16.msra.mxu2 %v1920_v13  ;;  %2078 = vmatpush.bf16.msra.mxu3 %v2065_v0  ;;  %v1330_v36 = vmax.f32 %v1202_v58, 0.0  ;;  %v1457_v10 = vpack.c.bf16 %v1329_v59, %v1329_v59  ;;  %v1346_v24 = vmax.f32 %v1218_v63, 0.0  ;;  %v1473_v57 = vpack.c.bf16 %v1345_v34, %v1345_v34 }
  0xb0   : > { %v1426_v52 = vpack.c.bf16 %v1298_v44, %v1298_v44  ;;  %v1617_v27 = vunpack.c.l.b16 %v1425_v12  ;;  %v1442_v2 = vpack.c.bf16 %v1314_v60, %v1314_v60  ;;  %v1762_v53 = vunpack.c.l.b16 %v1441_v18  ;;  %4486 = vset.pattern.permute.xlu1 %v7532_v55 }
  0xb1   : > { %v1458_v4 = vpack.c.bf16 %v1330_v36, %v1330_v36  ;;  %v1907_v15 = vunpack.c.l.b16 %v1457_v10  ;;  %v1474_v19 = vpack.c.bf16 %v1346_v24, %v1346_v24  ;;  %v2052_v9 = vunpack.c.l.b16 %v1473_v57  ;;  %v5253_v35 = vpop.permute.xlu1 %1122  ;;  %269 = vperm.xlu1 %4486, %v4842_v7  }
  0xb2   : > { %v1618_v13 = vunpack.c.l.b16 %v1426_v52  ;;  %v1763_v48 = vunpack.c.l.b16 %v1442_v2  ;;  %v2051_v0 = vunpack.c.l.b16 %v5221_v40  ;;  %v5259_v6 = vmul.f32 %v4954_v26, %v5208_v39 }
  0xb3   : > { %v1908_v54 = vunpack.c.l.b16 %v1458_v4  ;;  %v2053_v20 = vunpack.c.l.b16 %v1474_v19  ;;  %v1167_v50 = vadd.f32 %v5253_v35, %v5125_v45  ;;  %v1183_v58 = vadd.f32 %v5253_v35, %v5134_v16 }
  0xb4   : > { %v1629_v59 = vpack.c.b16 %v1618_v13, %v1617_v27  ;;  %v1774_v63 = vpack.c.b16 %v1763_v48, %v1762_v53  ;;  %v1199_v7 = vadd.f32 %v5253_v35, %v5142_v25  ;;  %v1215_v40 = vadd.f32 %v5253_v35, %v5152_v14  ;;  %4487 = vset.pattern.permute.xlu2 %v7532_v55 }
  0xb5   : > { %v1919_v34 = vpack.c.b16 %v1908_v54, %v1907_v15  ;;  %v2064_v44 = vpack.c.b16 %v2053_v20, %v2052_v9  ;;  %v1295_v12 = vmax.f32 %v1167_v50, 0.0  ;;  %v1311_v60 = vmax.f32 %v1183_v58, 0.0  ;;  %274 = vperm.xlu2 %4487, %v4850_v8  }
  0xb6   : > { %1644 = vmatpush.bf16.msra.mxu0 %v1629_v59  ;;  %1789 = vmatpush.bf16.msra.mxu1 %v1774_v63  ;;  %v1327_v45 = vmax.f32 %v1199_v7, 0.0  ;;  %v1343_v16 = vmax.f32 %v1215_v40, 0.0  ;;  %v5273_v18 = vmul.f32 %v4959_v28, %v5208_v39  ;;  %v5277_v25 = vmul.f32 %v4961_v29, %v5208_v39  ;;  %v5279_v10 = vpop.permute.xlu2 %1106 }
  0xb7   : > { %1934 = vmatpush.bf16.msra.mxu2 %v1919_v34  ;;  %2079 = vmatpush.bf16.msra.mxu3 %v2064_v44  ;;  %v1423_v14 = vpack.c.bf16 %v1295_v12, %v1295_v12  ;;  %v1439_v36 = vpack.c.bf16 %v1311_v60, %v1311_v60  ;;  %v5283_v24 = vmul.f32 %v4967_v31, %v5208_v39  ;;  %v5287_v57 = vperm.slane %v215_v30, 0  ;;  %v5315_v44 = vpop.permute.xlu0 %1114 }
  0xb8   : > { %v1455_v52 = vpack.c.bf16 %v1327_v45, %v1327_v45  ;;  %v1471_v27 = vpack.c.bf16 %v1343_v16, %v1343_v16  ;;  %v971_v2 = vmul.f32 %v4954_v26, %v5250_v61  ;;  %v987_v53 = vmul.f32 %v4959_v28, %v5250_v61 }
  0xb9   : > { %v1615_v4 = vunpack.c.l.b16 %v1423_v14  ;;  %v1760_v15 = vunpack.c.l.b16 %v1439_v36  ;;  %v1003_v19 = vmul.f32 %v4961_v29, %v5250_v61  ;;  %v1019_v9 = vmul.f32 %v4967_v31, %v5250_v61  ;;  %4489 = vset.pattern.permute.xlu1 %v7535_v41 }
  0xba   : > { %v1905_v30 = vunpack.c.l.b16 %v1455_v52  ;;  %v2050_v13 = vunpack.c.l.b16 %v1471_v27  ;;  %v1163_v48 = vadd.f32 %v5279_v10, %v971_v2  ;;  %v1179_v54 = vadd.f32 %v5279_v10, %v987_v53  ;;  %v5300_v20 = vpop.permute.xlu1 %906  ;;  %486 = vperm.xlu1 %4489, %v4850_v8  }
  0xbb   : > { %v1628_v50 = vpack.c.b16 %v1616_v49, %v1615_v4  ;;  %v1773_v58 = vpack.c.b16 %v1761_v62, %v1760_v15  ;;  %v1195_v59 = vadd.f32 %v5279_v10, %v1003_v19  ;;  %v1211_v63 = vadd.f32 %v5279_v10, %v1019_v9 }
  0xbc   : > { %v1918_v7 = vpack.c.b16 %v1906_v56, %v1905_v30  ;;  %v2063_v40 = vpack.c.b16 %v2051_v0, %v2050_v13  ;;  %v973_v34 = vmul.f32 %v4954_v26, %v5300_v20  ;;  %v989_v8 = vmul.f32 %v4959_v28, %v5300_v20 }
  0xbd   : > { %1645 = vmatpush.bf16.msra.mxu0 %v1628_v50  ;;  %1790 = vmatpush.bf16.msra.mxu1 %v1773_v58  ;;  %v1005_v32 = vmul.f32 %v4961_v29, %v5300_v20  ;;  %v1021_v51 = vmul.f32 %v4967_v31, %v5300_v20  ;;  %v1291_v49 = vmax.f32 %v1163_v48, 0.0  ;;  %v1307_v33 = vmax.f32 %v1179_v54, 0.0 }
  0xbe   : > { %1935 = vmatpush.bf16.msra.mxu2 %v1918_v7  ;;  %2080 = vmatpush.bf16.msra.mxu3 %v2063_v40  ;;  %v1165_v62 = vadd.f32 %v5315_v44, %v973_v34  ;;  %v1181_v56 = vadd.f32 %v5315_v44, %v989_v8  ;;  %v1323_v0 = vmax.f32 %v1195_v59, 0.0  ;;  %v1339_v12 = vmax.f32 %v1211_v63, 0.0 }
  0xbf   : > { %v1197_v60 = vadd.f32 %v5315_v44, %v1005_v32  ;;  %v1213_v45 = vadd.f32 %v5315_v44, %v1021_v51  ;;  %279 = vperm.xlu2 %4487, %v4819_v3   ;;  %v5326_v16 = vpack.c.bf16 %v1291_v49, %v1291_v49  ;;  %v5328_v14 = vpack.c.bf16 %v1307_v33, %v1307_v33  ;;  %v5339_v58 = vpop.permute.xlu2 %894 }
  0xc0   : > { %v1293_v36 = vmax.f32 %v1165_v62, 0.0  ;;  %v1309_v52 = vmax.f32 %v1181_v56, 0.0  ;;  %v5330_v27 = vpack.c.bf16 %v1323_v0, %v1323_v0  ;;  %v5332_v2 = vpack.c.bf16 %v1339_v12, %v1339_v12 }
  0xc1   : > { %v1325_v53 = vmax.f32 %v1197_v60, 0.0  ;;  %v1341_v4 = vmax.f32 %v1213_v45, 0.0  ;;  %v1611_v15 = vunpack.c.l.b16 %v5326_v16  ;;  %v1756_v19 = vunpack.c.l.b16 %v5328_v14 }
  0xc2   : > { %v1421_v9 = vpack.c.bf16 %v1293_v36, %v1293_v36  ;;  %v1437_v30 = vpack.c.bf16 %v1309_v52, %v1309_v52  ;;  %v1901_v13 = vunpack.c.l.b16 %v5330_v27  ;;  %4490 = vset.pattern.permute.xlu1 %v7532_v55  ;;  %v7540_v59 = vmax.f32 %v5155_v11, 0.0  ;;  %v7546_v27 = vld [vmem:[#allocation4_spill] sm:$0xff] }
  0xc3   : > { %v1453_v54 = vpack.c.bf16 %v1325_v53, %v1325_v53  ;;  %v1469_v50 = vpack.c.bf16 %v1341_v4, %v1341_v4  ;;  %v1063_v7 = vmul.f32 %v5184_v23, %v4997_v43  ;;  %v5346_v40 = vpop.permute.xlu1 %1118  ;;  %284 = vperm.xlu1 %4490, %v4831_v5   ;;  %v5351_v32 = vmul.f32 %v4954_v26, %v5339_v58 }
  0xc4   : > { %v1496_v63 = vpack.c.bf16 %v7540_v59, %v7540_v59  ;;  %v1613_v34 = vunpack.c.l.b16 %v1421_v9  ;;  %v1758_v8 = vunpack.c.l.b16 %v1437_v30  ;;  %v5355_v51 = vmul.f32 %v4959_v28, %v5339_v58 }
  0xc5   : > { %v1166_v11 = vadd.f32 %v5346_v40, %v5259_v6  ;;  %v1182_v49 = vadd.f32 %v5346_v40, %v5273_v18  ;;  %v1198_v33 = vadd.f32 %v5346_v40, %v5277_v25  ;;  %v1903_v5 = vunpack.c.l.b16 %v1453_v54 }
  0xc6   : > { %v1214_v62 = vadd.f32 %v5346_v40, %v5283_v24  ;;  %v2048_v56 = vunpack.c.l.b16 %v1469_v50  ;;  %v5367_v0 = vmul.f32 %v4961_v29, %v5339_v58  ;;  %v5371_v12 = vmul.f32 %v4967_v31, %v5339_v58 }
  0xc7   : > { %v1294_v6 = vmax.f32 %v1166_v11, 0.0  ;;  %v1310_v60 = vmax.f32 %v1182_v49, 0.0  ;;  %v1326_v45 = vmax.f32 %v1198_v33, 0.0  ;;  %4491 = vset.pattern.permute.xlu2 %v7535_v41  ;;  %v2204_v18 = vunpack.c.l.b16 %v1496_v63 }
  0xc8   : > { %v1342_v25 = vmax.f32 %v1214_v62, 0.0  ;;  %490 = vperm.xlu2 %4491, %v4819_v3   ;;  %v1064_v24 = vmul.f32 %v5184_v23, %v5049_v47  ;;  %v1255_v36 = vadd.f32 %v4995_v42, %v1063_v7  ;;  %v1079_v52 = vmul.f32 %v5287_v57, %v4997_v43  ;;  %v7542_v62 = vld [vmem:[#allocation2_spill] sm:$0xff] }
  0xc9   : > { %v1422_v53 = vpack.c.bf16 %v1294_v6, %v1294_v6  ;;  %v1438_v4 = vpack.c.bf16 %v1310_v60, %v1310_v60  ;;  %v1454_v9 = vpack.c.bf16 %v1326_v45, %v1326_v45  ;;  %v7541_v30 = vunpack.c.l.b16 %v5157_v1 }
  0xca   : > { %v1470_v50 = vpack.c.bf16 %v1342_v25, %v1342_v25  ;;  %v1256_v59 = vadd.f32 %v5047_v46, %v1064_v24  ;;  %v1383_v63 = vmax.f32 %v1255_v36, 0.0  ;;  %v1080_v3 = vmul.f32 %v5287_v57, %v5049_v47 }
  0xcb   : > { %v5382_v54 = vpack.c.b16 %v2204_v18, %v7541_v30  ;;  %v1614_v11 = vunpack.c.l.b16 %v1422_v53  ;;  %v1759_v49 = vunpack.c.l.b16 %v1438_v4  ;;  %v1904_v7 = vunpack.c.l.b16 %v1454_v9  ;;  %289 = vperm.xlu1 %4490, %v7542_v62   ;;  %v5390_v18 = vpop.permute.xlu0 %1110 }
  0xcc   : > { %v1271_v33 = vadd.f32 %v4995_v42, %v1079_v52  ;;  %v2049_v6 = vunpack.c.l.b16 %v1470_v50  ;;  %v1384_v60 = vmax.f32 %v1256_v59, 0.0  ;;  %v1511_v45 = vpack.c.bf16 %v1383_v63, %v1383_v63  ;;  %v5392_v25 = vpop.permute.xlu1 %902 }
  0xcd   : > { %v1272_v1 = vadd.f32 %v5047_v46, %v1080_v3  ;;  %v1627_v24 = vpack.c.b16 %v1614_v11, %v1613_v34  ;;  %v1772_v36 = vpack.c.b16 %v1759_v49, %v1758_v8  ;;  %v1917_v30 = vpack.c.b16 %v1904_v7, %v1903_v5 }
  0xce   : > { %v1399_v48 = vmax.f32 %v1271_v33, 0.0  ;;  %v2062_v53 = vpack.c.b16 %v2049_v6, %v2048_v56  ;;  %v972_v4 = vmul.f32 %v4954_v26, %v5392_v25  ;;  %v988_v52 = vmul.f32 %v4959_v28, %v5392_v25 }
  0xcf   : > { %v1004_v9 = vmul.f32 %v4961_v29, %v5392_v25  ;;  %1646 = vmatpush.bf16.msra.mxu0 %v1627_v24  ;;  %1791 = vmatpush.bf16.msra.mxu1 %v1772_v36  ;;  %v1020_v50 = vmul.f32 %v4967_v31, %v5392_v25  ;;  %v1512_v59 = vpack.c.bf16 %v1384_v60, %v1384_v60  ;;  %v2348_v34 = vunpack.c.l.b16 %v1511_v45 }
  0xd0   : > { %v1400_v8 = vmax.f32 %v1272_v1, 0.0  ;;  %1936 = vmatpush.bf16.msra.mxu2 %v1917_v30  ;;  %2081 = vmatpush.bf16.msra.mxu3 %v2062_v53  ;;  %v1164_v5 = vadd.f32 %v5390_v18, %v972_v4  ;;  %v1180_v56 = vadd.f32 %v5390_v18, %v988_v52  ;;  %v216_v3 = vrot.slane %v4940_v22, 7  ;;  %v4767_v1 = vld [vmem:[%s7408_s2 + $0x78] sm:$0xff] }
  0xd1   : > { %v1196_v63 = vadd.f32 %v5390_v18, %v1004_v9  ;;  %v1212_v11 = vadd.f32 %v5390_v18, %v1020_v50  ;;  %4492 = vset.pattern.permute.xlu2 %v7532_v55  ;;  %v2349_v49 = vunpack.c.l.b16 %v1512_v59  ;;  %v1527_v7 = vpack.c.bf16 %v1399_v48, %v1399_v48 }
  0xd2   : > { %v1528_v33 = vpack.c.bf16 %v1400_v8, %v1400_v8  ;;  %v1292_v62 = vmax.f32 %v1164_v5, 0.0  ;;  %v1308_v6 = vmax.f32 %v1180_v56, 0.0  ;;  %v5408_v45 = vperm.slane %v216_v3, 0  ;;  %294 = vperm.xlu2 %4492, %v4767_v1   ;;  %v7544_v8 = vld [vmem:[#allocation8_spill] sm:$0xff] }
  0xd3   : > { %v1324_v60 = vmax.f32 %v1196_v63, 0.0  ;;  %v1340_v24 = vmax.f32 %v1212_v11, 0.0  ;;  %v5413_v36 = vpack.c.b16 %v2349_v49, %v2348_v34  ;;  %v2493_v22 = vunpack.c.l.b16 %v1527_v7  ;;  %4493 = vset.pattern.permute.xlu1 %v7535_v41  ;;  %v7543_v34 = vld [vmem:[#allocation3_spill] sm:$0xff]  ;;  %v5428_v11 = vpop.permute.xlu0 %1098 }
  0xd4   : > { %v2494_v30 = vunpack.c.l.b16 %v1528_v33  ;;  %v1420_v55 = vpack.c.bf16 %v1292_v62, %v1292_v62  ;;  %v1436_v48 = vpack.c.bf16 %v1308_v6, %v1308_v6  ;;  %v1095_v4 = vmul.f32 %v5408_v45, %v4997_v43  ;;  %502 = vperm.xlu1 %4493, %v4767_v1   ;;  %v5418_v52 = vpop.permute.xlu1 %890 }
  0xd5   : > { %v1452_v53 = vpack.c.bf16 %v1324_v60, %v1324_v60  ;;  %v1468_v9 = vpack.c.bf16 %v1340_v24, %v1340_v24  ;;  %v1096_v59 = vmul.f32 %v5408_v45, %v5049_v47  ;;  %v1045_v5 = vmul.f32 %v7544_v8, %v7543_v34 }
  0xd6   : > { %v5420_v50 = vpack.c.b16 %v2494_v30, %v2493_v22  ;;  %v1612_v56 = vunpack.c.l.b16 %v1420_v55  ;;  %v1757_v41 = vunpack.c.l.b16 %v1436_v48  ;;  %v969_v3 = vmul.f32 %v4954_v26, %v5418_v52  ;;  %v7547_v22 = vld [vmem:[#allocation17_spill] sm:$0xff] }
  0xd7   : > { %v1902_v63 = vunpack.c.l.b16 %v1452_v53  ;;  %v2047_v43 = vunpack.c.l.b16 %v1468_v9  ;;  %v985_v49 = vmul.f32 %v4959_v28, %v5418_v52  ;;  %v1001_v7 = vmul.f32 %v4961_v29, %v5418_v52  ;;  %v7548_v9 = vld [vmem:[#allocation13_spill] sm:$0xff] }
  0xd8   : > { %v1017_v47 = vmul.f32 %v4967_v31, %v5418_v52  ;;  %v1626_v33 = vpack.c.b16 %v1612_v56, %v1611_v15  ;;  %v1771_v62 = vpack.c.b16 %v1757_v41, %v1756_v19  ;;  %v1161_v6 = vadd.f32 %v5428_v11, %v969_v3 }
  0xd9   : > { %v1916_v26 = vpack.c.b16 %v1902_v63, %v1901_v13  ;;  %v7545_v60 = vunpack.c.l.b16 %v5332_v2  ;;  %v1177_v1 = vadd.f32 %v5428_v11, %v985_v49  ;;  %v1193_v29 = vadd.f32 %v5428_v11, %v1001_v7 }
  0xda   : > { %v1209_v31 = vadd.f32 %v5428_v11, %v1017_v47  ;;  %1647 = vmatpush.bf16.msra.mxu0 %v1626_v33  ;;  %1792 = vmatpush.bf16.msra.mxu1 %v1771_v62  ;;  %v1289_v16 = vmax.f32 %v1161_v6, 0.0  ;;  %v1287_v14 = vadd.f32 %v4995_v42, %v1095_v4  ;;  %v1288_v15 = vadd.f32 %v5047_v46, %v1096_v59 }
  0xdb   : > { %v2061_v28 = vpack.c.b16 %v2047_v43, %v7545_v60  ;;  %v1046_v19 = vmul.f32 %v7544_v8, %v7546_v27  ;;  %1937 = vmatpush.bf16.msra.mxu2 %v1916_v26  ;;  %v1305_v2 = vmax.f32 %v1177_v1, 0.0  ;;  %v1321_v13 = vmax.f32 %v1193_v29, 0.0 }
  0xdc   : > { %v1337_v24 = vmax.f32 %v1209_v31, 0.0  ;;  %v1237_v30 = vadd.f32 %v7547_v22, %v1045_v5  ;;  %v1417_v55 = vpack.c.bf16 %v1289_v16, %v1289_v16  ;;  %v1415_v48 = vmax.f32 %v1287_v14, 0.0  ;;  %v5464_v16 = vpop.permute.xlu2 %219 }
  0xdd   : > { %2082 = vmatpush.bf16.msra.mxu3 %v2061_v28  ;;  %v1416_v53 = vmax.f32 %v1288_v15, 0.0  ;;  %v1238_v56 = vadd.f32 %v7548_v9, %v1046_v19  ;;  %v1433_v41 = vpack.c.bf16 %v1305_v2, %v1305_v2  ;;  %v1449_v63 = vpack.c.bf16 %v1321_v13, %v1321_v13  ;;  %v5454_v46 = vpop.permute.xlu1 %1102 }
  0xde   : > { %v1465_v42 = vpack.c.bf16 %v1337_v24, %v1337_v24  ;;  %v1365_v4 = vmax.f32 %v1237_v30, 0.0  ;;  %v1609_v59 = vunpack.c.l.b16 %v1417_v55  ;;  %v1543_v3 = vpack.c.bf16 %v1415_v48, %v1415_v48 }
  0xdf   : > { %v1544_v43 = vpack.c.bf16 %v1416_v53, %v1416_v53  ;;  %v1366_v49 = vmax.f32 %v1238_v56, 0.0  ;;  %v1162_v7 = vadd.f32 %v5454_v46, %v5351_v32  ;;  %v1178_v5 = vadd.f32 %v5454_v46, %v5355_v51 }
  0xe0   : > { %v1754_v47 = vunpack.c.l.b16 %v1433_v41  ;;  %v1194_v33 = vadd.f32 %v5454_v46, %v5367_v0  ;;  %v1899_v62 = vunpack.c.l.b16 %v1449_v63  ;;  %v1210_v26 = vadd.f32 %v5454_v46, %v5371_v12 }
  0xe1   : > { %v2044_v6 = vunpack.c.l.b16 %v1465_v42  ;;  %v2638_v60 = vunpack.c.l.b16 %v1543_v3  ;;  %v1290_v28 = vmax.f32 %v1162_v7, 0.0  ;;  %v1306_v1 = vmax.f32 %v1178_v5, 0.0 }
  0xe2   : > { %v1322_v29 = vmax.f32 %v1194_v33, 0.0  ;;  %v2639_v31 = vunpack.c.l.b16 %v1544_v43  ;;  %v1338_v32 = vmax.f32 %v1210_v26, 0.0  ;;  %v1493_v14 = vpack.c.bf16 %v1365_v4, %v1365_v4 }
  0xe3   : > { %v1494_v15 = vpack.c.bf16 %v1366_v49, %v1366_v49  ;;  %v1061_v51 = vmul.f32 %v5184_v23, %v7543_v34  ;;  %v1418_v19 = vpack.c.bf16 %v1290_v28, %v1290_v28  ;;  %v1434_v0 = vpack.c.bf16 %v1306_v1, %v1306_v1  ;;  %v7549_v1 = vld [vmem:[#allocation6_spill] sm:$0xff] }
  0xe4   : > { %v1450_v2 = vpack.c.bf16 %v1322_v29, %v1322_v29  ;;  %v2647_v13 = vpack.c.b16 %v2639_v31, %v2638_v60  ;;  %v1466_v24 = vpack.c.bf16 %v1338_v32, %v1338_v32  ;;  %v2201_v12 = vunpack.c.l.b16 %v1493_v14 }
  0xe5   : > { %v2202_v30 = vunpack.c.l.b16 %v1494_v15  ;;  %v1062_v55 = vmul.f32 %v5184_v23, %v7546_v27  ;;  %v1610_v48 = vunpack.c.l.b16 %v1418_v19  ;;  %v1755_v53 = vunpack.c.l.b16 %v1434_v0  ;;  %v7551_v19 = vld [vmem:[#allocation7_spill] sm:$0xff] }
  0xe6   : > { %v1900_v56 = vunpack.c.l.b16 %v1450_v2  ;;  %v1253_v41 = vadd.f32 %v7547_v22, %v1061_v51  ;;  %v2045_v63 = vunpack.c.l.b16 %v1466_v24  ;;  %v1077_v3 = vmul.f32 %v5287_v57, %v7543_v34  ;;  %v5481_v32 = vpop.permute.xlu1 %442 }
  0xe7   : > { %v2211_v42 = vpack.c.b16 %v2202_v30, %v2201_v12  ;;  %v1254_v4 = vadd.f32 %v7548_v9, %v1062_v55  ;;  %v1625_v43 = vpack.c.b16 %v1610_v48, %v1609_v59  ;;  %v1770_v49 = vpack.c.b16 %v1755_v53, %v1754_v47  ;;  %v5498_v12 = vpop.permute.xlu2 %446 }
  0xe8   : > { %v1915_v7 = vpack.c.b16 %v1900_v56, %v1899_v62  ;;  %v1381_v5 = vmax.f32 %v1253_v41, 0.0  ;;  %v2060_v33 = vpack.c.b16 %v2045_v63, %v2044_v6  ;;  %v1078_v60 = vmul.f32 %v5287_v57, %v7546_v27  ;;  %v5487_v62 = vpop.permute.xlu0 %224 }
  0xe9   : > { %v1382_v26 = vmax.f32 %v1254_v4, 0.0  ;;  %v1269_v28 = vadd.f32 %v7547_v22, %v1077_v3  ;;  %v7550_v29 = vrot.slane %v7549_v1, 3  ;;  %1648 = vmatpush.bf16.msra.mxu0 %v1625_v43  ;;  %1793 = vmatpush.bf16.msra.mxu1 %v1770_v49  ;;  %v1093_v59 = vmul.f32 %v5408_v45, %v7543_v34 }
  0xea   : > { %v1509_v14 = vpack.c.bf16 %v1381_v5, %v1381_v5  ;;  %v1094_v47 = vmul.f32 %v5408_v45, %v7546_v27  ;;  %1938 = vmatpush.bf16.msra.mxu2 %v1915_v7  ;;  %2083 = vmatpush.bf16.msra.mxu3 %v2060_v33  ;;  %v1270_v15 = vadd.f32 %v7548_v9, %v1078_v60 }
  0xeb   : > { %v5479_v31 = vperm.slane %v7550_v29, 0  ;;  %v1510_v6 = vpack.c.bf16 %v1382_v26, %v1382_v26  ;;  %v1397_v51 = vmax.f32 %v1269_v28, 0.0  ;;  %v313_v0 = vmul.f32 %v7551_v19, %v5464_v16  ;;  %v7553_v26 = vld [vmem:[#allocation10_spill] sm:$0xff] }
  0xec   : > { %v2346_v2 = vunpack.c.l.b16 %v1509_v14  ;;  %v1285_v34 = vadd.f32 %v7547_v22, %v1093_v59  ;;  %v1286_v27 = vadd.f32 %v7548_v9, %v1094_v47  ;;  %v314_v24 = vmul.f32 %v7551_v19, %v5487_v62  ;;  %v7552_v22 = vld [vmem:[#allocation9_spill] sm:$0xff] }
  0xed   : > { %2221 = vmatpush.bf16.msrb.mxu0 %v5382_v54  ;;  %2366 = vmatpush.bf16.msrb.mxu1 %v5413_v36  ;;  %v2347_v30 = vunpack.c.l.b16 %v1510_v6  ;;  %v1398_v55 = vmax.f32 %v1270_v15, 0.0  ;;  %v1525_v48 = vpack.c.bf16 %v1397_v51, %v1397_v51  ;;  %v505_v54 = vadd.f32 %v5481_v32, %v313_v0 }
  0xee   : > { %2511 = vmatpush.bf16.msrb.mxu2 %v5420_v50  ;;  %2656 = vmatpush.bf16.msrb.mxu3 %v2647_v13  ;;  %v1413_v53 = vmax.f32 %v1285_v34, 0.0  ;;  %v1414_v36 = vmax.f32 %v1286_v27, 0.0  ;;  %v506_v56 = vadd.f32 %v5498_v12, %v314_v24  ;;  %v329_v9 = vmul.f32 %v7552_v22, %v5464_v16 }
  0xef   : > { %v2356_v41 = vpack.c.b16 %v2347_v30, %v2346_v2  ;;  %v1526_v63 = vpack.c.bf16 %v1398_v55, %v1398_v55  ;;  %v2491_v4 = vunpack.c.l.b16 %v1525_v48  ;;  %v633_v3 = vmax.f32 %v505_v54, 0.0 }
  0xf0   : > { %v1541_v43 = vpack.c.bf16 %v1413_v53, %v1413_v53  ;;  %v1542_v50 = vpack.c.bf16 %v1414_v36, %v1414_v36  ;;  %v634_v13 = vmax.f32 %v506_v56, 0.0  ;;  %v330_v49 = vmul.f32 %v7552_v22, %v5487_v62  ;;  %v7554_v53 = vld [vmem:[#allocation5_spill] sm:$0xff] }
  0xf1   : > { %2222 = vmatpush.bf16.msrb.mxu0 %v2211_v42  ;;  %2367 = vmatpush.bf16.msrb.mxu1 %v2356_v41  ;;  %v2492_v7 = vunpack.c.l.b16 %v1526_v63  ;;  %v761_v5 = vpack.c.bf16 %v633_v3, %v633_v3  ;;  %v521_v33 = vadd.f32 %v5481_v32, %v329_v9  ;;  %v345_v60 = vmul.f32 %v7553_v26, %v5464_v16 }
  0xf2   : > { %v2636_v28 = vunpack.c.l.b16 %v1541_v43  ;;  %v2637_v1 = vunpack.c.l.b16 %v1542_v50  ;;  %v762_v29 = vpack.c.bf16 %v634_v13, %v634_v13  ;;  %v522_v14 = vadd.f32 %v5498_v12, %v330_v49  ;;  %v7555_v43 = vld [vmem:[#allocation16_spill] sm:$0xff]  ;;  %v7556_v13 = vld [vmem:[#allocation11_spill] sm:$0xff] }
  0xf3   : > { %v2501_v42 = vpack.c.b16 %v2492_v7, %v2491_v4  ;;  %v1561_v59 = vunpack.c.l.b16 %v761_v5  ;;  %v649_v47 = vmax.f32 %v521_v33, 0.0  ;;  %v346_v6 = vmul.f32 %v7553_v26, %v5487_v62 }
  0xf4   : > { %v2646_v15 = vpack.c.b16 %v2637_v1, %v2636_v28  ;;  %v1562_v51 = vunpack.c.l.b16 %v762_v29  ;;  %v650_v0 = vmax.f32 %v522_v14, 0.0  ;;  %v537_v2 = vadd.f32 %v5481_v32, %v345_v60 }
  0xf5   : > { %2512 = vmatpush.bf16.msrb.mxu2 %v2501_v42  ;;  %v777_v34 = vpack.c.bf16 %v649_v47, %v649_v47  ;;  %v538_v27 = vadd.f32 %v5498_v12, %v346_v6  ;;  %v361_v24 = vmul.f32 %v5479_v31, %v5464_v16  ;;  %v362_v30 = vmul.f32 %v5479_v31, %v5487_v62 }
  0xf6   : > { %2657 = vmatpush.bf16.msrb.mxu3 %v2646_v15  ;;  %v1577_v55 = vpack.c.b16 %v1562_v51, %v1561_v59  ;;  %v778_v48 = vpack.c.bf16 %v650_v0, %v650_v0  ;;  %v665_v54 = vmax.f32 %v537_v2, 0.0  ;;  %v1043_v36 = vmul.f32 %v7544_v8, %v7554_v53 }
  0xf7   : > { %v1706_v56 = vunpack.c.l.b16 %v777_v34  ;;  %v666_v9 = vmax.f32 %v538_v27, 0.0  ;;  %v553_v41 = vadd.f32 %v5481_v32, %v361_v24  ;;  %v554_v63 = vadd.f32 %v5498_v12, %v362_v30 }
  0xf8   : > { %1649 = vmatmul.bf16.vlgmr.msra.gmra.mxu0 %v1577_v55  ;;  %v1707_v4 = vunpack.c.l.b16 %v778_v48  ;;  %v793_v3 = vpack.c.bf16 %v665_v54, %v665_v54  ;;  %v1044_v50 = vmul.f32 %v7544_v8, %v7555_v43  ;;  %v1235_v49 = vadd.f32 %v7556_v13, %v1043_v36 }
  0xf9   : > { %v794_v7 = vpack.c.bf16 %v666_v9, %v666_v9  ;;  %v681_v5 = vmax.f32 %v553_v41, 0.0  ;;  %v682_v33 = vmax.f32 %v554_v63, 0.0  ;;  %v1059_v60 = vmul.f32 %v5184_v23, %v7554_v53 }
  0xfa   : > { %v1722_v28 = vpack.c.b16 %v1707_v4, %v1706_v56  ;;  %v1851_v1 = vunpack.c.l.b16 %v793_v3  ;;  %v1236_v29 = vadd.f32 %v5193_v37, %v1044_v50  ;;  %v1363_v14 = vmax.f32 %v1235_v49, 0.0 }
  0xfb   : > { %v1852_v42 = vunpack.c.l.b16 %v794_v7  ;;  %v809_v59 = vpack.c.bf16 %v681_v5, %v681_v5  ;;  %v810_v47 = vpack.c.bf16 %v682_v33, %v682_v33  ;;  %v1060_v6 = vmul.f32 %v5184_v23, %v7555_v43 }
  0xfc   : > { %1794 = vmatmul.bf16.vlgmr.msra.gmra.mxu1 %v1722_v28  ;;  %v1364_v15 = vmax.f32 %v1236_v29, 0.0  ;;  %v1491_v51 = vpack.c.bf16 %v1363_v14, %v1363_v14  ;;  %v1251_v0 = vadd.f32 %v7556_v13, %v1059_v60  ;;  %v1075_v2 = vmul.f32 %v5287_v57, %v7554_v53 }
  0xfd   : > { %v1867_v34 = vpack.c.b16 %v1852_v42, %v1851_v1  ;;  %v1996_v27 = vunpack.c.l.b16 %v809_v59  ;;  %v1997_v24 = vunpack.c.l.b16 %v810_v47  ;;  %v1252_v30 = vadd.f32 %v5193_v37, %v1060_v6  ;;  %v7557_v47 = vld [vmem:[#allocation12_spill] sm:$0xff] }
  0xfe   : > { %v1492_v55 = vpack.c.bf16 %v1364_v15, %v1364_v15  ;;  %v2199_v48 = vunpack.c.l.b16 %v1491_v51  ;;  %v1379_v54 = vmax.f32 %v1251_v0, 0.0  ;;  %v1076_v36 = vmul.f32 %v5287_v57, %v7555_v43 }
  0xff   : > { %1939 = vmatmul.bf16.vlgmr.msra.gmra.mxu2 %v1867_v34  ;;  %v2012_v56 = vpack.c.b16 %v1997_v24, %v1996_v27  ;;  %v1380_v9 = vmax.f32 %v1252_v30, 0.0  ;;  %v1267_v41 = vadd.f32 %v7556_v13, %v1075_v2  ;;  %v1091_v63 = vmul.f32 %v5408_v45, %v7554_v53 }
 0x100   : > { %v2200_v4 = vunpack.c.l.b16 %v1492_v55  ;;  %v1507_v3 = vpack.c.bf16 %v1379_v54, %v1379_v54  ;;  %v1268_v50 = vadd.f32 %v5193_v37, %v1076_v36  ;;  %v1092_v49 = vmul.f32 %v5408_v45, %v7555_v43 }
 0x101   : > { %2084 = vmatmul.bf16.vlgmr.msra.gmra.mxu3 %v2012_v56  ;;  %v1508_v7 = vpack.c.bf16 %v1380_v9, %v1380_v9  ;;  %v1395_v5 = vmax.f32 %v1267_v41, 0.0  ;;  %v1283_v33 = vadd.f32 %v7556_v13, %v1091_v63  ;;  %v1041_v60 = vmul.f32 %v7544_v8, %v5191_v17 }
 0x102   : > { %v2210_v28 = vpack.c.b16 %v2200_v4, %v2199_v48  ;;  %v2344_v1 = vunpack.c.l.b16 %v1507_v3  ;;  %v1396_v29 = vmax.f32 %v1268_v50, 0.0  ;;  %v1284_v53 = vadd.f32 %v5193_v37, %v1092_v49 }
 0x103   : > { %v2345_v14 = vunpack.c.l.b16 %v1508_v7  ;;  %v1523_v42 = vpack.c.bf16 %v1395_v5, %v1395_v5  ;;  %v1411_v59 = vmax.f32 %v1283_v33, 0.0  ;;  %v1042_v6 = vmul.f32 %v7544_v8, %v7557_v47 }
 0x104   : > { %2223 = vmatpush.bf16.msrb.mxu0 %v2210_v28  ;;  %v1524_v43 = vpack.c.bf16 %v1396_v29, %v1396_v29  ;;  %v1412_v15 = vmax.f32 %v1284_v53, 0.0  ;;  %v1233_v51 = vadd.f32 %v5223_v38, %v1041_v60  ;;  %v1057_v13 = vmul.f32 %v5184_v23, %v5191_v17 }
 0x105   : > { %v2355_v0 = vpack.c.b16 %v2345_v14, %v2344_v1  ;;  %v2489_v2 = vunpack.c.l.b16 %v1523_v42  ;;  %v1539_v34 = vpack.c.bf16 %v1411_v59, %v1411_v59  ;;  %v1234_v27 = vadd.f32 %v5226_v21, %v1042_v6 }
 0x106   : > { %v2490_v37 = vunpack.c.l.b16 %v1524_v43  ;;  %v1540_v24 = vpack.c.bf16 %v1412_v15, %v1412_v15  ;;  %v1361_v30 = vmax.f32 %v1233_v51, 0.0  ;;  %v1058_v55 = vmul.f32 %v5184_v23, %v7557_v47  ;;  %v7558_v43 = vld [vmem:[#allocation15_spill] sm:$0xff] }
 0x107   : > { %2368 = vmatpush.bf16.msrb.mxu1 %v2355_v0  ;;  %v2634_v48 = vunpack.c.l.b16 %v1539_v34  ;;  %v1362_v54 = vmax.f32 %v1234_v27, 0.0  ;;  %v1249_v36 = vadd.f32 %v5223_v38, %v1057_v13  ;;  %v1073_v56 = vmul.f32 %v5287_v57, %v5191_v17 }
 0x108   : > { %v2500_v9 = vpack.c.b16 %v2490_v37, %v2489_v2  ;;  %v2635_v41 = vunpack.c.l.b16 %v1540_v24  ;;  %v1489_v63 = vpack.c.bf16 %v1361_v30, %v1361_v30  ;;  %v1250_v4 = vadd.f32 %v5226_v21, %v1058_v55  ;;  %v7559_v37 = vld [vmem:[#allocation14_spill] sm:$0xff] }
 0x109   : > { %v1490_v3 = vpack.c.bf16 %v1362_v54, %v1362_v54  ;;  %v1377_v50 = vmax.f32 %v1249_v36, 0.0  ;;  %v1074_v49 = vmul.f32 %v5287_v57, %v7557_v47  ;;  %v1265_v7 = vadd.f32 %v5223_v38, %v1073_v56  ;;  %v7560_v56 = vld [vmem:[#allocation18_spill] sm:$0xff] }
 0x10a   : > { %2513 = vmatpush.bf16.msrb.mxu2 %v2500_v9  ;;  %v2645_v5 = vpack.c.b16 %v2635_v41, %v2634_v48  ;;  %v2197_v33 = vunpack.c.l.b16 %v1489_v63  ;;  %v1378_v60 = vmax.f32 %v1250_v4, 0.0  ;;  %v1089_v28 = vmul.f32 %v5408_v45, %v5191_v17 }
 0x10b   : > { %v2198_v1 = vunpack.c.l.b16 %v1490_v3  ;;  %v1505_v29 = vpack.c.bf16 %v1377_v50, %v1377_v50  ;;  %v1266_v53 = vadd.f32 %v5226_v21, %v1074_v49  ;;  %v1393_v14 = vmax.f32 %v1265_v7, 0.0 }
 0x10c   : > { %2658 = vmatpush.bf16.msrb.mxu3 %v2645_v5  ;;  %v1506_v42 = vpack.c.bf16 %v1378_v60, %v1378_v60  ;;  %v1090_v59 = vmul.f32 %v5408_v45, %v7557_v47  ;;  %v1281_v6 = vadd.f32 %v5223_v38, %v1089_v28  ;;  %v1039_v15 = vmul.f32 %v7544_v8, %v7558_v43 }
 0x10d   : > { %v2209_v51 = vpack.c.b16 %v2198_v1, %v2197_v33  ;;  %v2342_v13 = vunpack.c.l.b16 %v1505_v29  ;;  %v1394_v0 = vmax.f32 %v1266_v53, 0.0  ;;  %v1521_v2 = vpack.c.bf16 %v1393_v14, %v1393_v14 }
 0x10e   : > { %v2343_v17 = vunpack.c.l.b16 %v1506_v42  ;;  %v1282_v34 = vadd.f32 %v5226_v21, %v1090_v59  ;;  %v1409_v27 = vmax.f32 %v1281_v6, 0.0  ;;  %v1040_v24 = vmul.f32 %v7544_v8, %v7559_v37 }
 0x10f   : > { %2224 = vmatpush.bf16.msrb.mxu0 %v2209_v51  ;;  %v1522_v30 = vpack.c.bf16 %v1394_v0, %v1394_v0  ;;  %v2487_v55 = vunpack.c.l.b16 %v1521_v2  ;;  %v1231_v47 = vadd.f32 %v5253_v35, %v1039_v15  ;;  %v1055_v38 = vmul.f32 %v5184_v23, %v7558_v43 }
 0x110   : > { %v2354_v48 = vpack.c.b16 %v2343_v17, %v2342_v13  ;;  %v1410_v54 = vmax.f32 %v1282_v34, 0.0  ;;  %v1537_v36 = vpack.c.bf16 %v1409_v27, %v1409_v27  ;;  %v1232_v9 = vadd.f32 %v7560_v56, %v1040_v24 }
 0x111   : > { %v2488_v41 = vunpack.c.l.b16 %v1522_v30  ;;  %v1359_v63 = vmax.f32 %v1231_v47, 0.0  ;;  %v1056_v21 = vmul.f32 %v5184_v23, %v7559_v37  ;;  %v1247_v4 = vadd.f32 %v5253_v35, %v1055_v38 }
 0x112   : > { %2369 = vmatpush.bf16.msrb.mxu1 %v2354_v48  ;;  %v1538_v3 = vpack.c.bf16 %v1410_v54, %v1410_v54  ;;  %v2632_v50 = vunpack.c.l.b16 %v1537_v36  ;;  %v1360_v49 = vmax.f32 %v1232_v9, 0.0  ;;  %v1071_v7 = vmul.f32 %v5287_v57, %v7558_v43 }
 0x113   : > { %v2499_v5 = vpack.c.b16 %v2488_v41, %v2487_v55  ;;  %v1487_v33 = vpack.c.bf16 %v1359_v63, %v1359_v63  ;;  %v1248_v60 = vadd.f32 %v7560_v56, %v1056_v21  ;;  %v1375_v28 = vmax.f32 %v1247_v4, 0.0 }
 0x114   : > { %v2633_v1 = vunpack.c.l.b16 %v1538_v3  ;;  %v1488_v29 = vpack.c.bf16 %v1360_v49, %v1360_v49  ;;  %v1072_v53 = vmul.f32 %v5287_v57, %v7559_v37  ;;  %v1263_v14 = vadd.f32 %v5253_v35, %v1071_v7 }
 0x115   : > { %2514 = vmatpush.bf16.msrb.mxu2 %v2499_v5  ;;  %v2195_v42 = vunpack.c.l.b16 %v1487_v33  ;;  %v1376_v59 = vmax.f32 %v1248_v60, 0.0  ;;  %v1503_v6 = vpack.c.bf16 %v1375_v28, %v1375_v28  ;;  %v1087_v15 = vmul.f32 %v5408_v45, %v7558_v43 }
 0x116   : > { %v2644_v51 = vpack.c.b16 %v2633_v1, %v2632_v50  ;;  %v2196_v13 = vunpack.c.l.b16 %v1488_v29  ;;  %v1264_v0 = vadd.f32 %v7560_v56, %v1072_v53  ;;  %v1391_v2 = vmax.f32 %v1263_v14, 0.0 }
 0x117   : > { %v1504_v17 = vpack.c.bf16 %v1376_v59, %v1376_v59  ;;  %v2340_v34 = vunpack.c.l.b16 %v1503_v6  ;;  %v1088_v27 = vmul.f32 %v5408_v45, %v7559_v37  ;;  %v1279_v24 = vadd.f32 %v5253_v35, %v1087_v15 }
 0x118   : > { %2659 = vmatpush.bf16.msrb.mxu3 %v2644_v51  ;;  %v2208_v30 = vpack.c.b16 %v2196_v13, %v2195_v42  ;;  %v1392_v55 = vmax.f32 %v1264_v0, 0.0  ;;  %v1519_v47 = vpack.c.bf16 %v1391_v2, %v1391_v2  ;;  %v1037_v38 = vmul.f32 %v7544_v8, %v5300_v20  ;;  %v5607_v42 = vpop.permute.xlu1 %229 }
 0x119   : > { %v2341_v43 = vunpack.c.l.b16 %v1504_v17  ;;  %v1280_v48 = vadd.f32 %v7560_v56, %v1088_v27  ;;  %v1407_v54 = vmax.f32 %v1279_v24, 0.0  ;;  %v1038_v36 = vmul.f32 %v7544_v8, %v5208_v39 }
 0x11a   : > { %2225 = vmatpush.bf16.msrb.mxu0 %v2208_v30  ;;  %v1520_v9 = vpack.c.bf16 %v1392_v55, %v1392_v55  ;;  %v2485_v41 = vunpack.c.l.b16 %v1519_v47  ;;  %v1229_v37 = vadd.f32 %v5315_v44, %v1037_v38  ;;  %v1053_v35 = vmul.f32 %v5184_v23, %v5300_v20 }
 0x11b   : > { %v2353_v63 = vpack.c.b16 %v2341_v43, %v2340_v34  ;;  %v1408_v21 = vmax.f32 %v1280_v48, 0.0  ;;  %v1535_v4 = vpack.c.bf16 %v1407_v54, %v1407_v54  ;;  %v1230_v3 = vadd.f32 %v5346_v40, %v1038_v36 }
 0x11c   : > { %v2486_v50 = vunpack.c.l.b16 %v1520_v9  ;;  %v1357_v49 = vmax.f32 %v1229_v37, 0.0  ;;  %v1054_v56 = vmul.f32 %v5184_v23, %v5208_v39  ;;  %v1245_v7 = vadd.f32 %v5315_v44, %v1053_v35 }
 0x11d   : > { %2370 = vmatpush.bf16.msrb.mxu1 %v2353_v63  ;;  %v1536_v5 = vpack.c.bf16 %v1408_v21, %v1408_v21  ;;  %v2630_v33 = vunpack.c.l.b16 %v1535_v4  ;;  %v1358_v60 = vmax.f32 %v1230_v3, 0.0  ;;  %v1069_v28 = vmul.f32 %v5287_v57, %v5300_v20 }
 0x11e   : > { %v2498_v1 = vpack.c.b16 %v2486_v50, %v2485_v41  ;;  %v1485_v29 = vpack.c.bf16 %v1357_v49, %v1357_v49  ;;  %v1246_v53 = vadd.f32 %v5346_v40, %v1054_v56  ;;  %v1373_v14 = vmax.f32 %v1245_v7, 0.0 }
 0x11f   : > { %v2631_v59 = vunpack.c.l.b16 %v1536_v5  ;;  %v1486_v6 = vpack.c.bf16 %v1358_v60, %v1358_v60  ;;  %v1070_v15 = vmul.f32 %v5287_v57, %v5208_v39  ;;  %v1261_v51 = vadd.f32 %v5315_v44, %v1069_v28 }
 0x120   : > { %2515 = vmatpush.bf16.msrb.mxu2 %v2498_v1  ;;  %v2193_v13 = vunpack.c.l.b16 %v1485_v29  ;;  %v1374_v0 = vmax.f32 %v1246_v53, 0.0  ;;  %v1501_v2 = vpack.c.bf16 %v1373_v14, %v1373_v14  ;;  %v1085_v17 = vmul.f32 %v5408_v45, %v5300_v20  ;;  %v5632_v29 = vpop.permute.xlu2 %234  ;;  %v5634_v53 = vpop.permute.xlu1 %454 }
 0x121   : > { %v2643_v34 = vpack.c.b16 %v2631_v59, %v2630_v33  ;;  %v2194_v27 = vunpack.c.l.b16 %v1486_v6  ;;  %v1262_v24 = vadd.f32 %v5346_v40, %v1070_v15  ;;  %v1389_v30 = vmax.f32 %v1261_v51, 0.0 }
 0x122   : > { %v1502_v55 = vpack.c.bf16 %v1374_v0, %v1374_v0  ;;  %v2338_v47 = vunpack.c.l.b16 %v1501_v2  ;;  %v1086_v38 = vmul.f32 %v5408_v45, %v5208_v39  ;;  %v1277_v43 = vadd.f32 %v5315_v44, %v1085_v17 }
 0x123   : > { %2660 = vmatpush.bf16.msrb.mxu3 %v2643_v34  ;;  %v2207_v48 = vpack.c.b16 %v2194_v27, %v2193_v13  ;;  %v1390_v54 = vmax.f32 %v1262_v24, 0.0  ;;  %v1517_v36 = vpack.c.bf16 %v1389_v30, %v1389_v30  ;;  %v1035_v9 = vmul.f32 %v7544_v8, %v5250_v61 }
 0x124   : > { %v2339_v20 = vunpack.c.l.b16 %v1502_v55  ;;  %v1278_v41 = vadd.f32 %v5346_v40, %v1086_v38  ;;  %v1405_v37 = vmax.f32 %v1277_v43, 0.0  ;;  %v1036_v35 = vmul.f32 %v7544_v8, %v5392_v25 }
 0x125   : > { %2226 = vmatpush.bf16.msrb.mxu0 %v2207_v48  ;;  %v1518_v63 = vpack.c.bf16 %v1390_v54, %v1390_v54  ;;  %v2483_v21 = vunpack.c.l.b16 %v1517_v36  ;;  %v1227_v39 = vadd.f32 %v5279_v10, %v1035_v9  ;;  %v1051_v44 = vmul.f32 %v5184_v23, %v5250_v61 }
 0x126   : > { %v2352_v4 = vpack.c.b16 %v2339_v20, %v2338_v47  ;;  %v1406_v3 = vmax.f32 %v1278_v41, 0.0  ;;  %v1533_v50 = vpack.c.bf16 %v1405_v37, %v1405_v37  ;;  %v1228_v49 = vadd.f32 %v5390_v18, %v1036_v35 }
 0x127   : > { %v2484_v56 = vunpack.c.l.b16 %v1518_v63  ;;  %v1355_v7 = vmax.f32 %v1227_v39, 0.0  ;;  %v1052_v40 = vmul.f32 %v5184_v23, %v5392_v25  ;;  %v1243_v5 = vadd.f32 %v5279_v10, %v1051_v44 }
 0x128   : > { %2371 = vmatpush.bf16.msrb.mxu1 %v2352_v4  ;;  %v1534_v33 = vpack.c.bf16 %v1406_v3, %v1406_v3  ;;  %v2628_v60 = vunpack.c.l.b16 %v1533_v50  ;;  %v1356_v28 = vmax.f32 %v1228_v49, 0.0  ;;  %v1067_v1 = vmul.f32 %v5287_v57, %v5250_v61 }
 0x129   : > { %v2497_v14 = vpack.c.b16 %v2484_v56, %v2483_v21  ;;  %v1483_v59 = vpack.c.bf16 %v1355_v7, %v1355_v7  ;;  %v1244_v6 = vadd.f32 %v5390_v18, %v1052_v40  ;;  %v1371_v15 = vmax.f32 %v1243_v5, 0.0 }
 0x12a   : > { %v2629_v51 = vunpack.c.l.b16 %v1534_v33  ;;  %v1484_v13 = vpack.c.bf16 %v1356_v28, %v1356_v28  ;;  %v1068_v0 = vmul.f32 %v5287_v57, %v5392_v25  ;;  %v1259_v2 = vadd.f32 %v5279_v10, %v1067_v1  ;;  %v5660_v33 = vpop.permute.xlu2 %239 }
 0x12b   : > { %2516 = vmatpush.bf16.msrb.mxu2 %v2497_v14  ;;  %v2191_v17 = vunpack.c.l.b16 %v1483_v59  ;;  %v1372_v34 = vmax.f32 %v1244_v6, 0.0  ;;  %v1499_v27 = vpack.c.bf16 %v1371_v15, %v1371_v15  ;;  %v1083_v24 = vmul.f32 %v5408_v45, %v5250_v61  ;;  %v5648_v61 = vpop.permute.xlu0 %450 }
 0x12c   : > { %v2642_v30 = vpack.c.b16 %v2629_v51, %v2628_v60  ;;  %v2192_v55 = vunpack.c.l.b16 %v1484_v13  ;;  %v1260_v47 = vadd.f32 %v5390_v18, %v1068_v0  ;;  %v1387_v38 = vmax.f32 %v1259_v2, 0.0  ;;  %v5662_v60 = vpop.permute.xlu1 %244 }
 0x12d   : > { %v1500_v43 = vpack.c.bf16 %v1372_v34, %v1372_v34  ;;  %v2336_v48 = vunpack.c.l.b16 %v1499_v27  ;;  %v1084_v54 = vmul.f32 %v5408_v45, %v5392_v25  ;;  %v1275_v36 = vadd.f32 %v5279_v10, %v1083_v24 }
 0x12e   : > { %2661 = vmatpush.bf16.msrb.mxu3 %v2642_v30  ;;  %v2206_v9 = vpack.c.b16 %v2192_v55, %v2191_v17  ;;  %v1388_v20 = vmax.f32 %v1260_v47, 0.0  ;;  %v1515_v41 = vpack.c.bf16 %v1387_v38, %v1387_v38  ;;  %v315_v37 = vmul.f32 %v7551_v19, %v5607_v42 }
 0x12f   : > { %v2337_v35 = vunpack.c.l.b16 %v1500_v43  ;;  %v1276_v63 = vadd.f32 %v5390_v18, %v1084_v54  ;;  %v1403_v21 = vmax.f32 %v1275_v36, 0.0  ;;  %v316_v39 = vmul.f32 %v7551_v19, %v5632_v29 }
 0x130   : > { %2227 = vmatpush.bf16.msrb.mxu0 %v2206_v9  ;;  %v1516_v25 = vpack.c.bf16 %v1388_v20, %v1388_v20  ;;  %v2481_v44 = vunpack.c.l.b16 %v1515_v41  ;;  %v507_v10 = vadd.f32 %v5648_v61, %v315_v37  ;;  %v331_v4 = vmul.f32 %v7552_v22, %v5607_v42 }
 0x131   : > { %v2351_v3 = vpack.c.b16 %v2337_v35, %v2336_v48  ;;  %v1404_v50 = vmax.f32 %v1276_v63, 0.0  ;;  %v1531_v49 = vpack.c.bf16 %v1403_v21, %v1403_v21  ;;  %v508_v56 = vadd.f32 %v5634_v53, %v316_v39 }
 0x132   : > { %v2482_v7 = vunpack.c.l.b16 %v1516_v25  ;;  %v635_v40 = vmax.f32 %v507_v10, 0.0  ;;  %v332_v18 = vmul.f32 %v7552_v22, %v5632_v29  ;;  %v523_v5 = vadd.f32 %v5648_v61, %v331_v4 }
 0x133   : > { %2372 = vmatpush.bf16.msrb.mxu1 %v2351_v3  ;;  %v1532_v28 = vpack.c.bf16 %v1404_v50, %v1404_v50  ;;  %v2626_v1 = vunpack.c.l.b16 %v1531_v49  ;;  %v636_v14 = vmax.f32 %v508_v56, 0.0  ;;  %v347_v59 = vmul.f32 %v7553_v26, %v5607_v42 }
 0x134   : > { %v2496_v6 = vpack.c.b16 %v2482_v7, %v2481_v44  ;;  %v763_v15 = vpack.c.bf16 %v635_v40, %v635_v40  ;;  %v524_v51 = vadd.f32 %v5634_v53, %v332_v18  ;;  %v651_v13 = vmax.f32 %v523_v5, 0.0  ;;  %v5685_v18 = vpop.permute.xlu2 %458 }
 0x135   : > { %v2627_v0 = vunpack.c.l.b16 %v1532_v28  ;;  %v764_v2 = vpack.c.bf16 %v636_v14, %v636_v14  ;;  %v348_v17 = vmul.f32 %v7553_v26, %v5632_v29  ;;  %v539_v34 = vadd.f32 %v5648_v61, %v347_v59  ;;  %v5690_v14 = vpop.permute.xlu1 %249 }
 0x136   : > { %2517 = vmatpush.bf16.msrb.mxu2 %v2496_v6  ;;  %v1563_v27 = vunpack.c.l.b16 %v763_v15  ;;  %v652_v24 = vmax.f32 %v524_v51, 0.0  ;;  %v779_v30 = vpack.c.bf16 %v651_v13, %v651_v13  ;;  %v363_v55 = vmul.f32 %v5479_v31, %v5607_v42 }
 0x137   : > { %v2641_v47 = vpack.c.b16 %v2627_v0, %v2626_v1  ;;  %v1564_v38 = vunpack.c.l.b16 %v764_v2  ;;  %v540_v43 = vadd.f32 %v5634_v53, %v348_v17  ;;  %v667_v48 = vmax.f32 %v539_v34, 0.0 }
 0x138   : > { %v780_v54 = vpack.c.bf16 %v652_v24, %v652_v24  ;;  %v1708_v36 = vunpack.c.l.b16 %v779_v30  ;;  %v364_v9 = vmul.f32 %v5479_v31, %v5632_v29  ;;  %v555_v20 = vadd.f32 %v5648_v61, %v363_v55 }
 0x139   : > { %2662 = vmatpush.bf16.msrb.mxu3 %v2641_v47  ;;  %v1578_v41 = vpack.c.b16 %v1564_v38, %v1563_v27  ;;  %v668_v37 = vmax.f32 %v540_v43, 0.0  ;;  %v795_v35 = vpack.c.bf16 %v667_v48, %v667_v48  ;;  %v1033_v63 = vmul.f32 %v7544_v8, %v5418_v52 }
 0x13a   : > { %v1709_v21 = vunpack.c.l.b16 %v780_v54  ;;  %v556_v39 = vadd.f32 %v5634_v53, %v364_v9  ;;  %v683_v25 = vmax.f32 %v555_v20, 0.0  ;;  %v1034_v44 = vmul.f32 %v7544_v8, %v5339_v58 }
 0x13b   : > { %1654 = vmatmul.bf16.gmra.mxu0 %v1578_v41  ;;  %v796_v10 = vpack.c.bf16 %v668_v37, %v668_v37  ;;  %v1853_v4 = vunpack.c.l.b16 %v795_v35  ;;  %v1225_v3 = vadd.f32 %v5428_v11, %v1033_v63  ;;  %v1049_v50 = vmul.f32 %v5184_v23, %v5418_v52 }
 0x13c   : > { %v1723_v49 = vpack.c.b16 %v1709_v21, %v1708_v36  ;;  %v684_v56 = vmax.f32 %v556_v39, 0.0  ;;  %v811_v7 = vpack.c.bf16 %v683_v25, %v683_v25  ;;  %v1226_v40 = vadd.f32 %v5454_v46, %v1034_v44  ;;  %v5707_v44 = vpop.permute.xlu2 %254 }
 0x13d   : > { %v1854_v5 = vunpack.c.l.b16 %v796_v10  ;;  %v1353_v28 = vmax.f32 %v1225_v3, 0.0  ;;  %v1050_v8 = vmul.f32 %v5184_v23, %v5339_v58  ;;  %v1241_v1 = vadd.f32 %v5428_v11, %v1049_v50 }
 0x13e   : > { %1799 = vmatmul.bf16.gmra.mxu1 %v1723_v49  ;;  %v812_v59 = vpack.c.bf16 %v684_v56, %v684_v56  ;;  %v1998_v6 = vunpack.c.l.b16 %v811_v7  ;;  %v1354_v15 = vmax.f32 %v1226_v40, 0.0  ;;  %v1065_v51 = vmul.f32 %v5287_v57, %v5418_v52 }
 0x13f   : > { %v1868_v13 = vpack.c.b16 %v1854_v5, %v1853_v4  ;;  %v1481_v0 = vpack.c.bf16 %v1353_v28, %v1353_v28  ;;  %v1242_v2 = vadd.f32 %v5454_v46, %v1050_v8  ;;  %v1369_v17 = vmax.f32 %v1241_v1, 0.0  ;;  %v5711_v4 = vpop.permute.xlu0 %462 }
 0x140   : > { %v1999_v34 = vunpack.c.l.b16 %v812_v59  ;;  %v1482_v27 = vpack.c.bf16 %v1354_v15, %v1354_v15  ;;  %v1066_v23 = vmul.f32 %v5287_v57, %v5339_v58  ;;  %v1257_v24 = vadd.f32 %v5428_v11, %v1065_v51 }
 0x141   : > { %1944 = vmatmul.bf16.gmra.mxu2 %v1868_v13  ;;  %v2189_v30 = vunpack.c.l.b16 %v1481_v0  ;;  %v1370_v55 = vmax.f32 %v1242_v2, 0.0  ;;  %v1497_v47 = vpack.c.bf16 %v1369_v17, %v1369_v17  ;;  %v1081_v38 = vmul.f32 %v5408_v45, %v5418_v52 }
 0x142   : > { %v2013_v43 = vpack.c.b16 %v1999_v34, %v1998_v6  ;;  %v2190_v48 = vunpack.c.l.b16 %v1482_v27  ;;  %v1258_v54 = vadd.f32 %v5454_v46, %v1066_v23  ;;  %v1385_v36 = vmax.f32 %v1257_v24, 0.0 }
 0x143   : > { %v1498_v9 = vpack.c.bf16 %v1370_v55, %v1370_v55  ;;  %v2334_v20 = vunpack.c.l.b16 %v1497_v47  ;;  %v1082_v41 = vmul.f32 %v5408_v45, %v5339_v58  ;;  %v1273_v57 = vadd.f32 %v5428_v11, %v1081_v38 }
 0x144   : > { %2089 = vmatmul.bf16.gmra.mxu3 %v2013_v43  ;;  %v2205_v37 = vpack.c.b16 %v2190_v48, %v2189_v30  ;;  %v1386_v35 = vmax.f32 %v1258_v54, 0.0  ;;  %v1513_v63 = vpack.c.bf16 %v1385_v36, %v1385_v36  ;;  %v317_v21 = vmul.f32 %v7551_v19, %v5660_v33 }
 0x145   : > { %v2335_v52 = vunpack.c.l.b16 %v1498_v9  ;;  %v1274_v39 = vadd.f32 %v5454_v46, %v1082_v41  ;;  %v1401_v25 = vmax.f32 %v1273_v57, 0.0  ;;  %v318_v10 = vmul.f32 %v7551_v19, %v5662_v60  ;;  %v5716_v46 = vpop.permute.xlu1 %470  ;;  %v5734_v57 = vpop.permute.xlu2 %259 }
 0x146   : > { %2228 = vmatpush.bf16.msrb.mxu0 %v2205_v37  ;;  %v1514_v58 = vpack.c.bf16 %v1386_v35, %v1386_v35  ;;  %v2479_v45 = vunpack.c.l.b16 %v1513_v63  ;;  %v509_v11 = vadd.f32 %v5685_v18, %v317_v21  ;;  %v333_v3 = vmul.f32 %v7552_v22, %v5660_v33 }
 0x147   : > { %v2350_v50 = vpack.c.b16 %v2335_v52, %v2334_v20  ;;  %v1402_v49 = vmax.f32 %v1274_v39, 0.0  ;;  %v1529_v56 = vpack.c.bf16 %v1401_v25, %v1401_v25  ;;  %v510_v7 = vadd.f32 %v5711_v4, %v318_v10  ;;  %v5738_v52 = vpop.permute.xlu0 %466 }
 0x148   : > { %v2480_v40 = vunpack.c.l.b16 %v1514_v58  ;;  %v637_v5 = vmax.f32 %v509_v11, 0.0  ;;  %v334_v28 = vmul.f32 %v7552_v22, %v5662_v60  ;;  %v525_v8 = vadd.f32 %v5685_v18, %v333_v3 }
 0x149   : > { %2373 = vmatpush.bf16.msrb.mxu1 %v2350_v50  ;;  %v1530_v1 = vpack.c.bf16 %v1402_v49, %v1402_v49  ;;  %v2624_v59 = vunpack.c.l.b16 %v1529_v56  ;;  %v638_v6 = vmax.f32 %v510_v7, 0.0  ;;  %v349_v15 = vmul.f32 %v7553_v26, %v5660_v33 }
 0x14a   : > { %v2495_v51 = vpack.c.b16 %v2480_v40, %v2479_v45  ;;  %v765_v13 = vpack.c.bf16 %v637_v5, %v637_v5  ;;  %v526_v0 = vadd.f32 %v5711_v4, %v334_v28  ;;  %v653_v2 = vmax.f32 %v525_v8, 0.0 }
 0x14b   : > { %v2625_v17 = vunpack.c.l.b16 %v1530_v1  ;;  %v766_v34 = vpack.c.bf16 %v638_v6, %v638_v6  ;;  %v350_v27 = vmul.f32 %v7553_v26, %v5662_v60  ;;  %v541_v23 = vadd.f32 %v5685_v18, %v349_v15 }
 0x14c   : > { %2518 = vmatpush.bf16.msrb.mxu2 %v2495_v51  ;;  %v1565_v24 = vunpack.c.l.b16 %v765_v13  ;;  %v654_v30 = vmax.f32 %v526_v0, 0.0  ;;  %v781_v55 = vpack.c.bf16 %v653_v2, %v653_v2  ;;  %v365_v47 = vmul.f32 %v5479_v31, %v5660_v33 }
 0x14d   : > { %v2640_v38 = vpack.c.b16 %v2625_v17, %v2624_v59  ;;  %v1566_v43 = vunpack.c.l.b16 %v766_v34  ;;  %v542_v48 = vadd.f32 %v5711_v4, %v350_v27  ;;  %v669_v54 = vmax.f32 %v541_v23, 0.0  ;;  %v5743_v11 = vpop.permute.xlu1 %474 }
 0x14e   : > { %v782_v36 = vpack.c.bf16 %v654_v30, %v654_v30  ;;  %v1710_v9 = vunpack.c.l.b16 %v781_v55  ;;  %v366_v20 = vmul.f32 %v5479_v31, %v5662_v60  ;;  %v557_v41 = vadd.f32 %v5685_v18, %v365_v47 }
 0x14f   : > { %2663 = vmatpush.bf16.msrb.mxu3 %v2640_v38  ;;  %v1579_v37 = vpack.c.b16 %v1566_v43, %v1565_v24  ;;  %v670_v35 = vmax.f32 %v542_v48, 0.0  ;;  %v797_v63 = vpack.c.bf16 %v669_v54, %v669_v54  ;;  %v319_v21 = vmul.f32 %v7551_v19, %v5690_v14  ;;  %v5760_v38 = vpop.permute.xlu0 %264  ;;  %v5763_v54 = vpop.permute.xlu2 %478 }
 0x150   : > { %v1711_v39 = vunpack.c.l.b16 %v782_v36  ;;  %v558_v25 = vadd.f32 %v5711_v4, %v366_v20  ;;  %v685_v10 = vmax.f32 %v557_v41, 0.0  ;;  %v320_v58 = vmul.f32 %v7551_v19, %v5707_v44 }
 0x151   : > { %1659 = vmatmul.bf16.gmra.mxu0 %v1579_v37  ;;  %v798_v45 = vpack.c.bf16 %v670_v35, %v670_v35  ;;  %v511_v3 = vadd.f32 %v5738_v52, %v319_v21  ;;  %v335_v50 = vmul.f32 %v7552_v22, %v5690_v14  ;;  %v1855_v5 = vunpack.c.l.b16 %v797_v63 }
 0x152   : > { %v1724_v49 = vpack.c.b16 %v1711_v39, %v1710_v9  ;;  %v686_v56 = vmax.f32 %v558_v25, 0.0  ;;  %v813_v7 = vpack.c.bf16 %v685_v10, %v685_v10  ;;  %v512_v40 = vadd.f32 %v5716_v46, %v320_v58 }
 0x153   : > { %v1856_v28 = vunpack.c.l.b16 %v798_v45  ;;  %v336_v8 = vmul.f32 %v7552_v22, %v5707_v44  ;;  %v527_v1 = vadd.f32 %v5738_v52, %v335_v50  ;;  %v639_v6 = vmax.f32 %v511_v3, 0.0 }
 0x154   : > { %1804 = vmatmul.bf16.gmra.mxu1 %v1724_v49  ;;  %v814_v59 = vpack.c.bf16 %v686_v56, %v686_v56  ;;  %v640_v15 = vmax.f32 %v512_v40, 0.0  ;;  %v351_v51 = vmul.f32 %v7553_v26, %v5690_v14  ;;  %v2000_v2 = vunpack.c.l.b16 %v813_v7 }
 0x155   : > { %v1869_v13 = vpack.c.b16 %v1856_v28, %v1855_v5  ;;  %v528_v0 = vadd.f32 %v5716_v46, %v336_v8  ;;  %v655_v34 = vmax.f32 %v527_v1, 0.0  ;;  %v352_v27 = vmul.f32 %v7553_v26, %v5707_v44  ;;  %v5767_v20 = vpop.permute.xlu1 %269 }
 0x156   : > { %v2001_v17 = vunpack.c.l.b16 %v814_v59  ;;  %v768_v23 = vpack.c.bf16 %v640_v15, %v640_v15  ;;  %v543_v30 = vadd.f32 %v5738_v52, %v351_v51  ;;  %v367_v55 = vmul.f32 %v5479_v31, %v5690_v14  ;;  %7561 = vst [vmem:[#allocation2_spill] sm:$0xff] %v5767_v20 }
 0x157   : > { %1949 = vmatmul.bf16.gmra.mxu2 %v1869_v13  ;;  %v656_v24 = vmax.f32 %v528_v0, 0.0  ;;  %v767_v43 = vpack.c.bf16 %v639_v6, %v639_v6  ;;  %v544_v48 = vadd.f32 %v5716_v46, %v352_v27  ;;  %v368_v9 = vmul.f32 %v5479_v31, %v5707_v44  ;;  %v5781_v51 = vpop.permute.xlu2 %274 }
 0x158   : > { %v2014_v47 = vpack.c.b16 %v2001_v17, %v2000_v2  ;;  %v783_v41 = vpack.c.bf16 %v655_v34, %v655_v34  ;;  %v559_v35 = vadd.f32 %v5738_v52, %v367_v55  ;;  %v1568_v63 = vunpack.c.l.b16 %v768_v23  ;;  %7562 = vst [vmem:[#allocation3_spill] sm:$0xff] %v5781_v51 }
 0x159   : > { %v784_v36 = vpack.c.bf16 %v656_v24, %v656_v24  ;;  %v672_v37 = vmax.f32 %v544_v48, 0.0  ;;  %v671_v21 = vmax.f32 %v543_v30, 0.0  ;;  %v560_v39 = vadd.f32 %v5716_v46, %v368_v9 }
 0x15a   : > { %2094 = vmatmul.bf16.gmra.mxu3 %v2014_v47  ;;  %v322_v25 = vmul.f32 %v7551_v19, %v5760_v38  ;;  %v1567_v10 = vunpack.c.l.b16 %v767_v43  ;;  %v321_v50 = vmul.f32 %v7551_v19, %v5734_v57  ;;  %v1712_v49 = vunpack.c.l.b16 %v783_v41 }
 0x15b   : > { %v1713_v58 = vunpack.c.l.b16 %v784_v36  ;;  %v800_v45 = vpack.c.bf16 %v672_v37, %v672_v37  ;;  %v688_v3 = vmax.f32 %v560_v39, 0.0  ;;  %v687_v56 = vmax.f32 %v559_v35, 0.0 }
 0x15c   : > { %v338_v7 = vmul.f32 %v7552_v22, %v5760_v38  ;;  %v1580_v40 = vpack.c.b16 %v1568_v63, %v1567_v10  ;;  %v799_v5 = vpack.c.bf16 %v671_v21, %v671_v21  ;;  %v513_v28 = vadd.f32 %v5743_v11, %v321_v50 }
 0x15d   : > { %v514_v8 = vadd.f32 %v5763_v54, %v322_v25  ;;  %v816_v1 = vpack.c.bf16 %v688_v3, %v688_v3  ;;  %v337_v59 = vmul.f32 %v7552_v22, %v5734_v57  ;;  %v1725_v6 = vpack.c.b16 %v1713_v58, %v1712_v49  ;;  %v5789_v23 = vpop.permute.xlu1 %486 }
 0x15e   : > { %v1858_v15 = vunpack.c.l.b16 %v800_v45  ;;  %v354_v13 = vmul.f32 %v7553_v26, %v5760_v38  ;;  %v815_v0 = vpack.c.bf16 %v687_v56, %v687_v56  ;;  %v530_v17 = vadd.f32 %v5763_v54, %v338_v7  ;;  %7563 = vst [vmem:[#allocation8_spill] sm:$0xff] %v5789_v23 }
 0x15f   : > { %v529_v2 = vadd.f32 %v5743_v11, %v337_v59  ;;  %v353_v34 = vmul.f32 %v7553_v26, %v5734_v57  ;;  %v1857_v27 = vunpack.c.l.b16 %v799_v5  ;;  %v641_v24 = vmax.f32 %v513_v28, 0.0  ;;  %v5803_v7 = vpop.permute.xlu2 %279  ;;  %v5805_v28 = vpop.permute.xlu0 %482 }
 0x160   : > { %v642_v30 = vmax.f32 %v514_v8, 0.0  ;;  %v2003_v55 = vunpack.c.l.b16 %v816_v1  ;;  %v370_v43 = vmul.f32 %v5479_v31, %v5760_v38  ;;  %v546_v36 = vadd.f32 %v5763_v54, %v354_v13  ;;  %7564 = vst [vmem:[#allocation4_spill] sm:$0xff] %v5803_v7 }
 0x161   : > { %1664 = vmatmul.bf16.gmra.mxu0 %v1580_v40  ;;  %v545_v47 = vadd.f32 %v5743_v11, %v353_v34  ;;  %v1870_v48 = vpack.c.b16 %v1858_v15, %v1857_v27  ;;  %v2002_v9 = vunpack.c.l.b16 %v815_v0  ;;  %v657_v41 = vmax.f32 %v529_v2, 0.0  ;;  %7565 = vst [vmem:[#allocation17_spill] sm:$0xff] %v5805_v28 }
 0x162   : > { %v658_v37 = vmax.f32 %v530_v17, 0.0  ;;  %v369_v35 = vmul.f32 %v5479_v31, %v5734_v57  ;;  %v769_v63 = vpack.c.bf16 %v641_v24, %v641_v24  ;;  %v770_v21 = vpack.c.bf16 %v642_v30, %v642_v30 }
 0x163   : > { %v2015_v39 = vpack.c.b16 %v2003_v55, %v2002_v9  ;;  %v673_v25 = vmax.f32 %v545_v47, 0.0  ;;  %v562_v58 = vadd.f32 %v5763_v54, %v370_v43  ;;  %v674_v45 = vmax.f32 %v546_v36, 0.0 }
 0x164   : > { %1809 = vmatmul.bf16.gmra.mxu1 %v1725_v6  ;;  %v561_v10 = vadd.f32 %v5743_v11, %v369_v35  ;;  %v323_v3 = vmul.f32 %v7551_v19, %v5767_v20  ;;  %v785_v50 = vpack.c.bf16 %v657_v41, %v657_v41  ;;  %v786_v49 = vpack.c.bf16 %v658_v37, %v658_v37 }
 0x165   : > { %v324_v56 = vmul.f32 %v7551_v19, %v5781_v51  ;;  %v1569_v40 = vunpack.c.l.b16 %v769_v63  ;;  %v1570_v5 = vunpack.c.l.b16 %v770_v21  ;;  %v801_v8 = vpack.c.bf16 %v673_v25, %v673_v25  ;;  %v5809_v13 = vpop.permute.xlu1 %284 }
 0x166   : > { %v689_v1 = vmax.f32 %v561_v10, 0.0  ;;  %v690_v59 = vmax.f32 %v562_v58, 0.0  ;;  %v339_v6 = vmul.f32 %v7552_v22, %v5767_v20  ;;  %v802_v15 = vpack.c.bf16 %v674_v45, %v674_v45  ;;  %7566 = vst [vmem:[#allocation13_spill] sm:$0xff] %v5809_v13 }
 0x167   : > { %1954 = vmatmul.bf16.gmra.mxu2 %v1870_v48  ;;  %v515_v0 = vadd.f32 %v5805_v28, %v323_v3  ;;  %v1714_v2 = vunpack.c.l.b16 %v785_v50  ;;  %v1715_v17 = vunpack.c.l.b16 %v786_v49  ;;  %v516_v34 = vadd.f32 %v5789_v23, %v324_v56  ;;  %v5825_v3 = vpop.permute.xlu2 %490 }
 0x168   : > { %v340_v27 = vmul.f32 %v7552_v22, %v5781_v51  ;;  %v1581_v24 = vpack.c.b16 %v1570_v5, %v1569_v40  ;;  %v1859_v30 = vunpack.c.l.b16 %v801_v8  ;;  %v817_v55 = vpack.c.bf16 %v689_v1, %v689_v1  ;;  %7567 = vst [vmem:[#allocation6_spill] sm:$0xff] %v5825_v3 }
 0x169   : > { %v818_v47 = vpack.c.bf16 %v690_v59, %v690_v59  ;;  %v531_v43 = vadd.f32 %v5805_v28, %v339_v6  ;;  %v1860_v48 = vunpack.c.l.b16 %v802_v15  ;;  %v643_v36 = vmax.f32 %v515_v0, 0.0  ;;  %v5834_v6 = vld [vmem:[%s4951_s26] sm:$0xff] }
 0x16a   : > { %2099 = vmatmul.bf16.gmra.mxu3 %v2015_v39  ;;  %v355_v9 = vmul.f32 %v7553_v26, %v5767_v20  ;;  %v356_v41 = vmul.f32 %v7553_v26, %v5781_v51  ;;  %v1726_v37 = vpack.c.b16 %v1715_v17, %v1714_v2  ;;  %v644_v35 = vmax.f32 %v516_v34, 0.0 }
 0x16b   : > { %v532_v63 = vadd.f32 %v5789_v23, %v340_v27  ;;  %v371_v21 = vmul.f32 %v5479_v31, %v5767_v20  ;;  %v372_v39 = vmul.f32 %v5479_v31, %v5781_v51  ;;  %v2004_v25 = vunpack.c.l.b16 %v817_v55 }
 0x16c   : > { %v2005_v10 = vunpack.c.l.b16 %v818_v47  ;;  %v659_v58 = vmax.f32 %v531_v43, 0.0  ;;  %v1871_v45 = vpack.c.b16 %v1860_v48, %v1859_v30  ;;  %v771_v50 = vpack.c.bf16 %v643_v36, %v643_v36  ;;  %v5842_v48 = vpop.permute.xlu0 %494 }
 0x16d   : > { %v547_v49 = vadd.f32 %v5805_v28, %v355_v9  ;;  %v548_v56 = vadd.f32 %v5789_v23, %v356_v41  ;;  %v772_v40 = vpack.c.bf16 %v644_v35, %v644_v35  ;;  %v660_v5 = vmax.f32 %v532_v63, 0.0  ;;  %v5829_v8 = vpop.permute.xlu1 %289  ;;  %7568 = vst [vmem:[#allocation7_spill] sm:$0xff] %v5842_v48 }
 0x16e   : > { %v563_v1 = vadd.f32 %v5805_v28, %v371_v21  ;;  %v564_v59 = vadd.f32 %v5789_v23, %v372_v39  ;;  %v205_v15 = vrot.slane %v5834_v6, 4  ;;  %v2016_v0 = vpack.c.b16 %v2005_v10, %v2004_v25 }
 0x16f   : > { %v787_v2 = vpack.c.bf16 %v659_v58, %v659_v58  ;;  %v1571_v17 = vunpack.c.l.b16 %v771_v50  ;;  %v675_v34 = vmax.f32 %v547_v49, 0.0  ;;  %v676_v27 = vmax.f32 %v548_v56, 0.0  ;;  %v5848_v25 = vpop.permute.xlu2 %294 }
 0x170   : > { %v788_v30 = vpack.c.bf16 %v660_v5, %v660_v5  ;;  %v325_v55 = vmul.f32 %v7551_v19, %v5803_v7  ;;  %v326_v47 = vmul.f32 %v7551_v19, %v5809_v13  ;;  %v206_v43 = vrot.slane %v5834_v6, 5 }
 0x171   : > { %1669 = vmatmul.bf16.gmra.mxu0 %v1581_v24  ;;  %v1572_v24 = vunpack.c.l.b16 %v772_v40  ;;  %v691_v36 = vmax.f32 %v563_v1, 0.0  ;;  %v692_v9 = vmax.f32 %v564_v59, 0.0  ;;  %v207_v41 = vrot.slane %v5834_v6, 6 }
 0x172   : > { %v5846_v35 = vperm.slane %v205_v15, 0  ;;  %v1716_v63 = vunpack.c.l.b16 %v787_v2  ;;  %v803_v21 = vpack.c.bf16 %v675_v34, %v675_v34  ;;  %v804_v39 = vpack.c.bf16 %v676_v27, %v676_v27 }
 0x173   : > { %v341_v10 = vmul.f32 %v7552_v22, %v5803_v7  ;;  %v342_v58 = vmul.f32 %v7552_v22, %v5809_v13  ;;  %v1717_v50 = vunpack.c.l.b16 %v788_v30  ;;  %v517_v49 = vadd.f32 %v5825_v3, %v325_v55 }
 0x174   : > { %1814 = vmatmul.bf16.gmra.mxu1 %v1726_v37  ;;  %7569 = vst [vmem:[#allocation9_spill] sm:$0xff] %v5846_v35  ;;  %v518_v56 = vadd.f32 %v5842_v48, %v326_v47  ;;  %v819_v40 = vpack.c.bf16 %v691_v36, %v691_v36  ;;  %v820_v5 = vpack.c.bf16 %v692_v9, %v692_v9  ;;  %v5860_v15 = vperm.slane %v206_v43, 0 }
 0x175   : > { %v357_v1 = vmul.f32 %v7553_v26, %v5803_v7  ;;  %v358_v59 = vmul.f32 %v7553_v26, %v5809_v13  ;;  %v374_v2 = vmul.f32 %v5479_v31, %v5809_v13  ;;  %v1861_v34 = vunpack.c.l.b16 %v803_v21 }
 0x176   : > { %7570 = vst [vmem:[#allocation10_spill] sm:$0xff] %v5860_v15  ;;  %v1862_v27 = vunpack.c.l.b16 %v804_v39  ;;  %v533_v30 = vadd.f32 %v5825_v3, %v341_v10  ;;  %v534_v55 = vadd.f32 %v5842_v48, %v342_v58  ;;  %v1727_v47 = vpack.c.b16 %v1717_v50, %v1716_v63  ;;  %v5881_v58 = vpop.permute.xlu0 %498 }
 0x177   : > { %1959 = vmatmul.bf16.gmra.mxu2 %v1871_v45  ;;  %v1582_v45 = vpack.c.b16 %v1572_v24, %v1571_v17  ;;  %v328_v17 = vmul.f32 %v7551_v19, %v5848_v25  ;;  %v5868_v24 = vpop.permute.xlu1 %502  ;;  %v645_v43 = vmax.f32 %v517_v49, 0.0  ;;  %v646_v36 = vmax.f32 %v518_v56, 0.0 }
 0x178   : > { %7571 = vst [vmem:[#allocation5_spill] sm:$0xff] %v5868_v24  ;;  %v327_v9 = vmul.f32 %v7551_v19, %v5829_v8  ;;  %v2006_v37 = vunpack.c.l.b16 %v819_v40  ;;  %v2007_v13 = vunpack.c.l.b16 %v820_v5  ;;  %v5876_v21 = vperm.slane %v207_v41, 0 }
 0x179   : > { %v566_v10 = vadd.f32 %v5842_v48, %v374_v2  ;;  %v520_v63 = vadd.f32 %v5868_v24, %v328_v17  ;;  %v1872_v50 = vpack.c.b16 %v1862_v27, %v1861_v34  ;;  %v661_v49 = vmax.f32 %v533_v30, 0.0 }
 0x17a   : > { %2104 = vmatmul.bf16.gmra.mxu3 %v2016_v0  ;;  %v373_v0 = vmul.f32 %v5479_v31, %v5803_v7  ;;  %v549_v7 = vadd.f32 %v5825_v3, %v357_v1  ;;  %7572 = vst [vmem:[#allocation16_spill] sm:$0xff] %v5876_v21  ;;  %v662_v56 = vmax.f32 %v534_v55, 0.0  ;;  %v344_v40 = vmul.f32 %v7552_v22, %v5848_v25 }
 0x17b   : > { %v773_v5 = vpack.c.bf16 %v645_v43, %v645_v43  ;;  %v774_v1 = vpack.c.bf16 %v646_v36, %v646_v36  ;;  %v519_v41 = vadd.f32 %v5881_v58, %v327_v9  ;;  %v377_v17 = vmul.f32 %v5846_v35, %v5464_v16 }
 0x17c   : > { %v565_v39 = vadd.f32 %v5825_v3, %v373_v0  ;;  %v2017_v0 = vpack.c.b16 %v2007_v13, %v2006_v37  ;;  %v677_v2 = vmax.f32 %v549_v7, 0.0  ;;  %v694_v27 = vmax.f32 %v566_v10, 0.0 }
 0x17d   : > { %v648_v30 = vmax.f32 %v520_v63, 0.0  ;;  %v378_v55 = vmul.f32 %v5846_v35, %v5487_v62  ;;  %v789_v43 = vpack.c.bf16 %v661_v49, %v661_v49  ;;  %v790_v36 = vpack.c.bf16 %v662_v56, %v662_v56 }
 0x17e   : > { %v693_v34 = vmax.f32 %v565_v39, 0.0  ;;  %v536_v9 = vadd.f32 %v5868_v24, %v344_v40  ;;  %v1574_v13 = vunpack.c.l.b16 %v774_v1  ;;  %v647_v7 = vmax.f32 %v519_v41, 0.0 }
 0x17f   : > { %v359_v39 = vmul.f32 %v7553_v26, %v5829_v8  ;;  %v360_v10 = vmul.f32 %v7553_v26, %v5848_v25  ;;  %v822_v49 = vpack.c.bf16 %v694_v27, %v694_v27  ;;  %v776_v56 = vpack.c.bf16 %v648_v30, %v648_v30 }
 0x180   : > { %v821_v63 = vpack.c.bf16 %v693_v34, %v693_v34  ;;  %v570_v40 = vadd.f32 %v5498_v12, %v378_v55  ;;  %v7573_v41 = vrot.slane %v5834_v6, 7  ;;  %v393_v6 = vmul.f32 %v5860_v15, %v5464_v16 }
 0x181   : > { %1674 = vmatmul.bf16.gmra.mxu0 %v1582_v45  ;;  %v550_v45 = vadd.f32 %v5842_v48, %v358_v59  ;;  %v343_v59 = vmul.f32 %v7552_v22, %v5829_v8  ;;  %v569_v48 = vadd.f32 %v5481_v32, %v377_v17  ;;  %v1718_v17 = vunpack.c.l.b16 %v789_v43 }
 0x182   : > { %v551_v20 = vadd.f32 %v5881_v58, %v359_v39  ;;  %v552_v34 = vadd.f32 %v5868_v24, %v360_v10  ;;  %v2008_v27 = vunpack.c.l.b16 %v821_v63  ;;  %v2009_v30 = vunpack.c.l.b16 %v822_v49 }
 0x183   : > { %v535_v37 = vadd.f32 %v5881_v58, %v343_v59  ;;  %v697_v1 = vmax.f32 %v569_v48, 0.0  ;;  %v5902_v59 = vperm.slane %v7573_v41, 0  ;;  %v1576_v55 = vunpack.c.l.b16 %v776_v56 }
 0x184   : > { %1819 = vmatmul.bf16.gmra.mxu1 %v1727_v47  ;;  %v678_v47 = vmax.f32 %v550_v45, 0.0  ;;  %v805_v45 = vpack.c.bf16 %v677_v2, %v677_v2  ;;  %v698_v43 = vmax.f32 %v570_v40, 0.0  ;;  %v680_v39 = vmax.f32 %v552_v34, 0.0 }
 0x185   : > { %7574 = vst [vmem:[#allocation11_spill] sm:$0xff] %v5902_v59  ;;  %v663_v23 = vmax.f32 %v535_v37, 0.0  ;;  %v394_v10 = vmul.f32 %v5860_v15, %v5487_v62  ;;  %v2018_v63 = vpack.c.b16 %v2009_v30, %v2008_v27  ;;  %v410_v40 = vmul.f32 %v5876_v21, %v5487_v62  ;;  %v1795_v30 = vpop.f32.mrf.mxu1 }
 0x186   : > { %v806_v3 = vpack.c.bf16 %v678_v47, %v678_v47  ;;  %v775_v47 = vpack.c.bf16 %v647_v7, %v647_v7  ;;  %v1863_v28 = vunpack.c.l.b16 %v805_v45  ;;  %v376_v7 = vmul.f32 %v5479_v31, %v5848_v25 }
 0x187   : > { %1964 = vmatmul.bf16.gmra.mxu2 %v1872_v50  ;;  %v1573_v50 = vunpack.c.l.b16 %v773_v5  ;;  %v664_v5 = vmax.f32 %v536_v9, 0.0  ;;  %v825_v9 = vpack.c.bf16 %v697_v1, %v697_v1  ;;  %v679_v45 = vmax.f32 %v551_v20, 0.0 }
 0x188   : > { %v1864_v51 = vunpack.c.l.b16 %v806_v3  ;;  %v375_v3 = vmul.f32 %v5479_v31, %v5829_v8  ;;  %v826_v56 = vpack.c.bf16 %v698_v43, %v698_v43  ;;  %v409_v1 = vmul.f32 %v5876_v21, %v5464_v16 }
 0x189   : > { %v1583_v2 = vpack.c.b16 %v1574_v13, %v1573_v50  ;;  %v792_v48 = vpack.c.bf16 %v664_v5, %v664_v5  ;;  %v1575_v50 = vunpack.c.l.b16 %v775_v47  ;;  %v791_v13 = vpack.c.bf16 %v663_v23, %v663_v23  ;;  %v1650_v47 = vpop.f32.mrf.mxu0 }
 0x18a   : > { %2109 = vmatmul.bf16.gmra.mxu3 %v2017_v0  ;;  %v1719_v0 = vunpack.c.l.b16 %v790_v36  ;;  %v1873_v37 = vpack.c.b16 %v1864_v51, %v1863_v28  ;;  %v426_v5 = vmul.f32 %v5902_v59, %v5487_v62  ;;  %v567_v20 = vadd.f32 %v5881_v58, %v375_v3 }
 0x18b   : > { %v1584_v49 = vpack.c.b16 %v1576_v55, %v1575_v50  ;;  %v1721_v23 = vunpack.c.l.b16 %v792_v48  ;;  %v1720_v51 = vunpack.c.l.b16 %v791_v13  ;;  %v568_v28 = vadd.f32 %v5868_v24, %v376_v7 }
 0x18c   : > { %v1728_v36 = vpack.c.b16 %v1719_v0, %v1718_v17  ;;  %v2141_v17 = vunpack.c.l.b16 %v825_v9  ;;  %v585_v0 = vadd.f32 %v5481_v32, %v393_v6  ;;  %v807_v41 = vpack.c.bf16 %v679_v45, %v679_v45 }
 0x18d   : > { %v586_v34 = vadd.f32 %v5498_v12, %v394_v10  ;;  %v425_v27 = vmul.f32 %v5902_v59, %v5464_v16  ;;  %v2142_v55 = vunpack.c.l.b16 %v826_v56  ;;  %v601_v62 = vadd.f32 %v5481_v32, %v409_v1 }
 0x18e   : > { %v602_v43 = vadd.f32 %v5498_v12, %v410_v40  ;;  %v1729_v48 = vpack.c.b16 %v1721_v23, %v1720_v51  ;;  %v618_v6 = vadd.f32 %v5498_v12, %v426_v5  ;;  %v379_v50 = vmul.f32 %v5846_v35, %v5607_v42 }
 0x18f   : > { %v617_v9 = vadd.f32 %v5481_v32, %v425_v27  ;;  %v695_v13 = vmax.f32 %v567_v20, 0.0  ;;  %v696_v16 = vmax.f32 %v568_v28, 0.0  ;;  %v2705_v3 = vmul.f32 %v1650_v47, %v7551_v19 }
 0x190   : > { %v395_v7 = vmul.f32 %v5860_v15, %v5607_v42  ;;  %v2721_v45 = vmul.f32 %v1795_v30, %v7552_v22  ;;  %v714_v10 = vmax.f32 %v586_v34, 0.0  ;;  %v729_v56 = vmax.f32 %v601_v62, 0.0  ;;  %v1940_v30 = vpop.f32.mrf.mxu2 }
 0x191   : > { %1679 = vmatmul.bf16.gmra.mxu0 %v1583_v2  ;;  %v808_v2 = vpack.c.bf16 %v680_v39, %v680_v39  ;;  %v713_v39 = vmax.f32 %v585_v0, 0.0  ;;  %v730_v32 = vmax.f32 %v602_v43, 0.0  ;;  %v396_v40 = vmul.f32 %v5860_v15, %v5632_v29 }
 0x192   : > { %v745_v23 = vmax.f32 %v617_v9, 0.0  ;;  %v746_v5 = vmax.f32 %v618_v6, 0.0  ;;  %v571_v51 = vadd.f32 %v5648_v61, %v379_v50  ;;  %v823_v20 = vpack.c.bf16 %v695_v13, %v695_v13 }
 0x193   : > { %v824_v28 = vpack.c.bf16 %v696_v16, %v696_v16  ;;  %v2833_v1 = vpack.c.bf16 %v2705_v3, %v2705_v3  ;;  %v2849_v47 = vpack.c.bf16 %v2721_v45, %v2721_v45  ;;  %v5943_v0 = vpack.c.b16 %v2142_v55, %v2141_v17 }
 0x194   : > { %1824 = vmatmul.bf16.gmra.mxu1 %v1728_v36  ;;  %v380_v36 = vmul.f32 %v5846_v35, %v5632_v29  ;;  %v841_v34 = vpack.c.bf16 %v713_v39, %v713_v39  ;;  %v842_v27 = vpack.c.bf16 %v714_v10, %v714_v10  ;;  %v857_v62 = vpack.c.bf16 %v729_v56, %v729_v56  ;;  %v1652_v10 = vpop.f32.mrf.mxu0 }
 0x195   : > { %v858_v43 = vpack.c.bf16 %v730_v32, %v730_v32  ;;  %v873_v6 = vpack.c.bf16 %v745_v23, %v745_v23  ;;  %v874_v50 = vpack.c.bf16 %v746_v5, %v746_v5  ;;  %v699_v13 = vmax.f32 %v571_v51, 0.0 }
 0x196   : > { %v572_v12 = vadd.f32 %v5634_v53, %v380_v36  ;;  %v2085_v36 = vpop.f32.mrf.mxu3  ;;  %v2010_v16 = vunpack.c.l.b16 %v823_v20  ;;  %v2011_v3 = vunpack.c.l.b16 %v824_v28  ;;  %v5948_v55 = vunpack.c.l.bf16 %v2849_v47 }
 0x197   : > { %1969 = vmatmul.bf16.gmra.mxu2 %v1873_v37  ;;  %v1865_v37 = vunpack.c.l.b16 %v807_v41  ;;  %v587_v41 = vadd.f32 %v5648_v61, %v395_v7  ;;  %v5946_v7 = vunpack.c.l.bf16 %v2833_v1  ;;  %v2286_v45 = vunpack.c.l.b16 %v841_v34 }
 0x198   : > { %v700_v24 = vmax.f32 %v572_v12, 0.0  ;;  %v2287_v39 = vunpack.c.l.b16 %v842_v27  ;;  %v412_v56 = vmul.f32 %v5876_v21, %v5632_v29  ;;  %v2431_v32 = vunpack.c.l.b16 %v857_v62 }
 0x199   : > { %v715_v17 = vmax.f32 %v587_v41, 0.0  ;;  %v2577_v23 = vunpack.c.l.b16 %v874_v50  ;;  %v827_v5 = vpack.c.bf16 %v699_v13, %v699_v13  ;;  %v411_v51 = vmul.f32 %v5876_v21, %v5607_v42 }
 0x19a   : > { %2114 = vmatmul.bf16.gmra.mxu3 %v2018_v63  ;;  %v1866_v63 = vunpack.c.l.b16 %v808_v2  ;;  %v588_v2 = vadd.f32 %v5634_v53, %v396_v40  ;;  %v828_v12 = vpack.c.bf16 %v700_v24, %v700_v24  ;;  %v2019_v20 = vpack.c.b16 %v2011_v3, %v2010_v16 }
 0x19b   : > { %v2737_v28 = vmul.f32 %v1940_v30, %v7553_v26  ;;  %v2706_v1 = vmul.f32 %v1652_v10, %v7551_v19  ;;  %v843_v41 = vpack.c.bf16 %v715_v17, %v715_v17  ;;  %v604_v24 = vadd.f32 %v5634_v53, %v412_v56  ;;  %v1942_v30 = vpop.f32.mrf.mxu2 }
 0x19c   : > { %v1874_v9 = vpack.c.b16 %v1866_v63, %v1865_v37  ;;  %v1797_v37 = vpop.f32.mrf.mxu1  ;;  %v716_v40 = vmax.f32 %v588_v2, 0.0  ;;  %v2576_v63 = vunpack.c.l.b16 %v873_v6  ;;  %v427_v34 = vmul.f32 %v5902_v59, %v5607_v42 }
 0x19d   : > { %v2722_v47 = vmul.f32 %v1797_v37, %v7552_v22  ;;  %v2302_v27 = vpack.c.b16 %v2287_v39, %v2286_v45  ;;  %v2143_v50 = vunpack.c.l.b16 %v827_v5  ;;  %v2865_v13 = vpack.c.bf16 %v2737_v28, %v2737_v28 }
 0x19e   : > { %v844_v2 = vpack.c.bf16 %v716_v40, %v716_v40  ;;  %v5963_v6 = vpack.c.b16 %v2577_v23, %v2576_v63  ;;  %v2834_v16 = vpack.c.bf16 %v2706_v1, %v2706_v1  ;;  %v2087_v3 = vpop.f32.mrf.mxu3  ;;  %v2288_v17 = vunpack.c.l.b16 %v843_v41 }
 0x19f   : > { %v381_v42 = vmul.f32 %v5846_v35, %v5660_v33  ;;  %v2850_v39 = vpack.c.bf16 %v2722_v47, %v2722_v47  ;;  %v732_v10 = vmax.f32 %v604_v24, 0.0  ;;  %v619_v56 = vadd.f32 %v5648_v61, %v427_v34 }
 0x1a0   : > { %v2289_v37 = vunpack.c.l.b16 %v844_v2  ;;  %v397_v23 = vmul.f32 %v5860_v15, %v5660_v33  ;;  %v5980_v5 = vunpack.c.l.bf16 %v2865_v13  ;;  %v414_v34 = vmul.f32 %v5876_v21, %v5662_v60 }
 0x1a1   : > { %1684 = vmatmul.bf16.gmra.mxu0 %v1584_v49  ;;  %v2432_v49 = vunpack.c.l.b16 %v858_v43  ;;  %v2144_v43 = vunpack.c.l.b16 %v828_v12  ;;  %v2754_v12 = vmul.f32 %v2087_v3, %v5479_v31  ;;  %v5989_v1 = vunpack.c.l.bf16 %v2850_v39 }
 0x1a2   : > { %7575 = vst [vmem:[#allocation12_spill] sm:$0xff] %v5980_v5  ;;  %v860_v41 = vpack.c.bf16 %v732_v10, %v732_v10  ;;  %v606_v10 = vadd.f32 %v5711_v4, %v414_v34 }
 0x1a3   : > { %v5961_v62 = vpack.c.b16 %v2432_v49, %v2431_v32  ;;  %v2738_v32 = vmul.f32 %v1942_v30, %v7553_v26  ;;  %v5972_v49 = vpack.c.b16 %v2144_v43, %v2143_v50  ;;  %v2882_v43 = vpack.c.bf16 %v2754_v12, %v2754_v12 }
 0x1a4   : > { %1829 = vmatmul.bf16.gmra.mxu1 %v1729_v48  ;;  %v2753_v48 = vmul.f32 %v2085_v36, %v5479_v31  ;;  %v428_v36 = vmul.f32 %v5902_v59, %v5632_v29  ;;  %v382_v29 = vmul.f32 %v5846_v35, %v5662_v60  ;;  %v589_v50 = vadd.f32 %v5685_v18, %v397_v23 }
 0x1a5   : > { %v2866_v47 = vpack.c.bf16 %v2738_v32, %v2738_v32  ;;  %v3110_v3 = vmax.f32 %v5948_v55, %v5989_v1  ;;  %v6012_v32 = vunpack.c.l.bf16 %v2882_v43 }
 0x1a6   : > { %v2881_v45 = vpack.c.bf16 %v2753_v48, %v2753_v48  ;;  %v620_v63 = vadd.f32 %v5634_v53, %v428_v36  ;;  %v747_v48 = vmax.f32 %v619_v56, 0.0  ;;  %v5991_v53 = vpack.c.b16 %v2289_v37, %v2288_v17 }
 0x1a7   : > { %1974 = vmatmul.bf16.gmra.mxu2 %v1874_v9  ;;  %v603_v9 = vadd.f32 %v5648_v61, %v411_v51  ;;  %v5982_v51 = vunpack.c.l.bf16 %v2834_v16  ;;  %v573_v61 = vadd.f32 %v5685_v18, %v381_v42  ;;  %v574_v24 = vadd.f32 %v5711_v4, %v382_v29  ;;  %7578 = vst [vmem:[#allocation18_spill] sm:$0xff] %v6012_v32 }
 0x1a8   : > { %v5987_v28 = vunpack.c.l.bf16 %v2881_v45  ;;  %v748_v30 = vmax.f32 %v620_v63, 0.0  ;;  %v413_v16 = vmul.f32 %v5876_v21, %v5660_v33  ;;  %v2434_v17 = vunpack.c.l.b16 %v860_v41 }
 0x1a9   : > { %v731_v40 = vmax.f32 %v603_v9, 0.0  ;;  %v3089_v9 = vmax.f32 %v5946_v7, %v5982_v51  ;;  %v701_v36 = vmax.f32 %v573_v61, 0.0  ;;  %v875_v42 = vpack.c.bf16 %v747_v48, %v747_v48 }
 0x1aa   : > { %2119 = vmatmul.bf16.gmra.mxu3 %v2019_v20  ;;  %v398_v20 = vmul.f32 %v5860_v15, %v5662_v60  ;;  %7576 = vst [vmem:[#allocation15_spill] sm:$0xff] %v5987_v28  ;;  %v6007_v45 = vunpack.c.l.bf16 %v2866_v47  ;;  %v702_v39 = vmax.f32 %v574_v24, 0.0  ;;  %v430_v56 = vmul.f32 %v5902_v59, %v5662_v60 }
 0x1ab   : > { %v859_v2 = vpack.c.bf16 %v731_v40, %v731_v40  ;;  %v876_v29 = vpack.c.bf16 %v748_v30, %v748_v30  ;;  %v717_v12 = vmax.f32 %v589_v50, 0.0  ;;  %v829_v40 = vpack.c.bf16 %v701_v36, %v701_v36 }
 0x1ac   : > { %v590_v13 = vadd.f32 %v5711_v4, %v398_v20  ;;  %7577 = vst [vmem:[#allocation14_spill] sm:$0xff] %v6007_v45  ;;  %v605_v23 = vadd.f32 %v5685_v18, %v413_v16  ;;  %v2578_v61 = vunpack.c.l.b16 %v875_v42  ;;  %v384_v60 = vmul.f32 %v5846_v35, %v5707_v44 }
 0x1ad   : > { %v2433_v37 = vunpack.c.l.b16 %v859_v2  ;;  %v3131_v41 = vmax.f32 %v5980_v5, %v6007_v45  ;;  %v830_v47 = vpack.c.bf16 %v702_v39, %v702_v39  ;;  %v734_v24 = vmax.f32 %v606_v10, 0.0 }
 0x1ae   : > { %v718_v63 = vmax.f32 %v590_v13, 0.0  ;;  %v622_v34 = vadd.f32 %v5711_v4, %v430_v56  ;;  %v2579_v2 = vunpack.c.l.b16 %v876_v29  ;;  %v845_v30 = vpack.c.bf16 %v717_v12, %v717_v12 }
 0x1af   : > { %v733_v36 = vmax.f32 %v605_v23, 0.0  ;;  %v399_v4 = vmul.f32 %v5860_v15, %v5690_v14  ;;  %v862_v10 = vpack.c.bf16 %v734_v24, %v734_v24  ;;  %v2146_v12 = vunpack.c.l.b16 %v830_v47 }
 0x1b0   : > { %v846_v50 = vpack.c.bf16 %v718_v63, %v718_v63  ;;  %v750_v56 = vmax.f32 %v622_v34, 0.0  ;;  %v2593_v29 = vpack.c.b16 %v2579_v2, %v2578_v61 }
 0x1b1   : > { %2229 = vmatmul.bf16.vlgmr.msrb.gmra.mxu0 %v5943_v0  ;;  %v429_v0 = vmul.f32 %v5902_v59, %v5660_v33  ;;  %v383_v33 = vmul.f32 %v5846_v35, %v5690_v14  ;;  %v591_v24 = vadd.f32 %v5738_v52, %v399_v4  ;;  %v2436_v43 = vunpack.c.l.b16 %v862_v10 }
 0x1b2   : > { %v2291_v23 = vunpack.c.l.b16 %v846_v50 }
 0x1b3   : > { %v621_v20 = vadd.f32 %v5685_v18, %v429_v0  ;;  %v2145_v18 = vunpack.c.l.b16 %v829_v40  ;;  %v575_v13 = vadd.f32 %v5738_v52, %v383_v33  ;;  %v576_v0 = vadd.f32 %v5716_v46, %v384_v60 }
 0x1b4   : > { %2374 = vmatmul.bf16.vlgmr.msrb.gmra.mxu1 %v2302_v27  ;;  %v6018_v27 = vpack.c.b16 %v2434_v17, %v2433_v37  ;;  %v2290_v40 = vunpack.c.l.b16 %v845_v30  ;;  %v861_v33 = vpack.c.bf16 %v733_v36, %v733_v36  ;;  %v416_v30 = vmul.f32 %v5876_v21, %v5707_v44 }
 0x1b5   : > { %v749_v42 = vmax.f32 %v621_v20, 0.0  ;;  %v703_v20 = vmax.f32 %v575_v13, 0.0  ;;  %v6048_v2 = vpack.c.b16 %v2146_v12, %v2145_v18 }
 0x1b6   : > { %v6060_v36 = vpack.c.b16 %v2291_v23, %v2290_v40  ;;  %v2435_v13 = vunpack.c.l.b16 %v861_v33  ;;  %v608_v33 = vadd.f32 %v5716_v46, %v416_v30 }
 0x1b7   : > { %2519 = vmatmul.bf16.vlgmr.msrb.gmra.mxu2 %v5961_v62 }
 0x1b8   : > { %v1655_v48 = vpop.f32.mrf.mxu0 }
 0x1b9   : > { %v2707_v62 = vmul.f32 %v1655_v48, %v7551_v19  ;;  %v877_v48 = vpack.c.bf16 %v749_v42, %v749_v42 }
 0x1ba   : > { %2664 = vmatmul.bf16.vlgmr.msrb.gmra.mxu3 %v5963_v6  ;;  %v400_v6 = vmul.f32 %v5860_v15, %v5707_v44 }
 0x1bb   : > { %v2835_v16 = vpack.c.bf16 %v2707_v62, %v2707_v62  ;;  %v1800_v17 = vpop.f32.mrf.mxu1  ;;  %v704_v62 = vmax.f32 %v576_v0, 0.0  ;;  %v2580_v18 = vunpack.c.l.b16 %v877_v48 }
 0x1bc   : > { %v2723_v39 = vmul.f32 %v1800_v17, %v7552_v22  ;;  %v592_v61 = vadd.f32 %v5716_v46, %v400_v6  ;;  %v6064_v6 = vpack.c.b16 %v2436_v43, %v2435_v13 }
 0x1bd   : > { %v6037_v37 = vunpack.c.l.bf16 %v2835_v16  ;;  %v878_v16 = vpack.c.bf16 %v750_v56, %v750_v56  ;;  %v832_v4 = vpack.c.bf16 %v704_v62, %v704_v62  ;;  %v432_v62 = vmul.f32 %v5902_v59, %v5707_v44 }
 0x1be   : > { %v2851_v63 = vpack.c.bf16 %v2723_v39, %v2723_v39  ;;  %v719_v39 = vmax.f32 %v591_v24, 0.0 }
 0x1bf   : > { %v6040_v60 = vmax.f32 %v3089_v9, %v6037_v37  ;;  %v415_v9 = vmul.f32 %v5876_v21, %v5690_v14  ;;  %v2581_v12 = vunpack.c.l.b16 %v878_v16  ;;  %v2148_v16 = vunpack.c.l.b16 %v832_v4 }
 0x1c0   : > { %v6043_v34 = vunpack.c.l.bf16 %v2851_v63  ;;  %v1657_v17 = vpop.f32.mrf.mxu0  ;;  %v720_v63 = vmax.f32 %v592_v61, 0.0  ;;  %v847_v61 = vpack.c.bf16 %v719_v39, %v719_v39  ;;  %v624_v4 = vadd.f32 %v5716_v46, %v432_v62 }
 0x1c1   : > { %2234 = vmatmul.bf16.gmra.mxu0 %v5972_v49  ;;  %v2708_v47 = vmul.f32 %v1657_v17, %v7551_v19  ;;  %v831_v49 = vpack.c.bf16 %v703_v20, %v703_v20  ;;  %v607_v23 = vadd.f32 %v5738_v52, %v415_v9 }
 0x1c2   : > { %v6058_v50 = vmax.f32 %v3110_v3, %v6043_v34  ;;  %v848_v30 = vpack.c.bf16 %v720_v63, %v720_v63 }
 0x1c3   : > { %v2836_v42 = vpack.c.bf16 %v2708_v47, %v2708_v47  ;;  %v1802_v0 = vpop.f32.mrf.mxu1  ;;  %v2147_v48 = vunpack.c.l.b16 %v831_v49  ;;  %v735_v44 = vmax.f32 %v607_v23, 0.0  ;;  %v736_v49 = vmax.f32 %v608_v33, 0.0 }
 0x1c4   : > { %2379 = vmatmul.bf16.gmra.mxu1 %v5991_v53  ;;  %v1945_v10 = vpop.f32.mrf.mxu2  ;;  %v2724_v56 = vmul.f32 %v1802_v0, %v7552_v22  ;;  %v431_v53 = vmul.f32 %v5902_v59, %v5690_v14  ;;  %v386_v14 = vmul.f32 %v5846_v35, %v5760_v38  ;;  %v2292_v23 = vunpack.c.l.b16 %v847_v61 }
 0x1c5   : > { %v2739_v3 = vmul.f32 %v1945_v10, %v7553_v26  ;;  %v6067_v40 = vunpack.c.l.bf16 %v2836_v42  ;;  %v6097_v10 = vpack.c.b16 %v2581_v12, %v2580_v18  ;;  %v2293_v33 = vunpack.c.l.b16 %v848_v30 }
 0x1c6   : > { %v2852_v20 = vpack.c.bf16 %v2724_v56, %v2724_v56  ;;  %v623_v0 = vadd.f32 %v5738_v52, %v431_v53  ;;  %v6099_v56 = vpack.c.b16 %v2148_v16, %v2147_v48  ;;  %v578_v52 = vadd.f32 %v5763_v54, %v386_v14 }
 0x1c7   : > { %2524 = vmatmul.bf16.gmra.mxu2 %v6018_v27  ;;  %v2867_v43 = vpack.c.bf16 %v2739_v3, %v2739_v3  ;;  %v2090_v24 = vpop.f32.mrf.mxu3  ;;  %v3091_v17 = vmax.f32 %v6040_v60, %v6067_v40  ;;  %v385_v27 = vmul.f32 %v5846_v35, %v5734_v57  ;;  %v6108_v53 = vpack.c.bf16 %v736_v49, %v736_v49 }
 0x1c8   : > { %v2755_v47 = vmul.f32 %v2090_v24, %v5479_v31  ;;  %v6079_v9 = vunpack.c.l.bf16 %v2852_v20  ;;  %v6106_v20 = vpack.c.bf16 %v735_v44, %v735_v44  ;;  %v7581_v18 = vmax.f32 %v5987_v28, %v6012_v32 }
 0x1c9   : > { %v6083_v13 = vunpack.c.l.bf16 %v2867_v43  ;;  %v751_v62 = vmax.f32 %v623_v0, 0.0  ;;  %v752_v43 = vmax.f32 %v624_v4, 0.0  ;;  %v401_v24 = vmul.f32 %v5860_v15, %v5734_v57 }
 0x1ca   : > { %2669 = vmatmul.bf16.gmra.mxu3 %v2593_v29  ;;  %v2883_v42 = vpack.c.bf16 %v2755_v47, %v2755_v47  ;;  %v577_v29 = vadd.f32 %v5743_v11, %v385_v27  ;;  %v418_v14 = vmul.f32 %v5876_v21, %v5760_v38  ;;  %v706_v49 = vmax.f32 %v578_v52, 0.0 }
 0x1cb   : > { %7579 = vst [vmem:[#allocation19_spill] sm:$0xff] %v6083_v13  ;;  %v6095_v39 = vmax.f32 %v3131_v41, %v6083_v13  ;;  %v402_v41 = vmul.f32 %v5860_v15, %v5760_v38  ;;  %v593_v27 = vadd.f32 %v5743_v11, %v401_v24 }
 0x1cc   : > { %v6102_v63 = vunpack.c.l.bf16 %v2883_v42  ;;  %v1947_v3 = vpop.f32.mrf.mxu2  ;;  %v705_v30 = vmax.f32 %v577_v29, 0.0  ;;  %v417_v42 = vmul.f32 %v5876_v21, %v5734_v57 }
 0x1cd   : > { %v2740_v46 = vmul.f32 %v1947_v3, %v7553_v26  ;;  %v594_v29 = vadd.f32 %v5763_v54, %v402_v41 }
 0x1ce   : > { %7580 = vst [vmem:[#allocation20_spill] sm:$0xff] %v6102_v63  ;;  %v6116_v12 = vmax.f32 %v7581_v18, %v6102_v63  ;;  %v1660_v48 = vpop.f32.mrf.mxu0  ;;  %v609_v52 = vadd.f32 %v5743_v11, %v417_v42 }
 0x1cf   : > { %v2868_v16 = vpack.c.bf16 %v2740_v46, %v2740_v46  ;;  %v2092_v61 = vpop.f32.mrf.mxu3  ;;  %v2709_v47 = vmul.f32 %v1660_v48, %v7551_v19  ;;  %v6130_v46 = vpack.c.b16 %v2293_v33, %v2292_v23  ;;  %v834_v23 = vpack.c.bf16 %v706_v49, %v706_v49 }
 0x1d0   : > { %v2756_v44 = vmul.f32 %v2092_v61, %v5479_v31  ;;  %v880_v61 = vpack.c.bf16 %v752_v43, %v752_v43  ;;  %v721_v33 = vmax.f32 %v593_v27, 0.0  ;;  %v2438_v43 = vunpack.c.l.b16 %v6108_v53 }
 0x1d1   : > { %v6127_v0 = vunpack.c.l.bf16 %v2868_v16  ;;  %v2837_v4 = vpack.c.bf16 %v2709_v47, %v2709_v47  ;;  %v1805_v3 = vpop.f32.mrf.mxu1  ;;  %2239 = vmatmul.bf16.gmra.mxu0 %v6048_v2  ;;  %v833_v16 = vpack.c.bf16 %v705_v30, %v705_v30  ;;  %v610_v47 = vadd.f32 %v5763_v54, %v418_v14 }
 0x1d2   : > { %v2884_v18 = vpack.c.bf16 %v2756_v44, %v2756_v44  ;;  %v2725_v48 = vmul.f32 %v1805_v3, %v7552_v22  ;;  %v879_v44 = vpack.c.bf16 %v751_v62, %v751_v62  ;;  %v722_v42 = vmax.f32 %v594_v29, 0.0 }
 0x1d3   : > { %7582 = vst [vmem:[#allocation21_spill] sm:$0xff] %v6127_v0  ;;  %v6137_v60 = vunpack.c.l.bf16 %v2837_v4  ;;  %v737_v3 = vmax.f32 %v609_v52, 0.0  ;;  %v738_v49 = vmax.f32 %v610_v47, 0.0  ;;  %v433_v53 = vmul.f32 %v5902_v59, %v5734_v57 }
 0x1d4   : > { %v6140_v32 = vunpack.c.l.bf16 %v2884_v18  ;;  %v2853_v2 = vpack.c.bf16 %v2725_v48, %v2725_v48  ;;  %2384 = vmatmul.bf16.gmra.mxu1 %v6060_v36  ;;  %v434_v18 = vmul.f32 %v5902_v59, %v5760_v38  ;;  %v7584_v62 = vmax.f32 %v6058_v50, %v6079_v9 }
 0x1d5   : > { %v6144_v41 = vmax.f32 %v3091_v17, %v6137_v60  ;;  %v2583_v17 = vunpack.c.l.b16 %v880_v61  ;;  %v2149_v29 = vunpack.c.l.b16 %v833_v16  ;;  %v2150_v48 = vunpack.c.l.b16 %v834_v23 }
 0x1d6   : > { %7583 = vst [vmem:[#allocation22_spill] sm:$0xff] %v6140_v32  ;;  %v6149_v30 = vunpack.c.l.bf16 %v2853_v2  ;;  %v1662_v14 = vpop.f32.mrf.mxu0  ;;  %v849_v52 = vpack.c.bf16 %v721_v33, %v721_v33  ;;  %v850_v4 = vpack.c.bf16 %v722_v42, %v722_v42  ;;  %v625_v61 = vadd.f32 %v5743_v11, %v433_v53 }
 0x1d7   : > { %2529 = vmatmul.bf16.gmra.mxu2 %v6064_v6  ;;  %v2710_v36 = vmul.f32 %v1662_v14, %v7551_v19  ;;  %v2437_v6 = vunpack.c.l.b16 %v6106_v20  ;;  %v2582_v14 = vunpack.c.l.b16 %v879_v44  ;;  %v865_v24 = vpack.c.bf16 %v737_v3, %v737_v3 }
 0x1d8   : > { %v6161_v27 = vmax.f32 %v7584_v62, %v6149_v30  ;;  %v626_v50 = vadd.f32 %v5763_v54, %v434_v18  ;;  %v6173_v42 = vpack.c.b16 %v2150_v48, %v2149_v29  ;;  %v2294_v11 = vunpack.c.l.b16 %v849_v52  ;;  %v7586_v48 = vld [vmem:[#allocation2_spill] sm:$0xff] }
 0x1d9   : > { %v2838_v2 = vpack.c.bf16 %v2710_v36, %v2710_v36  ;;  %v1807_v38 = vpop.f32.mrf.mxu1  ;;  %v2450_v33 = vpack.c.b16 %v2438_v43, %v2437_v6  ;;  %v866_v36 = vpack.c.bf16 %v738_v49, %v738_v49  ;;  %v6171_v20 = vpack.c.b16 %v2583_v17, %v2582_v14 }
 0x1da   : > { %2674 = vmatmul.bf16.gmra.mxu3 %v6097_v10  ;;  %v1950_v47 = vpop.f32.mrf.mxu2  ;;  %v2726_v57 = vmul.f32 %v1807_v38, %v7552_v22  ;;  %v2295_v3 = vunpack.c.l.b16 %v850_v4  ;;  %v753_v38 = vmax.f32 %v625_v61, 0.0  ;;  %v2439_v43 = vunpack.c.l.b16 %v865_v24  ;;  %v7587_v4 = vld [vmem:[#allocation3_spill] sm:$0xff] }
 0x1db   : > { %v2741_v16 = vmul.f32 %v1950_v47, %v7553_v26  ;;  %v6169_v23 = vunpack.c.l.bf16 %v2838_v2  ;;  %v754_v49 = vmax.f32 %v626_v50, 0.0  ;;  %v2440_v29 = vunpack.c.l.b16 %v866_v36 }
 0x1dc   : > { %v2854_v62 = vpack.c.bf16 %v2726_v57, %v2726_v57  ;;  %v387_v52 = vmul.f32 %v5846_v35, %v7586_v48  ;;  %v388_v61 = vmul.f32 %v5846_v35, %v7587_v4  ;;  %v403_v57 = vmul.f32 %v5860_v15, %v7586_v48 }
 0x1dd   : > { %v2869_v10 = vpack.c.bf16 %v2741_v16, %v2741_v16  ;;  %v2095_v53 = vpop.f32.mrf.mxu3  ;;  %v3093_v44 = vmax.f32 %v6144_v41, %v6169_v23  ;;  %v7588_v24 = vmax.f32 %v6095_v39, %v6127_v0  ;;  %v6198_v36 = vpack.c.bf16 %v753_v38, %v753_v38 }
 0x1de   : > { %v2757_v54 = vmul.f32 %v2095_v53, %v5479_v31  ;;  %v6178_v18 = vunpack.c.l.bf16 %v2854_v62  ;;  %v1665_v2 = vpop.f32.mrf.mxu0 }
 0x1df   : > { %v6180_v6 = vunpack.c.l.bf16 %v2869_v10  ;;  %v2711_v17 = vmul.f32 %v1665_v2, %v7551_v19  ;;  %v6207_v2 = vpack.c.bf16 %v754_v49, %v754_v49 }
 0x1e0   : > { %v2885_v47 = vpack.c.bf16 %v2757_v54, %v2757_v54  ;;  %v3114_v41 = vmax.f32 %v6161_v27, %v6178_v18  ;;  %v404_v27 = vmul.f32 %v5860_v15, %v7587_v4  ;;  %v6205_v54 = vpack.c.b16 %v2295_v3, %v2294_v11  ;;  %v7592_v11 = vld [vmem:[#allocation8_spill] sm:$0xff] }
 0x1e1   : > { %7585 = vst [vmem:[#allocation23_spill] sm:$0xff] %v6180_v6  ;;  %v6195_v14 = vmax.f32 %v7588_v24, %v6180_v6  ;;  %v2839_v50 = vpack.c.bf16 %v2711_v17, %v2711_v17  ;;  %v1810_v16 = vpop.f32.mrf.mxu1  ;;  %2244 = vmatmul.bf16.gmra.mxu0 %v6099_v56  ;;  %v6212_v24 = vpack.c.b16 %v2440_v29, %v2439_v43  ;;  %v7590_v56 = vld [vmem:[#allocation17_spill] sm:$0xff] }
 0x1e2   : > { %v6202_v62 = vunpack.c.l.bf16 %v2885_v47  ;;  %v1952_v10 = vpop.f32.mrf.mxu2  ;;  %v2727_v53 = vmul.f32 %v1810_v16, %v7552_v22  ;;  %v579_v38 = vadd.f32 %v7590_v56, %v387_v52  ;;  %v7591_v47 = vmax.f32 %v6116_v12, %v6140_v32 }
 0x1e3   : > { %v2742_v39 = vmul.f32 %v1952_v10, %v7553_v26  ;;  %v6210_v17 = vunpack.c.l.bf16 %v2839_v50  ;;  %v580_v3 = vadd.f32 %v7592_v11, %v388_v61  ;;  %v595_v49 = vadd.f32 %v7590_v56, %v403_v57 }
 0x1e4   : > { %7589 = vst [vmem:[#allocation2_spill] sm:$0xff] %v6202_v62  ;;  %v6219_v63 = vmax.f32 %v7591_v47, %v6202_v62  ;;  %v2855_v28 = vpack.c.bf16 %v2727_v53, %v2727_v53  ;;  %2389 = vmatmul.bf16.gmra.mxu1 %v6130_v46  ;;  %v596_v52 = vadd.f32 %v7592_v11, %v404_v27  ;;  %v2585_v46 = vunpack.c.l.b16 %v6207_v2 }
 0x1e5   : > { %v2870_v16 = vpack.c.bf16 %v2742_v39, %v2742_v39  ;;  %v2097_v50 = vpop.f32.mrf.mxu3  ;;  %v6225_v43 = vmax.f32 %v3093_v44, %v6210_v17  ;;  %v419_v61 = vmul.f32 %v5876_v21, %v7586_v48  ;;  %v707_v39 = vmax.f32 %v579_v38, 0.0 }
 0x1e6   : > { %v2758_v12 = vmul.f32 %v2097_v50, %v5479_v31  ;;  %v6230_v10 = vunpack.c.l.bf16 %v2855_v28  ;;  %v1667_v53 = vpop.f32.mrf.mxu0  ;;  %v420_v47 = vmul.f32 %v5876_v21, %v7587_v4  ;;  %v708_v28 = vmax.f32 %v580_v3, 0.0 }
 0x1e7   : > { %v6235_v57 = vunpack.c.l.bf16 %v2870_v16  ;;  %2534 = vmatmul.bf16.gmra.mxu2 %v2450_v33  ;;  %v2712_v44 = vmul.f32 %v1667_v53, %v7551_v19  ;;  %v723_v29 = vmax.f32 %v595_v49, 0.0  ;;  %v724_v16 = vmax.f32 %v596_v52, 0.0 }
 0x1e8   : > { %v2886_v27 = vpack.c.bf16 %v2758_v12, %v2758_v12  ;;  %v6241_v50 = vmax.f32 %v3114_v41, %v6230_v10  ;;  %v435_v33 = vmul.f32 %v5902_v59, %v7586_v48  ;;  %v611_v41 = vadd.f32 %v7590_v56, %v419_v61 }
 0x1e9   : > { %7593 = vst [vmem:[#allocation3_spill] sm:$0xff] %v6235_v57  ;;  %v3135_v2 = vmax.f32 %v6195_v14, %v6235_v57  ;;  %v2840_v62 = vpack.c.bf16 %v2712_v44, %v2712_v44  ;;  %v1812_v32 = vpop.f32.mrf.mxu1  ;;  %v436_v3 = vmul.f32 %v5902_v59, %v7587_v4  ;;  %v835_v52 = vpack.c.bf16 %v707_v39, %v707_v39 }
 0x1ea   : > { %v6247_v53 = vunpack.c.l.bf16 %v2886_v27  ;;  %2679 = vmatmul.bf16.gmra.mxu3 %v6171_v20  ;;  %v1955_v38 = vpop.f32.mrf.mxu2  ;;  %v2728_v12 = vmul.f32 %v1812_v32, %v7552_v22  ;;  %v612_v44 = vadd.f32 %v7592_v11, %v420_v47  ;;  %v836_v20 = vpack.c.bf16 %v708_v28, %v708_v28 }
 0x1eb   : > { %v2743_v14 = vmul.f32 %v1955_v38, %v7553_v26  ;;  %v6255_v49 = vunpack.c.l.bf16 %v2840_v62  ;;  %v851_v57 = vpack.c.bf16 %v723_v29, %v723_v29  ;;  %v852_v0 = vpack.c.bf16 %v724_v16, %v724_v16 }
 0x1ec   : > { %7594 = vst [vmem:[#allocation17_spill] sm:$0xff] %v6247_v53  ;;  %v3156_v48 = vmax.f32 %v6219_v63, %v6247_v53  ;;  %v2856_v27 = vpack.c.bf16 %v2728_v12, %v2728_v12  ;;  %v627_v4 = vadd.f32 %v7590_v56, %v435_v33  ;;  %v739_v47 = vmax.f32 %v611_v41, 0.0 }
 0x1ed   : > { %v2871_v6 = vpack.c.bf16 %v2743_v14, %v2743_v14  ;;  %v2100_v32 = vpop.f32.mrf.mxu3  ;;  %v3095_v61 = vmax.f32 %v6225_v43, %v6255_v49  ;;  %v628_v13 = vadd.f32 %v7592_v11, %v436_v3  ;;  %v2151_v28 = vunpack.c.l.b16 %v835_v52 }
 0x1ee   : > { %v2759_v62 = vmul.f32 %v2100_v32, %v5479_v31  ;;  %v6264_v38 = vunpack.c.l.bf16 %v2856_v27  ;;  %v1670_v39 = vpop.f32.mrf.mxu0  ;;  %v740_v12 = vmax.f32 %v612_v44, 0.0  ;;  %v2152_v16 = vunpack.c.l.b16 %v836_v20 }
 0x1ef   : > { %v6267_v63 = vunpack.c.l.bf16 %v2871_v6  ;;  %v2713_v29 = vmul.f32 %v1670_v39, %v7551_v19  ;;  %v2296_v56 = vunpack.c.l.b16 %v851_v57  ;;  %v2297_v11 = vunpack.c.l.b16 %v852_v0 }
 0x1f0   : > { %7595 = vst [vmem:[#allocation8_spill] sm:$0xff] %v6264_v38  ;;  %v2887_v14 = vpack.c.bf16 %v2759_v62, %v2759_v62  ;;  %v3116_v43 = vmax.f32 %v6241_v50, %v6264_v38  ;;  %v755_v6 = vmax.f32 %v627_v4, 0.0  ;;  %v867_v44 = vpack.c.bf16 %v739_v47, %v739_v47  ;;  %v7599_v4 = vld [vmem:[#allocation4_spill] sm:$0xff] }
 0x1f1   : > { %7596 = vst [vmem:[#allocation24_spill] sm:$0xff] %v6267_v63  ;;  %v6273_v33 = vmax.f32 %v3135_v2, %v6267_v63  ;;  %v2841_v27 = vpack.c.bf16 %v2713_v29, %v2713_v29  ;;  %v1815_v32 = vpop.f32.mrf.mxu1  ;;  %2249 = vmatmul.bf16.gmra.mxu0 %v6173_v42  ;;  %v756_v62 = vmax.f32 %v628_v13, 0.0  ;;  %v7598_v57 = vunpack.c.l.b16 %v6198_v36 }
 0x1f2   : > { %v6276_v41 = vunpack.c.l.bf16 %v2887_v14  ;;  %v1957_v3 = vpop.f32.mrf.mxu2  ;;  %v2729_v52 = vmul.f32 %v1815_v32, %v7552_v22  ;;  %v868_v39 = vpack.c.bf16 %v740_v12, %v740_v12  ;;  %v2162_v42 = vpack.c.b16 %v2152_v16, %v2151_v28 }
 0x1f3   : > { %v2744_v50 = vmul.f32 %v1957_v3, %v7553_v26  ;;  %v6280_v20 = vunpack.c.l.bf16 %v2841_v27  ;;  %v2596_v2 = vpack.c.b16 %v2585_v46, %v7598_v57  ;;  %v389_v14 = vmul.f32 %v5846_v35, %v7599_v4 }
 0x1f4   : > { %7597 = vst [vmem:[#allocation25_spill] sm:$0xff] %v6276_v41  ;;  %v6285_v29 = vmax.f32 %v3156_v48, %v6276_v41  ;;  %v2857_v0 = vpack.c.bf16 %v2729_v52, %v2729_v52  ;;  %2394 = vmatmul.bf16.gmra.mxu1 %v6205_v54  ;;  %v6293_v27 = vpack.c.b16 %v2297_v11, %v2296_v56  ;;  %v2441_v3 = vunpack.c.l.b16 %v867_v44 }
 0x1f5   : > { %v2872_v47 = vpack.c.bf16 %v2744_v50, %v2744_v50  ;;  %v2102_v13 = vpop.f32.mrf.mxu3  ;;  %v6291_v32 = vmax.f32 %v3095_v61, %v6280_v20  ;;  %v883_v36 = vpack.c.bf16 %v755_v6, %v755_v6  ;;  %v884_v52 = vpack.c.bf16 %v756_v62, %v756_v62  ;;  %v7602_v50 = vld [vmem:[#allocation13_spill] sm:$0xff]  ;;  %v7603_v6 = vld [vmem:[#allocation6_spill] sm:$0xff] }
 0x1f6   : > { %v2760_v46 = vmul.f32 %v2102_v13, %v5479_v31  ;;  %v6296_v12 = vunpack.c.l.bf16 %v2857_v0  ;;  %v1672_v48 = vpop.f32.mrf.mxu0  ;;  %v2442_v16 = vunpack.c.l.b16 %v868_v39  ;;  %v390_v61 = vmul.f32 %v5846_v35, %v7602_v50 }
 0x1f7   : > { %v6298_v54 = vunpack.c.l.bf16 %v2872_v47  ;;  %2539 = vmatmul.bf16.gmra.mxu2 %v6212_v24  ;;  %v2714_v28 = vmul.f32 %v1672_v48, %v7551_v19  ;;  %v581_v57 = vadd.f32 %v7603_v6, %v389_v14  ;;  %v405_v44 = vmul.f32 %v5860_v15, %v7599_v4 }
 0x1f8   : > { %7600 = vst [vmem:[#allocation4_spill] sm:$0xff] %v6296_v12  ;;  %v2888_v56 = vpack.c.bf16 %v2760_v46, %v2760_v46  ;;  %v6305_v11 = vmax.f32 %v3116_v43, %v6296_v12  ;;  %v2586_v47 = vunpack.c.l.b16 %v883_v36  ;;  %v406_v39 = vmul.f32 %v5860_v15, %v7602_v50 }
 0x1f9   : > { %7601 = vst [vmem:[#allocation26_spill] sm:$0xff] %v6298_v54  ;;  %v3137_v62 = vmax.f32 %v6273_v33, %v6298_v54  ;;  %v2842_v0 = vpack.c.bf16 %v2714_v28, %v2714_v28  ;;  %v1817_v24 = vpop.f32.mrf.mxu1  ;;  %v2587_v48 = vunpack.c.l.b16 %v884_v52  ;;  %v421_v14 = vmul.f32 %v5876_v21, %v7599_v4  ;;  %v7605_v33 = vld [vmem:[#allocation7_spill] sm:$0xff] }
 0x1fa   : > { %v6314_v13 = vunpack.c.l.bf16 %v2888_v56  ;;  %2684 = vmatmul.bf16.gmra.mxu3 %v2596_v2  ;;  %v1960_v46 = vpop.f32.mrf.mxu2  ;;  %v2730_v43 = vmul.f32 %v1817_v24, %v7552_v22  ;;  %v582_v28 = vadd.f32 %v7605_v33, %v390_v61  ;;  %v422_v36 = vmul.f32 %v5876_v21, %v7602_v50 }
 0x1fb   : > { %v2745_v41 = vmul.f32 %v1960_v46, %v7553_v26  ;;  %v6320_v53 = vunpack.c.l.bf16 %v2842_v0  ;;  %v2452_v54 = vpack.c.b16 %v2442_v16, %v2441_v3  ;;  %v597_v24 = vadd.f32 %v7603_v6, %v405_v44 }
 0x1fc   : > { %7604 = vst [vmem:[#allocation13_spill] sm:$0xff] %v6314_v13  ;;  %v3158_v56 = vmax.f32 %v6285_v29, %v6314_v13  ;;  %v2858_v2 = vpack.c.bf16 %v2730_v43, %v2730_v43  ;;  %v709_v46 = vmax.f32 %v581_v57, 0.0  ;;  %v598_v0 = vadd.f32 %v7605_v33, %v406_v39 }
 0x1fd   : > { %v2873_v52 = vpack.c.bf16 %v2745_v41, %v2745_v41  ;;  %v2105_v63 = vpop.f32.mrf.mxu3  ;;  %v3097_v45 = vmax.f32 %v6291_v32, %v6320_v53  ;;  %v2597_v38 = vpack.c.b16 %v2587_v48, %v2586_v47  ;;  %v613_v29 = vadd.f32 %v7603_v6, %v421_v14 }
 0x1fe   : > { %v2761_v61 = vmul.f32 %v2105_v63, %v5479_v31  ;;  %v6332_v5 = vunpack.c.l.bf16 %v2858_v2  ;;  %v1675_v12 = vpop.f32.mrf.mxu0  ;;  %v710_v41 = vmax.f32 %v582_v28, 0.0  ;;  %v614_v16 = vadd.f32 %v7605_v33, %v422_v36 }
 0x1ff   : > { %v6335_v43 = vunpack.c.l.bf16 %v2873_v52  ;;  %v2715_v3 = vmul.f32 %v1675_v12, %v7551_v19  ;;  %v725_v57 = vmax.f32 %v597_v24, 0.0  ;;  %v437_v63 = vmul.f32 %v5902_v59, %v7599_v4 }
 0x200   : > { %v2889_v44 = vpack.c.bf16 %v2761_v61, %v2761_v61  ;;  %v3118_v32 = vmax.f32 %v6305_v11, %v6332_v5  ;;  %v726_v14 = vmax.f32 %v598_v0, 0.0  ;;  %v438_v12 = vmul.f32 %v5902_v59, %v7602_v50 }
 0x201   : > { %v6344_v39 = vmax.f32 %v3137_v62, %v6335_v43  ;;  %v2843_v47 = vpack.c.bf16 %v2715_v3, %v2715_v3  ;;  %v1820_v48 = vpop.f32.mrf.mxu1  ;;  %2254 = vmatmul.bf16.gmra.mxu0 %v2162_v42  ;;  %v837_v11 = vpack.c.bf16 %v709_v46, %v709_v46  ;;  %v741_v24 = vmax.f32 %v613_v29, 0.0 }
 0x202   : > { %v6348_v28 = vunpack.c.l.bf16 %v2889_v44  ;;  %v1962_v36 = vpop.f32.mrf.mxu2  ;;  %v2731_v2 = vmul.f32 %v1820_v48, %v7552_v22  ;;  %v838_v62 = vpack.c.bf16 %v710_v41, %v710_v41  ;;  %v742_v61 = vmax.f32 %v614_v16, 0.0 }
 0x203   : > { %v2746_v52 = vmul.f32 %v1962_v36, %v7553_v26  ;;  %v6352_v4 = vunpack.c.l.bf16 %v2843_v47  ;;  %v853_v50 = vpack.c.bf16 %v725_v57, %v725_v57  ;;  %v629_v0 = vadd.f32 %v7603_v6, %v437_v63 }
 0x204   : > { %v6355_v3 = vmax.f32 %v3158_v56, %v6348_v28  ;;  %v2859_v42 = vpack.c.bf16 %v2731_v2, %v2731_v2  ;;  %2399 = vmatmul.bf16.gmra.mxu1 %v6293_v27  ;;  %v854_v29 = vpack.c.bf16 %v726_v14, %v726_v14  ;;  %v630_v47 = vadd.f32 %v7605_v33, %v438_v12 }
 0x205   : > { %v2874_v44 = vpack.c.bf16 %v2746_v52, %v2746_v52  ;;  %v2107_v13 = vpop.f32.mrf.mxu3  ;;  %v6360_v46 = vmax.f32 %v3097_v45, %v6352_v4  ;;  %v2153_v48 = vunpack.c.l.b16 %v837_v11  ;;  %v869_v36 = vpack.c.bf16 %v741_v24, %v741_v24 }
 0x206   : > { %v2762_v41 = vmul.f32 %v2107_v13, %v5479_v31  ;;  %v6364_v16 = vunpack.c.l.bf16 %v2859_v42  ;;  %v1677_v56 = vpop.f32.mrf.mxu0  ;;  %v2154_v6 = vunpack.c.l.b16 %v838_v62  ;;  %v870_v57 = vpack.c.bf16 %v742_v61, %v742_v61 }
 0x207   : > { %v6366_v2 = vunpack.c.l.bf16 %v2874_v44  ;;  %2544 = vmatmul.bf16.gmra.mxu2 %v2452_v54  ;;  %v2716_v27 = vmul.f32 %v1677_v56, %v7551_v19  ;;  %v2298_v14 = vunpack.c.l.b16 %v853_v50  ;;  %v757_v33 = vmax.f32 %v629_v0, 0.0 }
 0x208   : > { %v2890_v63 = vpack.c.bf16 %v2762_v41, %v2762_v41  ;;  %v6370_v45 = vmax.f32 %v3118_v32, %v6364_v16  ;;  %v2299_v11 = vunpack.c.l.b16 %v854_v29  ;;  %v758_v24 = vmax.f32 %v630_v47, 0.0 }
 0x209   : > { %v3139_v13 = vmax.f32 %v6344_v39, %v6366_v2  ;;  %v2844_v12 = vpack.c.bf16 %v2716_v27, %v2716_v27  ;;  %v1822_v52 = vpop.f32.mrf.mxu1  ;;  %v2443_v61 = vunpack.c.l.b16 %v869_v36  ;;  %v391_v32 = vmul.f32 %v5846_v35, %v5829_v8 }
 0x20a   : > { %v6374_v42 = vunpack.c.l.bf16 %v2890_v63  ;;  %2689 = vmatmul.bf16.gmra.mxu3 %v2597_v38  ;;  %v1965_v54 = vpop.f32.mrf.mxu2  ;;  %v2732_v62 = vmul.f32 %v1822_v52, %v7552_v22  ;;  %v2444_v44 = vunpack.c.l.b16 %v870_v57  ;;  %v392_v39 = vmul.f32 %v5846_v35, %v5848_v25 }
 0x20b   : > { %v2747_v50 = vmul.f32 %v1965_v54, %v7553_v26  ;;  %v6380_v0 = vunpack.c.l.bf16 %v2844_v12  ;;  %v2163_v38 = vpack.c.b16 %v2154_v6, %v2153_v48  ;;  %v885_v41 = vpack.c.bf16 %v757_v33, %v757_v33  ;;  %v7607_v33 = vld [vmem:[#allocation5_spill] sm:$0xff] }
 0x20c   : > { %7606 = vst [vmem:[#allocation6_spill] sm:$0xff] %v6374_v42  ;;  %v3160_v29 = vmax.f32 %v6355_v3, %v6374_v42  ;;  %v2860_v47 = vpack.c.bf16 %v2732_v62, %v2732_v62  ;;  %v2308_v63 = vpack.c.b16 %v2299_v11, %v2298_v14  ;;  %v886_v52 = vpack.c.bf16 %v758_v24, %v758_v24 }
 0x20d   : > { %v2875_v56 = vpack.c.bf16 %v2747_v50, %v2747_v50  ;;  %v2110_v27 = vpop.f32.mrf.mxu3  ;;  %v3099_v36 = vmax.f32 %v6360_v46, %v6380_v0  ;;  %v583_v35 = vadd.f32 %v5881_v58, %v391_v32  ;;  %v408_v3 = vmul.f32 %v5860_v15, %v5848_v25 }
 0x20e   : > { %v2763_v12 = vmul.f32 %v2110_v27, %v5479_v31  ;;  %v6389_v54 = vunpack.c.l.bf16 %v2860_v47  ;;  %v1680_v57 = vpop.f32.mrf.mxu0  ;;  %v2453_v6 = vpack.c.b16 %v2444_v44, %v2443_v61  ;;  %v584_v50 = vadd.f32 %v7607_v33, %v392_v39 }
 0x20f   : > { %v6394_v62 = vunpack.c.l.bf16 %v2875_v56  ;;  %v2717_v48 = vmul.f32 %v1680_v57, %v7551_v19  ;;  %v2588_v11 = vunpack.c.l.b16 %v885_v41  ;;  %v407_v24 = vmul.f32 %v5860_v15, %v5829_v8 }
 0x210   : > { %v2891_v46 = vpack.c.bf16 %v2763_v12, %v2763_v12  ;;  %v3120_v14 = vmax.f32 %v6370_v45, %v6389_v54  ;;  %v2589_v56 = vunpack.c.l.b16 %v886_v52  ;;  %v424_v61 = vmul.f32 %v5876_v21, %v5848_v25 }
 0x211   : > { %v6403_v32 = vmax.f32 %v3139_v13, %v6394_v62  ;;  %v2845_v47 = vpack.c.bf16 %v2717_v48, %v2717_v48  ;;  %v1825_v27 = vpop.f32.mrf.mxu1  ;;  %2259 = vmatmul.bf16.gmra.mxu0 %v2163_v38  ;;  %v711_v45 = vmax.f32 %v583_v35, 0.0  ;;  %v600_v41 = vadd.f32 %v7607_v33, %v408_v3 }
 0x212   : > { %v6407_v44 = vunpack.c.l.bf16 %v2891_v46  ;;  %v1967_v39 = vpop.f32.mrf.mxu2  ;;  %v2733_v12 = vmul.f32 %v1825_v27, %v7552_v22  ;;  %v712_v13 = vmax.f32 %v584_v50, 0.0  ;;  %v423_v38 = vmul.f32 %v5876_v21, %v5829_v8 }
 0x213   : > { %v2748_v57 = vmul.f32 %v1967_v39, %v7553_v26  ;;  %v6412_v15 = vunpack.c.l.bf16 %v2845_v47  ;;  %v599_v46 = vadd.f32 %v5881_v58, %v407_v24  ;;  %v440_v35 = vmul.f32 %v5902_v59, %v5848_v25 }
 0x214   : > { %7608 = vst [vmem:[#allocation7_spill] sm:$0xff] %v6407_v44  ;;  %v6417_v52 = vmax.f32 %v3160_v29, %v6407_v44  ;;  %v2861_v48 = vpack.c.bf16 %v2733_v12, %v2733_v12  ;;  %2404 = vmatmul.bf16.gmra.mxu1 %v2308_v63  ;;  %v2598_v47 = vpack.c.b16 %v2589_v56, %v2588_v11  ;;  %v728_v12 = vmax.f32 %v600_v41, 0.0 }
 0x215   : > { %v2876_v27 = vpack.c.bf16 %v2748_v57, %v2748_v57  ;;  %v2112_v3 = vpop.f32.mrf.mxu3  ;;  %v6423_v39 = vmax.f32 %v3099_v36, %v6412_v15  ;;  %v616_v50 = vadd.f32 %v7607_v33, %v424_v61  ;;  %v439_v63 = vmul.f32 %v5902_v59, %v5829_v8 }
 0x216   : > { %v2764_v21 = vmul.f32 %v2112_v3, %v5479_v31  ;;  %v6427_v42 = vunpack.c.l.bf16 %v2861_v48  ;;  %v1682_v29 = vpop.f32.mrf.mxu0  ;;  %v840_v57 = vpack.c.bf16 %v712_v13, %v712_v13  ;;  %v615_v36 = vadd.f32 %v5881_v58, %v423_v38 }
 0x217   : > { %v6431_v24 = vunpack.c.l.bf16 %v2876_v27  ;;  %2549 = vmatmul.bf16.gmra.mxu2 %v2453_v6  ;;  %v2718_v25 = vmul.f32 %v1682_v29, %v7551_v19  ;;  %v727_v61 = vmax.f32 %v599_v46, 0.0  ;;  %v632_v48 = vadd.f32 %v7607_v33, %v440_v35 }
 0x218   : > { %v2892_v11 = vpack.c.bf16 %v2764_v21, %v2764_v21  ;;  %v6436_v56 = vmax.f32 %v3120_v14, %v6427_v42  ;;  %v839_v27 = vpack.c.bf16 %v711_v45, %v711_v45  ;;  %v744_v59 = vmax.f32 %v616_v50, 0.0 }
 0x219   : > { %v3141_v41 = vmax.f32 %v6403_v32, %v6431_v24  ;;  %v2846_v3 = vpack.c.bf16 %v2718_v25, %v2718_v25  ;;  %v1827_v8 = vpop.f32.mrf.mxu1  ;;  %v856_v21 = vpack.c.bf16 %v728_v12, %v728_v12  ;;  %v631_v14 = vadd.f32 %v5881_v58, %v439_v63 }
 0x21a   : > { %v6441_v6 = vunpack.c.l.bf16 %v2892_v11  ;;  %2694 = vmatmul.bf16.gmra.mxu3 %v2598_v47  ;;  %v1970_v13 = vpop.f32.mrf.mxu2  ;;  %v2734_v38 = vmul.f32 %v1827_v8, %v7552_v22  ;;  %v2156_v33 = vunpack.c.l.b16 %v840_v57  ;;  %v743_v35 = vmax.f32 %v615_v36, 0.0 }
 0x21b   : > { %v2749_v46 = vmul.f32 %v1970_v13, %v7553_v26  ;;  %v6446_v29 = vunpack.c.l.bf16 %v2846_v3  ;;  %v855_v50 = vpack.c.bf16 %v727_v61, %v727_v61  ;;  %v760_v25 = vmax.f32 %v632_v48, 0.0 }
 0x21c   : > { %7609 = vst [vmem:[#allocation5_spill] sm:$0xff] %v6441_v6  ;;  %v3162_v32 = vmax.f32 %v6417_v52, %v6441_v6  ;;  %v2862_v45 = vpack.c.bf16 %v2734_v38, %v2734_v38  ;;  %v2155_v12 = vunpack.c.l.b16 %v839_v27  ;;  %v872_v44 = vpack.c.bf16 %v744_v59, %v744_v59 }
 0x21d   : > { %v2877_v11 = vpack.c.bf16 %v2749_v46, %v2749_v46  ;;  %v2115_v47 = vpop.f32.mrf.mxu3  ;;  %v3101_v8 = vmax.f32 %v6423_v39, %v6446_v29  ;;  %v2301_v57 = vunpack.c.l.b16 %v856_v21  ;;  %v759_v36 = vmax.f32 %v631_v14, 0.0 }
 0x21e   : > { %v2765_v58 = vmul.f32 %v2115_v47, %v5479_v31  ;;  %v6453_v63 = vunpack.c.l.bf16 %v2862_v45  ;;  %v1685_v3 = vpop.f32.mrf.mxu0  ;;  %v2164_v61 = vpack.c.b16 %v2156_v33, %v2155_v12  ;;  %v871_v48 = vpack.c.bf16 %v743_v35, %v743_v35 }
 0x21f   : > { %v6455_v13 = vunpack.c.l.bf16 %v2877_v11  ;;  %v2719_v52 = vmul.f32 %v1685_v3, %v7551_v19  ;;  %v2300_v39 = vunpack.c.l.b16 %v855_v50  ;;  %v888_v27 = vpack.c.bf16 %v760_v25, %v760_v25 }
 0x220   : > { %v2893_v38 = vpack.c.bf16 %v2765_v58, %v2765_v58  ;;  %v2446_v47 = vunpack.c.l.b16 %v872_v44  ;;  %v887_v6 = vpack.c.bf16 %v759_v36, %v759_v36  ;;  %v2445_v12 = vunpack.c.l.b16 %v871_v48 }
 0x221   : > { %v6461_v59 = vmax.f32 %v3141_v41, %v6455_v13  ;;  %v2847_v45 = vpack.c.bf16 %v2719_v52, %v2719_v52  ;;  %2264 = vmatmul.bf16.gmra.mxu0 %v2164_v61  ;;  %v2309_v11 = vpack.c.b16 %v2301_v57, %v2300_v39  ;;  %v2591_v50 = vunpack.c.l.b16 %v888_v27 }
 0x222   : > { %v6463_v21 = vunpack.c.l.bf16 %v2893_v38  ;;  %v1972_v14 = vpop.f32.mrf.mxu2  ;;  %v2454_v52 = vpack.c.b16 %v2446_v47, %v2445_v12  ;;  %v2590_v61 = vunpack.c.l.b16 %v887_v6 }
 0x223   : > { %v2750_v33 = vmul.f32 %v1972_v14, %v7553_v26  ;;  %v2975_v35 = vunpack.c.l.bf16 %v2847_v45 }
 0x224   : > { %v6467_v58 = vmax.f32 %v3162_v32, %v6463_v21  ;;  %2409 = vmatmul.bf16.gmra.mxu1 %v2309_v11  ;;  %v2599_v48 = vpack.c.b16 %v2591_v50, %v2590_v61 }
 0x225   : > { %v2878_v25 = vpack.c.bf16 %v2750_v33, %v2750_v33  ;;  %v2117_v41 = vpop.f32.mrf.mxu3  ;;  %v3102_v3 = vmax.f32 %v3101_v8, %v2975_v35 }
 0x226   : > { %v2766_v44 = vmul.f32 %v2117_v41, %v5479_v31  ;;  %v1687_v38 = vpop.f32.mrf.mxu0 }
 0x227   : > { %v6470_v46 = vunpack.c.l.bf16 %v2878_v25  ;;  %2554 = vmatmul.bf16.gmra.mxu2 %v2454_v52  ;;  %v2720_v57 = vmul.f32 %v1687_v38, %v7551_v19 }
 0x228   : > { %v2894_v36 = vpack.c.bf16 %v2766_v44, %v2766_v44 }
 0x229   : > { %v3143_v32 = vmax.f32 %v6461_v59, %v6470_v46  ;;  %v2848_v39 = vpack.c.bf16 %v2720_v57, %v2720_v57 }
 0x22a   : > { %v6475_v27 = vunpack.c.l.bf16 %v2894_v36  ;;  %2699 = vmatmul.bf16.gmra.mxu3 %v2599_v48 }
 0x22b   : > { %v2976_v8 = vunpack.c.l.bf16 %v2848_v39 }
 0x22d   : > { %v3103_v6 = vmax.f32 %v3102_v3, %v2976_v8 }
 0x22f   : > { %v3104_v47 = vrot.slane %v3103_v6, 4 }
 0x231   : > { %v3105_v14 = vmax.f32 %v3103_v6, %v3104_v47 }
 0x233   : > { %v3106_v11 = vrot.slane %v3105_v14, 2 }
 0x235   : > { %v3107_v33 = vmax.f32 %v3105_v14, %v3106_v11 }
 0x237   : > { %v3108_v12 = vrot.slane %v3107_v33, 1 }
 0x239   : > { %v3109_v19 = vmax.f32 %v3107_v33, %v3108_v12 }
 0x23b   : > { %v3257_v25 = vpack.c.bf16 %v3109_v19, %v3109_v19 }
 0x23d   : > { %v3265_v50 = vunpack.c.l.bf16 %v3257_v25 }
 0x23f   : > { %v3273_v41 = vsub.f32 %v5946_v7, %v3265_v50  ;;  %v3274_v52 = vsub.f32 %v5982_v51, %v3265_v50  ;;  %v3275_v44 = vsub.f32 %v6037_v37, %v3265_v50  ;;  %v3276_v61 = vsub.f32 %v6067_v40, %v3265_v50 }
 0x240   : > { %v3277_v38 = vsub.f32 %v6137_v60, %v3265_v50  ;;  %v3278_v3 = vsub.f32 %v6169_v23, %v3265_v50  ;;  %v3279_v57 = vsub.f32 %v6210_v17, %v3265_v50  ;;  %v3280_v36 = vsub.f32 %v6255_v49, %v3265_v50 }
 0x241   : > { %v3281_v48 = vsub.f32 %v6280_v20, %v3265_v50  ;;  %v3282_v39 = vsub.f32 %v6320_v53, %v3265_v50  ;;  %v3283_v7 = vsub.f32 %v6352_v4, %v3265_v50  ;;  %v3284_v51 = vsub.f32 %v6380_v0, %v3265_v50 }
 0x242   : > { %v3285_v37 = vsub.f32 %v6412_v15, %v3265_v50  ;;  %v3286_v40 = vsub.f32 %v6446_v29, %v3265_v50  ;;  %v3287_v6 = vsub.f32 %v2975_v35, %v3265_v50  ;;  %v3288_v60 = vsub.f32 %v2976_v8, %v3265_v50 }
 0x243   : > { %v3401_v47 = vpack.c.bf16 %v3274_v52, %v3273_v41  ;;  %v3402_v23 = vpack.c.bf16 %v3276_v61, %v3275_v44  ;;  %v3403_v14 = vpack.c.bf16 %v3278_v3, %v3277_v38  ;;  %v3404_v17 = vpack.c.bf16 %v3280_v36, %v3279_v57 }
 0x244   : > { %v3405_v11 = vpack.c.bf16 %v3282_v39, %v3281_v48  ;;  %v3406_v49 = vpack.c.bf16 %v3284_v51, %v3283_v7  ;;  %v3407_v33 = vpack.c.bf16 %v3286_v40, %v3285_v37  ;;  %v6493_v20 = vpack.c.bf16 %v3288_v60, %v3287_v6 }
 0x245   : > { %v3465_v53 = vunpack.c.l.bf16 %v3401_v47  ;;  %v3466_v12 = vunpack.c.h.bf16 %v3401_v47  ;;  %v3467_v4 = vunpack.c.l.bf16 %v3402_v23  ;;  %v3468_v19 = vunpack.c.h.bf16 %v3402_v23 }
 0x246   : > { %v3469_v0 = vunpack.c.l.bf16 %v3403_v14  ;;  %v3470_v25 = vunpack.c.h.bf16 %v3403_v14  ;;  %v3471_v35 = vunpack.c.l.bf16 %v3404_v17  ;;  %v3472_v50 = vunpack.c.h.bf16 %v3404_v17 }
 0x247   : > { %v3593_v15 = vmul.f32 1.442695, %v3465_v53  ;;  %v3595_v45 = vmul.f32 1.442695, %v3466_v12  ;;  %v3597_v29 = vmul.f32 1.442695, %v3467_v4  ;;  %v3473_v44 = vunpack.c.l.bf16 %v3405_v11 }
 0x248   : > { %v3599_v8 = vmul.f32 1.442695, %v3468_v19  ;;  %v3601_v41 = vmul.f32 1.442695, %v3469_v0  ;;  %v3603_v52 = vmul.f32 1.442695, %v3470_v25  ;;  %v3474_v38 = vunpack.c.h.bf16 %v3405_v11 }
 0x249   : > { %4495 = vpow2.f32 %v3593_v15  ;;  %v3605_v61 = vmul.f32 1.442695, %v3471_v35  ;;  %v3607_v3 = vmul.f32 1.442695, %v3472_v50  ;;  %v3475_v48 = vunpack.c.l.bf16 %v3406_v49 }
 0x24a   : > { %4497 = vpow2.f32 %v3595_v45  ;;  %v3609_v39 = vmul.f32 1.442695, %v3473_v44  ;;  %v3476_v51 = vunpack.c.h.bf16 %v3406_v49  ;;  %v3611_v37 = vmul.f32 1.442695, %v3474_v38 }
 0x24b   : > { %4499 = vpow2.f32 %v3597_v29  ;;  %v3477_v17 = vunpack.c.l.bf16 %v3407_v33  ;;  %v3613_v11 = vmul.f32 1.442695, %v3475_v48  ;;  %v3478_v53 = vunpack.c.h.bf16 %v3407_v33 }
 0x24c   : > { %4501 = vpow2.f32 %v3599_v8  ;;  %v3615_v12 = vmul.f32 1.442695, %v3476_v51  ;;  %v3479_v15 = vunpack.c.l.bf16 %v6493_v20  ;;  %v3480_v50 = vunpack.c.h.bf16 %v6493_v20 }
 0x24d   : > { %4503 = vpow2.f32 %v3601_v41  ;;  %v3617_v29 = vmul.f32 1.442695, %v3477_v17  ;;  %v3619_v41 = vmul.f32 1.442695, %v3478_v53 }
 0x24e   : > { %4505 = vpow2.f32 %v3603_v52  ;;  %v3623_v48 = vmul.f32 1.442695, %v3480_v50 }
 0x24f   : > { %v4496_v57 = vpop.eup %4495  ;;  %4507 = vpow2.f32 %v3605_v61 }
 0x250   : > { %v4498_v36 = vpop.eup %4497  ;;  %4509 = vpow2.f32 %v3607_v3  ;;  %v3621_v3 = vmul.f32 1.442695, %v3479_v15 }
 0x251   : > { %v4500_v7 = vpop.eup %4499  ;;  %v3849_v40 = vpack.c.bf16 %v4498_v36, %v4496_v57  ;;  %4511 = vpow2.f32 %v3609_v39 }
 0x252   : > { %v4502_v45 = vpop.eup %4501  ;;  %4513 = vpow2.f32 %v3611_v37 }
 0x253   : > { %v4504_v6 = vpop.eup %4503  ;;  %v3850_v60 = vpack.c.bf16 %v4502_v45, %v4500_v7  ;;  %v3913_v47 = vunpack.c.l.bf16 %v3849_v40  ;;  %v3914_v23 = vunpack.c.h.bf16 %v3849_v40  ;;  %4515 = vpow2.f32 %v3613_v11 }
 0x254   : > { %v4506_v14 = vpop.eup %4505  ;;  %4517 = vpow2.f32 %v3615_v12 }
 0x255   : > { %v4508_v4 = vpop.eup %4507  ;;  %v3851_v19 = vpack.c.bf16 %v4506_v14, %v4504_v6  ;;  %v3915_v0 = vunpack.c.l.bf16 %v3850_v60  ;;  %v4041_v25 = vadd.f32 %v3914_v23, %v3913_v47  ;;  %v3916_v35 = vunpack.c.h.bf16 %v3850_v60 }
 0x256   : > { %v4510_v49 = vpop.eup %4509  ;;  %4519 = vpow2.f32 %v3617_v29 }
 0x257   : > { %v4042_v8 = vadd.f32 %v4041_v25, %v3915_v0  ;;  %v4512_v52 = vpop.eup %4511  ;;  %v3852_v44 = vpack.c.bf16 %v4510_v49, %v4508_v4  ;;  %v3917_v33 = vunpack.c.l.bf16 %v3851_v19  ;;  %v3918_v57 = vunpack.c.h.bf16 %v3851_v19 }
 0x258   : > { %v4514_v38 = vpop.eup %4513  ;;  %4521 = vpow2.f32 %v3619_v41 }
 0x259   : > { %v4043_v61 = vadd.f32 %v4042_v8, %v3916_v35  ;;  %v4516_v39 = vpop.eup %4515  ;;  %v3853_v7 = vpack.c.bf16 %v4514_v38, %v4512_v52  ;;  %v3919_v51 = vunpack.c.l.bf16 %v3852_v44  ;;  %4523 = vpow2.f32 %v3621_v3  ;;  %v1830_v8 = vpop.f32.mrf.mxu1 }
 0x25a   : > { %v4518_v40 = vpop.eup %4517  ;;  %v3920_v20 = vunpack.c.h.bf16 %v3852_v44  ;;  %4525 = vpow2.f32 %v3623_v48  ;;  %v2735_v52 = vmul.f32 %v1830_v8, %v7552_v22 }
 0x25b   : > { %v4044_v36 = vadd.f32 %v4043_v61, %v3917_v33  ;;  %v3854_v60 = vpack.c.bf16 %v4518_v40, %v4516_v39  ;;  %v3921_v47 = vunpack.c.l.bf16 %v3853_v7  ;;  %v3922_v17 = vunpack.c.h.bf16 %v3853_v7 }
 0x25c   : > { %v4520_v6 = vpop.eup %4519  ;;  %v2863_v3 = vpack.c.bf16 %v2735_v52, %v2735_v52 }
 0x25d   : > { %v4045_v37 = vadd.f32 %v4044_v36, %v3918_v57  ;;  %v3923_v4 = vunpack.c.l.bf16 %v3854_v60  ;;  %v3924_v25 = vunpack.c.h.bf16 %v3854_v60 }
 0x25e   : > { %v4522_v14 = vpop.eup %4521  ;;  %v6498_v39 = vunpack.c.l.bf16 %v2863_v3 }
 0x25f   : > { %v4046_v45 = vadd.f32 %v4045_v37, %v3919_v51  ;;  %v4524_v53 = vpop.eup %4523  ;;  %v3855_v12 = vpack.c.bf16 %v4522_v14, %v4520_v6 }
 0x260   : > { %v4526_v0 = vpop.eup %4525 }
 0x261   : > { %v4047_v23 = vadd.f32 %v4046_v45, %v3920_v20  ;;  %v3856_v15 = vpack.c.bf16 %v4526_v0, %v4524_v53  ;;  %v3925_v29 = vunpack.c.l.bf16 %v3855_v12  ;;  %v3926_v50 = vunpack.c.h.bf16 %v3855_v12  ;;  %v1832_v48 = vpop.f32.mrf.mxu1 }
 0x262   : > { %v2736_v51 = vmul.f32 %v1832_v48, %v7552_v22  ;;  %v7610_v20 = vmax.f32 %v6436_v56, %v6453_v63  ;;  %v7612_v48 = vld [vmem:[#allocation4_spill] sm:$0xff] }
 0x263   : > { %v4048_v11 = vadd.f32 %v4047_v23, %v3921_v47  ;;  %v3927_v44 = vunpack.c.l.bf16 %v3856_v15  ;;  %v3928_v61 = vunpack.c.h.bf16 %v3856_v15 }
 0x264   : > { %v2864_v37 = vpack.c.bf16 %v2736_v51, %v2736_v51  ;;  %v3123_v45 = vmax.f32 %v7610_v20, %v6498_v39 }
 0x265   : > { %v4049_v19 = vadd.f32 %v4048_v11, %v3922_v17 }
 0x266   : > { %v6505_v6 = vunpack.c.l.bf16 %v2864_v37 }
 0x267   : > { %v4050_v49 = vadd.f32 %v4049_v19, %v3923_v4  ;;  %v1975_v4 = vpop.f32.mrf.mxu2  ;;  %v2120_v19 = vpop.f32.mrf.mxu3 }
 0x268   : > { %v3124_v60 = vmax.f32 %v3123_v45, %v6505_v6  ;;  %v2767_v56 = vmul.f32 %v2120_v19, %v5479_v31 }
 0x269   : > { %v4051_v35 = vadd.f32 %v4050_v49, %v3924_v25  ;;  %v2751_v49 = vmul.f32 %v1975_v4, %v7553_v26 }
 0x26a   : > { %v3125_v23 = vrot.slane %v3124_v60, 4 }
 0x26b   : > { %v4052_v41 = vadd.f32 %v4051_v35, %v3925_v29  ;;  %v2879_v8 = vpack.c.bf16 %v2751_v49, %v2751_v49 }
 0x26c   : > { %v3126_v14 = vmax.f32 %v3124_v60, %v3125_v23 }
 0x26d   : > { %v4053_v33 = vadd.f32 %v4052_v41, %v3926_v50  ;;  %v2895_v50 = vpack.c.bf16 %v2767_v56, %v2767_v56 }
 0x26e   : > { %v3127_v11 = vrot.slane %v3126_v14, 2 }
 0x26f   : > { %v4054_v38 = vadd.f32 %v4053_v33, %v3927_v44  ;;  %v6529_v20 = vunpack.c.l.bf16 %v2895_v50 }
 0x270   : > { %v3128_v12 = vmax.f32 %v3126_v14, %v3127_v11  ;;  %v1977_v11 = vpop.f32.mrf.mxu2 }
 0x271   : > { %v4055_v57 = vadd.f32 %v4054_v38, %v3928_v61 }
 0x272   : > { %v3129_v22 = vrot.slane %v3128_v12, 1 }
 0x273   : > { %v4056_v36 = vrot.slane %v4055_v57, 4 }
 0x274   : > { %v3130_v25 = vmax.f32 %v3128_v12, %v3129_v22  ;;  %v7613_v12 = vmax.f32 %v6467_v58, %v6475_v27 }
 0x275   : > { %v4057_v7 = vadd.f32 %v4056_v36, %v4055_v57  ;;  %v7611_v57 = vld [vmem:[#allocation8_spill] sm:$0xff] }
 0x276   : > { %v3258_v15 = vpack.c.bf16 %v3130_v25, %v3130_v25  ;;  %v3165_v4 = vmax.f32 %v7613_v12, %v6529_v20 }
 0x277   : > { %v4058_v40 = vrot.slane %v4057_v7, 2 }
 0x278   : > { %v3266_v35 = vunpack.c.l.bf16 %v3258_v15  ;;  %v2752_v15 = vmul.f32 %v1977_v11, %v7553_v26 }
 0x279   : > { %v4059_v47 = vadd.f32 %v4058_v40, %v4057_v7 }
 0x27a   : > { %v3289_v41 = vsub.f32 %v5948_v55, %v3266_v35  ;;  %v3290_v52 = vsub.f32 %v5989_v1, %v3266_v35  ;;  %v3291_v44 = vsub.f32 %v6043_v34, %v3266_v35  ;;  %v3292_v33 = vsub.f32 %v6079_v9, %v3266_v35 }
 0x27b   : > { %v4060_v17 = vrot.slane %v4059_v47, 1  ;;  %v3293_v61 = vsub.f32 %v6149_v30, %v3266_v35  ;;  %v3294_v38 = vsub.f32 %v6178_v18, %v3266_v35  ;;  %v3295_v3 = vsub.f32 %v6230_v10, %v3266_v35 }
 0x27c   : > { %v3296_v36 = vsub.f32 %v7611_v57, %v3266_v35  ;;  %v3297_v7 = vsub.f32 %v7612_v48, %v3266_v35  ;;  %v3298_v55 = vsub.f32 %v6332_v5, %v3266_v35  ;;  %v3299_v1 = vsub.f32 %v6364_v16, %v3266_v35 }
 0x27d   : > { %v4061_v53 = vadd.f32 %v4060_v17, %v4059_v47  ;;  %v3300_v34 = vsub.f32 %v6389_v54, %v3266_v35  ;;  %v3301_v9 = vsub.f32 %v6427_v42, %v3266_v35  ;;  %v3302_v30 = vsub.f32 %v6453_v63, %v3266_v35 }
 0x27e   : > { %v3409_v51 = vpack.c.bf16 %v3290_v52, %v3289_v41  ;;  %v6527_v18 = vunpack.c.l.bf16 %v2879_v8  ;;  %v3410_v10 = vpack.c.bf16 %v3292_v33, %v3291_v44  ;;  %v3411_v37 = vpack.c.bf16 %v3294_v38, %v3293_v61  ;;  %v2122_v8 = vpop.f32.mrf.mxu3 }
 0x27f   : > { %v4209_v0 = vpack.c.bf16 %v4061_v53, %v4061_v53  ;;  %v3412_v40 = vpack.c.bf16 %v3296_v36, %v3295_v3  ;;  %v3413_v45 = vpack.c.bf16 %v3298_v55, %v3297_v7  ;;  %v3414_v60 = vpack.c.bf16 %v3300_v34, %v3299_v1 }
 0x280   : > { %v3415_v47 = vpack.c.bf16 %v3302_v30, %v3301_v9  ;;  %v3481_v5 = vunpack.c.l.bf16 %v3409_v51  ;;  %v3482_v23 = vunpack.c.h.bf16 %v3409_v51  ;;  %v3483_v16 = vunpack.c.l.bf16 %v3410_v10 }
 0x281   : > { %v6510_v29 = vunpack.c.l.bf16 %v4209_v0  ;;  %v3484_v54 = vunpack.c.h.bf16 %v3410_v10  ;;  %v3303_v42 = vsub.f32 %v6498_v39, %v3266_v35  ;;  %v3304_v63 = vsub.f32 %v6505_v6, %v3266_v35 }
 0x282   : > { %v3485_v17 = vunpack.c.l.bf16 %v3411_v37  ;;  %v3144_v53 = vmax.f32 %v3143_v32, %v6527_v18  ;;  %v3486_v22 = vunpack.c.h.bf16 %v3411_v37  ;;  %v3487_v19 = vunpack.c.l.bf16 %v3412_v40 }
 0x283   : > { %4527 = vrcp.f32 %v6510_v29  ;;  %v3625_v0 = vmul.f32 1.442695, %v3481_v5  ;;  %v3627_v25 = vmul.f32 1.442695, %v3482_v23  ;;  %v3629_v49 = vmul.f32 1.442695, %v3483_v16 }
 0x284   : > { %v3488_v6 = vunpack.c.h.bf16 %v3412_v40  ;;  %v3631_v56 = vmul.f32 1.442695, %v3484_v54  ;;  %v3416_v59 = vpack.c.bf16 %v3304_v63, %v3303_v42  ;;  %v3489_v32 = vunpack.c.l.bf16 %v3413_v45 }
 0x285   : > { %4529 = vpow2.f32 %v3625_v0  ;;  %v3633_v35 = vmul.f32 1.442695, %v3485_v17  ;;  %v3490_v58 = vunpack.c.h.bf16 %v3413_v45  ;;  %v3491_v50 = vunpack.c.l.bf16 %v3414_v60 }
 0x286   : > { %4531 = vpow2.f32 %v3627_v25  ;;  %v3635_v41 = vmul.f32 1.442695, %v3486_v22  ;;  %v3492_v52 = vunpack.c.h.bf16 %v3414_v60  ;;  %v3493_v44 = vunpack.c.l.bf16 %v3415_v47 }
 0x287   : > { %4533 = vpow2.f32 %v3629_v49  ;;  %v3637_v33 = vmul.f32 1.442695, %v3487_v19  ;;  %v3639_v61 = vmul.f32 1.442695, %v3488_v6  ;;  %v2880_v38 = vpack.c.bf16 %v2752_v15, %v2752_v15 }
 0x288   : > { %4535 = vpow2.f32 %v3631_v56  ;;  %v2768_v3 = vmul.f32 %v2122_v8, %v5479_v31  ;;  %v3494_v57 = vunpack.c.h.bf16 %v3415_v47  ;;  %v3495_v26 = vunpack.c.l.bf16 %v3416_v59 }
 0x289   : > { %v6531_v14 = vpop.eup %4527  ;;  %4537 = vpow2.f32 %v3633_v35  ;;  %v3641_v36 = vmul.f32 1.442695, %v3489_v32  ;;  %v3643_v48 = vmul.f32 1.442695, %v3490_v58  ;;  %v6549_v7 = vunpack.c.l.bf16 %v2880_v38 }
 0x28a   : > { %v6545_v39 = vmul.f32 %v6531_v14, %v6510_v29  ;;  %4539 = vpow2.f32 %v3635_v41  ;;  %v2896_v55 = vpack.c.bf16 %v2768_v3, %v2768_v3  ;;  %v3496_v9 = vunpack.c.h.bf16 %v3416_v59 }
 0x28b   : > { %v4530_v1 = vpop.eup %4529  ;;  %4541 = vpow2.f32 %v3637_v33  ;;  %v3645_v30 = vmul.f32 1.442695, %v3491_v50  ;;  %v3647_v10 = vmul.f32 1.442695, %v3492_v52  ;;  %v3145_v31 = vmax.f32 %v3144_v53, %v6549_v7 }
 0x28c   : > { %v4227_v34 = vsub.f32 1.0, %v6545_v39  ;;  %v4532_v51 = vpop.eup %4531  ;;  %4543 = vpow2.f32 %v3639_v61  ;;  %v6553_v37 = vunpack.c.l.bf16 %v2896_v55  ;;  %v3649_v45 = vmul.f32 1.442695, %v3493_v44 }
 0x28d   : > { %v4534_v40 = vpop.eup %4533  ;;  %4545 = vpow2.f32 %v3641_v36  ;;  %v3651_v60 = vmul.f32 1.442695, %v3494_v57  ;;  %v3857_v47 = vpack.c.bf16 %v4532_v51, %v4530_v1  ;;  %v3653_v23 = vmul.f32 1.442695, %v3495_v26 }
 0x28e   : > { %v4536_v5 = vpop.eup %4535  ;;  %4547 = vpow2.f32 %v3643_v48  ;;  %v3146_v16 = vrot.slane %v3145_v31, 4  ;;  %v3166_v54 = vmax.f32 %v3165_v4, %v6553_v37  ;;  %v3655_v53 = vmul.f32 1.442695, %v3496_v9 }
 0x28f   : > { %v4538_v42 = vpop.eup %4537  ;;  %4549 = vpow2.f32 %v3645_v30  ;;  %v3858_v63 = vpack.c.bf16 %v4536_v5, %v4534_v40  ;;  %v3929_v17 = vunpack.c.l.bf16 %v3857_v47  ;;  %v3930_v11 = vunpack.c.h.bf16 %v3857_v47  ;;  %v6638_v40 = vpop.f32.mrf.mxu3 }
 0x290   : > { %v4540_v12 = vpop.eup %4539  ;;  %4551 = vpow2.f32 %v3647_v10  ;;  %v3147_v22 = vmax.f32 %v3145_v31, %v3146_v16  ;;  %v3167_v19 = vrot.slane %v3166_v54, 4  ;;  %v4228_v59 = vmul.f32 %v6531_v14, %v4227_v34 }
 0x291   : > { %v4542_v0 = vpop.eup %4541  ;;  %4553 = vpow2.f32 %v3649_v45  ;;  %v3859_v25 = vpack.c.bf16 %v4540_v12, %v4538_v42  ;;  %v3931_v49 = vunpack.c.l.bf16 %v3858_v63  ;;  %v4062_v6 = vadd.f32 %v3930_v11, %v3929_v17 }
 0x292   : > { %v4544_v39 = vpop.eup %4543  ;;  %4555 = vpow2.f32 %v3651_v60  ;;  %v3148_v56 = vrot.slane %v3147_v22, 2  ;;  %v3168_v15 = vmax.f32 %v3166_v54, %v3167_v19  ;;  %v3932_v32 = vunpack.c.h.bf16 %v3858_v63 }
 0x293   : > { %v4546_v4 = vpop.eup %4545  ;;  %4557 = vpow2.f32 %v3653_v23  ;;  %v4063_v8 = vadd.f32 %v4062_v6, %v3931_v49  ;;  %v3860_v52 = vpack.c.bf16 %v4544_v39, %v4542_v0  ;;  %v3933_v33 = vunpack.c.l.bf16 %v3859_v25  ;;  %v7616_v49 = vld [vmem:[#allocation12_spill] sm:$0xff]  ;;  %v7617_v6 = vld [vmem:[#allocation14_spill] sm:$0xff] }
 0x294   : > { %v4548_v35 = vpop.eup %4547  ;;  %4559 = vpow2.f32 %v3655_v53  ;;  %v3149_v58 = vmax.f32 %v3147_v22, %v3148_v56  ;;  %v3169_v50 = vrot.slane %v3168_v15, 2  ;;  %v6558_v26 = vadd.f32 %v6531_v14, %v4228_v59  ;;  %v7619_v59 = vld [vmem:[#allocation21_spill] sm:$0xff] }
 0x295   : > { %v4550_v41 = vpop.eup %4549  ;;  %v4064_v61 = vadd.f32 %v4063_v8, %v3932_v32  ;;  %vm4231_vm0 = vweird.f32 %v6531_v14  ;;  %v4236_v36 = vand.u32 2147483648, %v6510_v29  ;;  %v3861_v48 = vpack.c.bf16 %v4548_v35, %v4546_v4  ;;  %v7620_v35 = vld [vmem:[#allocation23_spill] sm:$0xff] }
 0x296   : > { %v4552_v44 = vpop.eup %4551  ;;  %v3150_v38 = vrot.slane %v3149_v58, 1  ;;  %v3170_v3 = vmax.f32 %v3168_v15, %v3169_v50  ;;  %v3934_v1 = vunpack.c.h.bf16 %v3859_v25  ;;  %vm4230_vm1 = vweird.f32 %v6510_v29  ;;  %v7618_v15 = vld [vmem:[#allocation19_spill] sm:$0xff] }
 0x297   : > { %v4554_v57 = vpop.eup %4553  ;;  %v4065_v34 = vadd.f32 %v4064_v61, %v3933_v33  ;;  %v3862_v51 = vpack.c.bf16 %v4552_v44, %v4550_v41  ;;  %vm6563_vm2 = vmor %vm4230_vm1, %vm4231_vm0  ;;  %v4234_v45 = vand.u32 2147483647, %v6510_v29  ;;  %v3935_v60 = vunpack.c.l.bf16 %v3860_v52  ;;  %v7622_v41 = vld [vmem:[#allocation24_spill] sm:$0xff]  ;;  %v7623_v33 = vld [vmem:[#allocation26_spill] sm:$0xff] }
 0x298   : > { %v4556_v55 = vpop.eup %4555  ;;  %v3151_v9 = vmax.f32 %v3149_v58, %v3150_v38  ;;  %v3171_v10 = vrot.slane %v3170_v3, 1  ;;  %v4233_v23 = vsel %vm6563_vm2, %v6531_v14, %v6558_v26  ;;  %v6572_v16 = vor.u32 1.1754944e-38, %v4236_v36  ;;  %v7621_v58 = vld [vmem:[#allocation3_spill] sm:$0xff]  ;;  %v7635_v26 = vld [vmem:[#allocation18_spill] sm:$0xff] }
 0x299   : > { %v4558_v30 = vpop.eup %4557  ;;  %v4066_v47 = vadd.f32 %v4065_v34, %v3934_v1  ;;  %v3936_v54 = vunpack.c.h.bf16 %v3860_v52  ;;  %v3937_v42 = vunpack.c.l.bf16 %v3861_v48  ;;  %v3863_v63 = vpack.c.bf16 %v4556_v55, %v4554_v57 }
 0x29a   : > { %v4560_v31 = vpop.eup %4559  ;;  %v3259_v5 = vpack.c.bf16 %v3151_v9, %v3151_v9  ;;  %v3938_v17 = vunpack.c.h.bf16 %v3861_v48  ;;  %v3939_v22 = vunpack.c.l.bf16 %v3862_v51  ;;  %v3940_v19 = vunpack.c.h.bf16 %v3862_v51 }
 0x29b   : > { %v4067_v11 = vadd.f32 %v4066_v47, %v3935_v60  ;;  %v6574_v53 = vpack.c.bf16 %v4560_v31, %v4558_v30  ;;  %v6576_v0 = vmax.f32 %v3170_v3, %v3171_v10  ;;  %vm6600_vm3 = vcmp.eq.f32.partialorder %v4234_v45, 8.507059e+37 }
 0x29c   : > { %v3267_v12 = vunpack.c.l.bf16 %v3259_v5  ;;  %v3941_v5 = vunpack.c.l.bf16 %v3863_v63  ;;  %vm4357_vm2 = vcmask 1043459  }
 0x29d   : > { %v4068_v25 = vadd.f32 %v4067_v11, %v3936_v54  ;;  %v3944_v11 = vunpack.c.h.bf16 %v6574_v53 }
 0x29e   : > { %v3305_v39 = vsub.f32 %v7616_v49, %v3267_v12  ;;  %v3306_v56 = vsub.f32 %v7617_v6, %v3267_v12  ;;  %v3307_v4 = vsub.f32 %v7618_v15, %v3267_v12  ;;  %v3308_v32 = vsub.f32 %v7619_v59, %v3267_v12 }
 0x29f   : > { %v3309_v8 = vsub.f32 %v7620_v35, %v3267_v12  ;;  %v3310_v50 = vsub.f32 %v7621_v58, %v3267_v12  ;;  %v3311_v52 = vsub.f32 %v7622_v41, %v3267_v12  ;;  %v4069_v44 = vadd.f32 %v4068_v25, %v3937_v42 }
 0x2a0   : > { %v3312_v61 = vsub.f32 %v7623_v33, %v3267_v12  ;;  %v3313_v38 = vsub.f32 %v6335_v43, %v3267_v12  ;;  %v3314_v3 = vsub.f32 %v6366_v2, %v3267_v12  ;;  %v3315_v57 = vsub.f32 %v6394_v62, %v3267_v12 }
 0x2a1   : > { %v3316_v36 = vsub.f32 %v6431_v24, %v3267_v12  ;;  %v3317_v48 = vsub.f32 %v6455_v13, %v3267_v12  ;;  %v3318_v55 = vsub.f32 %v6470_v46, %v3267_v12  ;;  %v4070_v1 = vadd.f32 %v4069_v44, %v3938_v17 }
 0x2a2   : > { %v3319_v34 = vsub.f32 %v6527_v18, %v3267_v12  ;;  %v3320_v9 = vsub.f32 %v6549_v7, %v3267_v12  ;;  %v3417_v30 = vpack.c.bf16 %v3306_v56, %v3305_v39  ;;  %v3418_v51 = vpack.c.bf16 %v3308_v32, %v3307_v4 }
 0x2a3   : > { %v3419_v10 = vpack.c.bf16 %v3310_v50, %v3309_v8  ;;  %v3420_v31 = vpack.c.bf16 %v3312_v61, %v3311_v52  ;;  %v3421_v43 = vpack.c.bf16 %v3314_v3, %v3313_v38  ;;  %v4071_v60 = vadd.f32 %v4070_v1, %v3939_v22  ;;  %v2230_v1 = vpop.f32.mrf.mxu0 }
 0x2a4   : > { %v3422_v2 = vpack.c.bf16 %v3316_v36, %v3315_v57  ;;  %v3423_v47 = vpack.c.bf16 %v3318_v55, %v3317_v48  ;;  %v3424_v62 = vpack.c.bf16 %v3320_v9, %v3319_v34  ;;  %v3942_v24 = vunpack.c.h.bf16 %v3863_v63  ;;  %v6606_v34 = vpop.f32.mrf.mxu1 }
 0x2a5   : > { %v3497_v54 = vunpack.c.l.bf16 %v3417_v30  ;;  %v3498_v13 = vunpack.c.h.bf16 %v3417_v30  ;;  %v4072_v42 = vadd.f32 %v4071_v60, %v3940_v19  ;;  %v3499_v46 = vunpack.c.l.bf16 %v3418_v51 }
 0x2a6   : > { %v3500_v17 = vunpack.c.h.bf16 %v3418_v51  ;;  %v3260_v18 = vpack.c.bf16 %v6576_v0, %v6576_v0  ;;  %v3943_v7 = vunpack.c.l.bf16 %v6574_v53  ;;  %v3501_v12 = vunpack.c.l.bf16 %v3419_v10 }
 0x2a7   : > { %v3502_v25 = vunpack.c.h.bf16 %v3419_v10  ;;  %v4073_v22 = vadd.f32 %v4072_v42, %v3941_v5  ;;  %v3503_v49 = vunpack.c.l.bf16 %v3420_v31  ;;  %v3504_v39 = vunpack.c.h.bf16 %v3420_v31 }
 0x2a8   : > { %v3505_v6 = vunpack.c.l.bf16 %v3421_v43  ;;  %v3506_v56 = vunpack.c.h.bf16 %v3421_v43  ;;  %v3507_v63 = vunpack.c.l.bf16 %v3422_v2  ;;  %v3657_v15 = vmul.f32 1.442695, %v3497_v54  ;;  %v7626_v43 = vld [vmem:[#allocation15_spill] sm:$0xff] }
 0x2a9   : > { %v3659_v4 = vmul.f32 1.442695, %v3498_v13  ;;  %v4074_v19 = vadd.f32 %v4073_v22, %v3942_v24  ;;  %v3508_v59 = vunpack.c.h.bf16 %v3422_v2  ;;  %v3661_v32 = vmul.f32 1.442695, %v3499_v46  ;;  %v7628_v24 = vld [vmem:[#allocation22_spill] sm:$0xff] }
 0x2aa   : > { %v3663_v35 = vmul.f32 1.442695, %v3500_v17  ;;  %v3509_v8 = vunpack.c.l.bf16 %v3423_v47  ;;  %v3510_v0 = vunpack.c.h.bf16 %v3423_v47  ;;  %4561 = vpow2.f32 %v3657_v15  ;;  %v7629_v46 = vld [vmem:[#allocation2_spill] sm:$0xff] }
 0x2ab   : > { %v3665_v58 = vmul.f32 1.442695, %v3501_v12  ;;  %v4075_v50 = vadd.f32 %v4074_v19, %v3943_v7  ;;  %v3511_v53 = vunpack.c.l.bf16 %v3424_v62  ;;  %4563 = vpow2.f32 %v3659_v4 }
 0x2ac   : > { %v3667_v41 = vmul.f32 1.442695, %v3502_v25  ;;  %v3512_v52 = vunpack.c.h.bf16 %v3424_v62  ;;  %4565 = vpow2.f32 %v3661_v32  ;;  %v3669_v44 = vmul.f32 1.442695, %v3503_v49  ;;  %v7627_v62 = vld [vmem:[#allocation20_spill] sm:$0xff]  ;;  %v7631_v25 = vld [vmem:[#allocation25_spill] sm:$0xff] }
 0x2ad   : > { %v3671_v33 = vmul.f32 1.442695, %v3504_v39  ;;  %v4076_v38 = vadd.f32 %v4075_v50, %v3944_v11  ;;  %4567 = vpow2.f32 %v3663_v35  ;;  %v3673_v3 = vmul.f32 1.442695, %v3505_v6  ;;  %v7632_v49 = vld [vmem:[#allocation13_spill] sm:$0xff]  ;;  %v7633_v32 = vld [vmem:[#allocation6_spill] sm:$0xff] }
 0x2ae   : > { %v3675_v57 = vmul.f32 1.442695, %v3506_v56  ;;  %4569 = vpow2.f32 %v3665_v58  ;;  %v3677_v36 = vmul.f32 1.442695, %v3507_v63  ;;  %v3679_v48 = vmul.f32 1.442695, %v3508_v59 }
 0x2af   : > { %v6604_v55 = vunpack.c.l.bf16 %v3260_v18  ;;  %v4077_v9 = vrot.slane %v4076_v38, 4  ;;  %4571 = vpow2.f32 %v3667_v41  ;;  %v3681_v30 = vmul.f32 1.442695, %v3509_v8  ;;  %v7630_v18 = vld [vmem:[#allocation17_spill] sm:$0xff] }
 0x2b0   : > { %v3683_v51 = vmul.f32 1.442695, %v3510_v0  ;;  %v4562_v45 = vpop.eup %4561  ;;  %4573 = vpow2.f32 %v3669_v44  ;;  %v3685_v10 = vmul.f32 1.442695, %v3511_v53  ;;  %v3687_v31 = vmul.f32 1.442695, %v3512_v52  ;;  %v6634_v53 = vpop.f32.mrf.mxu2 }
 0x2b1   : > { %v3321_v60 = vsub.f32 %v7626_v43, %v6604_v55  ;;  %v4564_v2 = vpop.eup %4563  ;;  %v4078_v47 = vadd.f32 %v4077_v9, %v4076_v38  ;;  %4575 = vpow2.f32 %v3671_v33  ;;  %v3323_v5 = vsub.f32 %v7627_v62, %v6604_v55  ;;  %v7634_v33 = vld [vmem:[#allocation7_spill] sm:$0xff] }
 0x2b2   : > { %v3324_v54 = vsub.f32 %v7628_v24, %v6604_v55  ;;  %v4566_v13 = vpop.eup %4565  ;;  %4577 = vpow2.f32 %v3673_v3  ;;  %v3865_v42 = vpack.c.bf16 %v4564_v2, %v4562_v45  ;;  %v3325_v17 = vsub.f32 %v7629_v46, %v6604_v55 }
 0x2b3   : > { %v3326_v7 = vsub.f32 %v7630_v18, %v6604_v55  ;;  %v4568_v11 = vpop.eup %4567  ;;  %v4079_v12 = vrot.slane %v4078_v47, 2  ;;  %4579 = vpow2.f32 %v3675_v57  ;;  %v3327_v22 = vsub.f32 %v7631_v25, %v6604_v55  ;;  %v6645_v57 = vpop.f32.mrf.mxu0 }
 0x2b4   : > { %v3328_v39 = vsub.f32 %v7632_v49, %v6604_v55  ;;  %v4570_v6 = vpop.eup %4569  ;;  %4581 = vpow2.f32 %v3677_v36  ;;  %v3866_v56 = vpack.c.bf16 %v4568_v11, %v4566_v13  ;;  %v3945_v63 = vunpack.c.l.bf16 %v3865_v42  ;;  %v6647_v36 = vpop.f32.mrf.mxu1 }
 0x2b5   : > { %v3946_v15 = vunpack.c.h.bf16 %v3865_v42  ;;  %v4572_v4 = vpop.eup %4571  ;;  %v4080_v19 = vadd.f32 %v4079_v12, %v4078_v47  ;;  %4583 = vpow2.f32 %v3679_v48  ;;  %v3329_v59 = vsub.f32 %v6348_v28, %v6604_v55 }
 0x2b6   : > { %v3330_v35 = vsub.f32 %v7633_v32, %v6604_v55  ;;  %v4574_v8 = vpop.eup %4573  ;;  %v4238_v0 = vsel %vm6600_vm3, %v6572_v16, %v4233_v23  ;;  %4585 = vpow2.f32 %v3681_v30  ;;  %v3867_v58 = vpack.c.bf16 %v4572_v4, %v4570_v6  ;;  %v7636_v16 = vld [vmem:[#allocation9_spill] sm:$0xff] }
 0x2b7   : > { %v3947_v50 = vunpack.c.l.bf16 %v3866_v56  ;;  %v4576_v41 = vpop.eup %4575  ;;  %v4081_v52 = vrot.slane %v4080_v19, 1  ;;  %4587 = vpow2.f32 %v3683_v51  ;;  %v4083_v44 = vadd.f32 %v3946_v15, %v3945_v63  ;;  %v7637_v51 = vld [vmem:[#allocation5_spill] sm:$0xff] }
 0x2b8   : > { %v3331_v38 = vsub.f32 %v7634_v33, %v6604_v55  ;;  %v4578_v3 = vpop.eup %4577  ;;  %4589 = vpow2.f32 %v3685_v10  ;;  %v3948_v14 = vunpack.c.h.bf16 %v3866_v56  ;;  %v3322_v23 = vsub.f32 %v7635_v26, %v6604_v55 }
 0x2b9   : > { %v6643_v61 = vmul.f32 %v2230_v1, %v7636_v16  ;;  %v4580_v48 = vpop.eup %4579  ;;  %v4082_v9 = vadd.f32 %v4081_v52, %v4080_v19  ;;  %4591 = vpow2.f32 %v3687_v31  ;;  %v4084_v30 = vadd.f32 %v4083_v44, %v3947_v50  ;;  %v7638_v50 = vld [vmem:[#allocation10_spill] sm:$0xff]  ;;  %v6710_v44 = vpop.f32.mrf.mxu3 }
 0x2ba   : > { %v3332_v45 = vsub.f32 %v7637_v51, %v6604_v55  ;;  %v4582_v2 = vpop.eup %4581  ;;  %v6652_v10 = vmul.f32 %v4238_v0, %v6510_v29  ;;  %v3868_v47 = vpack.c.bf16 %v4576_v41, %v4574_v8  ;;  %v3333_v1 = vsub.f32 %v6463_v21, %v6604_v55 }
 0x2bb   : > { %v4584_v13 = vpop.eup %4583  ;;  %v4210_v42 = vpack.c.bf16 %v4082_v9, %v4082_v9  ;;  %v3949_v18 = vunpack.c.l.bf16 %v3867_v58  ;;  %v4085_v11 = vadd.f32 %v4084_v30, %v3948_v14  ;;  %v3334_v12 = vsub.f32 %v6475_v27, %v6604_v55  ;;  %v6716_v25 = vpop.f32.mrf.mxu0 }
 0x2bc   : > { %v4586_v31 = vpop.eup %4585  ;;  %v3869_v6 = vpack.c.bf16 %v4580_v48, %v4578_v3  ;;  %v6658_v56 = vpack.c.bf16 %v4584_v13, %v4582_v2  ;;  %v3336_v63 = vsub.f32 %v6553_v37, %v6604_v55  ;;  %v2897_v29 = vpack.c.bf16 %v6643_v61, %v6643_v61 }
 0x2bd   : > { %v4588_v15 = vpop.eup %4587  ;;  %v6664_v4 = vunpack.c.l.bf16 %v4210_v42  ;;  %v4086_v21 = vadd.f32 %v4085_v11, %v3949_v18  ;;  %v3425_v19 = vpack.c.bf16 %v3322_v23, %v3321_v60  ;;  %v6675_v27 = vpack.c.bf16 %v3324_v54, %v3323_v5  ;;  %v6718_v23 = vpop.f32.mrf.mxu1 }
 0x2be   : > { %v4590_v37 = vpop.eup %4589  ;;  %v3950_v32 = vunpack.c.h.bf16 %v3867_v58  ;;  %v3951_v8 = vunpack.c.l.bf16 %v3868_v47  ;;  %v6680_v0 = vpack.c.bf16 %v3326_v7, %v3325_v17  ;;  %v6684_v43 = vmul.f32 %v6606_v34, %v7638_v50  ;;  %v6694_v7 = vpop.f32.mrf.mxu2 }
 0x2bf   : > { %v4592_v60 = vpop.eup %4591  ;;  %4593 = vrcp.f32 %v6664_v4  ;;  %v6687_v62 = vpack.c.bf16 %v4588_v15, %v4586_v31  ;;  %v3952_v24 = vunpack.c.h.bf16 %v3868_v47  ;;  %v3335_v5 = vsub.f32 %v6529_v20, %v6604_v55 }
 0x2c0   : > { %v4250_v54 = vand.u32 2147483648, %v6664_v4  ;;  %v6692_v58 = vpack.c.bf16 %v4592_v60, %v4590_v37  ;;  %v3953_v46 = vunpack.c.l.bf16 %v3869_v6  ;;  %v4087_v17 = vadd.f32 %v4086_v21, %v3950_v32 }
 0x2c1   : > { %v3954_v41 = vunpack.c.h.bf16 %v3869_v6  ;;  %v3955_v34 = vunpack.c.l.bf16 %v6658_v56  ;;  %v6703_v52 = vpack.c.bf16 %v3328_v39, %v3327_v22  ;;  %v6708_v20 = vpack.c.bf16 %v3330_v35, %v3329_v59 }
 0x2c2   : > { %v4248_v33 = vand.u32 2147483647, %v6664_v4  ;;  %v3956_v3 = vunpack.c.h.bf16 %v6658_v56  ;;  %v4088_v14 = vadd.f32 %v4087_v17, %v3951_v8  ;;  %v6714_v26 = vpack.c.bf16 %v3332_v45, %v3331_v38  ;;  %v6753_v17 = vpop.f32.mrf.mxu3 }
 0x2c3   : > { %v3957_v22 = vunpack.c.l.bf16 %v6687_v62  ;;  %v3958_v49 = vunpack.c.h.bf16 %v6687_v62  ;;  %v6722_v28 = vpack.c.bf16 %v3334_v12, %v3333_v1  ;;  %v6724_v55 = vpack.c.bf16 %v3336_v63, %v3335_v5  ;;  %v6747_v62 = vpop.f32.mrf.mxu0 }
 0x2c4   : > { %vm4244_vm4 = vweird.f32 %v6664_v4  ;;  %v4251_v39 = vor.u32 1.1754944e-38, %v4250_v54  ;;  %v3959_v59 = vunpack.c.l.bf16 %v6692_v58  ;;  %v3960_v35 = vunpack.c.h.bf16 %v6692_v58 }
 0x2c5   : > { %v4089_v38 = vadd.f32 %v4088_v14, %v3952_v24  ;;  %v4594_v48 = vpop.eup %4593  ;;  %v3513_v9 = vunpack.c.l.bf16 %v3425_v19  ;;  %v3514_v30 = vunpack.c.h.bf16 %v3425_v19  ;;  %v3515_v51 = vunpack.c.l.bf16 %v6675_v27  ;;  %v6749_v24 = vpop.f32.mrf.mxu1 }
 0x2c6   : > { %v3516_v45 = vunpack.c.h.bf16 %v6675_v27  ;;  %v4240_v2 = vmul.f32 %v4594_v48, %v6664_v4  ;;  %vm6732_vm5 = vcmp.eq.f32.partialorder %v4248_v33, 8.507059e+37  ;;  %v3517_v13 = vunpack.c.l.bf16 %v6680_v0  ;;  %v6743_v15 = vpop.f32.mrf.mxu2 }
 0x2c7   : > { %v4090_v1 = vadd.f32 %v4089_v38, %v3953_v46  ;;  %v3518_v42 = vunpack.c.h.bf16 %v6680_v0  ;;  %vm4245_vm6 = vweird.f32 %v4594_v48  ;;  %v3519_v18 = vunpack.c.l.bf16 %v6703_v52 }
 0x2c8   : > { %v3520_v11 = vunpack.c.h.bf16 %v6703_v52  ;;  %v3521_v12 = vunpack.c.l.bf16 %v6708_v20  ;;  %v4241_v31 = vsub.f32 1.0, %v4240_v2  ;;  %v3522_v56 = vunpack.c.h.bf16 %v6708_v20  ;;  %vm4246_vm8 = vmor %vm4244_vm4, %vm4245_vm6 }
 0x2c9   : > { %v4091_v6 = vadd.f32 %v4090_v1, %v3954_v41  ;;  %v3523_v63 = vunpack.c.l.bf16 %v6714_v26  ;;  %v3524_v21 = vunpack.c.h.bf16 %v6714_v26  ;;  %v3689_v19 = vmul.f32 1.442695, %v3513_v9 }
 0x2ca   : > { %v3691_v27 = vmul.f32 1.442695, %v3514_v30  ;;  %v3693_v37 = vmul.f32 1.442695, %v3515_v51  ;;  %v4242_v32 = vmul.f32 %v4594_v48, %v4241_v31  ;;  %v3525_v0 = vunpack.c.l.bf16 %v6722_v28 }
 0x2cb   : > { %v4092_v8 = vadd.f32 %v4091_v6, %v3955_v34  ;;  %v3695_v60 = vmul.f32 1.442695, %v3516_v45  ;;  %v3526_v5 = vunpack.c.h.bf16 %v6722_v28  ;;  %v3527_v54 = vunpack.c.l.bf16 %v6724_v55 }
 0x2cc   : > { %4595 = vpow2.f32 %v3689_v19  ;;  %v3697_v46 = vmul.f32 1.442695, %v3517_v13  ;;  %v4243_v41 = vadd.f32 %v4594_v48, %v4242_v32  ;;  %v3699_v20 = vmul.f32 1.442695, %v3518_v42 }
 0x2cd   : > { %v4093_v52 = vadd.f32 %v4092_v8, %v3956_v3  ;;  %4597 = vpow2.f32 %v3691_v27  ;;  %v3528_v34 = vunpack.c.h.bf16 %v6724_v55  ;;  %v3701_v33 = vmul.f32 1.442695, %v3519_v18  ;;  %v6779_v13 = vpop.f32.mrf.mxu1 }
 0x2ce   : > { %4599 = vpow2.f32 %v3693_v37  ;;  %v6762_v14 = vunpack.c.l.bf16 %v2897_v29  ;;  %v4247_v26 = vsel %vm4246_vm8, %v4594_v48, %v4243_v41  ;;  %v3703_v38 = vmul.f32 1.442695, %v3520_v11  ;;  %v6767_v2 = vpop.f32.mrf.mxu2  ;;  %v6789_v37 = vpop.f32.mrf.mxu3 }
 0x2cf   : > { %v4094_v28 = vadd.f32 %v4093_v52, %v3957_v22  ;;  %4601 = vpow2.f32 %v3695_v60  ;;  %v4252_v3 = vsel %vm6732_vm5, %v4251_v39, %v4247_v26  ;;  %v3705_v9 = vmul.f32 1.442695, %v3521_v12  ;;  %v7641_v12 = vld [vmem:[#allocation16_spill] sm:$0xff] }
 0x2d0   : > { %4603 = vpow2.f32 %v3697_v46  ;;  %v3707_v30 = vmul.f32 1.442695, %v3522_v56  ;;  %v4338_v51 = vmul.f32 %v4252_v3, %v6664_v4  ;;  %v3709_v45 = vmul.f32 1.442695, %v3523_v63 }
 0x2d1   : > { %v4095_v55 = vadd.f32 %v4094_v28, %v3958_v49  ;;  %4605 = vpow2.f32 %v3699_v20  ;;  %v3711_v29 = vmul.f32 1.442695, %v3524_v21  ;;  %v3713_v48 = vmul.f32 1.442695, %v3525_v0  ;;  %v6777_v49 = vpop.f32.mrf.mxu0 }
 0x2d2   : > { %v4596_v61 = vpop.eup %4595  ;;  %4607 = vpow2.f32 %v3701_v33  ;;  %v3715_v22 = vmul.f32 1.442695, %v3526_v5  ;;  %v6771_v47 = vsel %vm4353_vm7, %v4338_v51, %v6652_v10  ;;  %v2770_v4 = vmul.f32 %v6645_v57, %v7636_v16  ;;  %v7642_v57 = vld [vmem:[#allocation11_spill] sm:$0xff] }
 0x2d3   : > { %v4598_v1 = vpop.eup %4597  ;;  %v4096_v39 = vadd.f32 %v4095_v55, %v3959_v59  ;;  %4609 = vpow2.f32 %v3703_v38  ;;  %v2913_v11 = vpack.c.bf16 %v6684_v43, %v6684_v43  ;;  %v2801_v10 = vmul.f32 %v6634_v53, %v7641_v12 }
 0x2d4   : > { %v4600_v42 = vpop.eup %4599  ;;  %4611 = vpow2.f32 %v3705_v9  ;;  %v3873_v18 = vpack.c.bf16 %v4598_v1, %v4596_v61  ;;  %v3717_v6 = vmul.f32 1.442695, %v3527_v54  ;;  %v2817_v56 = vmul.f32 %v6638_v40, %v7642_v57 }
 0x2d5   : > { %v4602_v31 = vpop.eup %4601  ;;  %v4097_v59 = vadd.f32 %v4096_v39, %v3960_v35  ;;  %4613 = vpow2.f32 %v3707_v30  ;;  %v3719_v53 = vmul.f32 1.442695, %v3528_v34  ;;  %v2898_v8 = vpack.c.bf16 %v2770_v4, %v2770_v4  ;;  %v6799_v30 = vpop.f32.mrf.mxu1 }
 0x2d6   : > { %v4604_v63 = vpop.eup %4603  ;;  %4615 = vpow2.f32 %v3709_v45  ;;  %v3874_v21 = vpack.c.bf16 %v4602_v31, %v4600_v42  ;;  %v3961_v19 = vunpack.c.l.bf16 %v3873_v18  ;;  %v3962_v27 = vunpack.c.h.bf16 %v3873_v18  ;;  %v6793_v41 = vpop.f32.mrf.mxu2 }
 0x2d7   : > { %v4606_v43 = vpop.eup %4605  ;;  %v4098_v32 = vrot.slane %v4097_v59, 4  ;;  %4617 = vpow2.f32 %v3711_v29  ;;  %v6791_v35 = vunpack.c.l.bf16 %v2913_v11  ;;  %v2929_v60 = vpack.c.bf16 %v2801_v10, %v2801_v10 }
 0x2d8   : > { %v4608_v0 = vpop.eup %4607  ;;  %4619 = vpow2.f32 %v3713_v48  ;;  %v3875_v58 = vpack.c.bf16 %v4606_v43, %v4604_v63  ;;  %v3963_v54 = vunpack.c.l.bf16 %v3874_v21  ;;  %v4104_v46 = vadd.f32 %v3962_v27, %v3961_v19 }
 0x2d9   : > { %v4610_v5 = vpop.eup %4609  ;;  %v4099_v40 = vadd.f32 %v4098_v32, %v4097_v59  ;;  %4621 = vpow2.f32 %v3715_v22  ;;  %v3964_v33 = vunpack.c.h.bf16 %v3874_v21  ;;  %v2945_v26 = vpack.c.bf16 %v2817_v56, %v2817_v56  ;;  %v6797_v9 = vpop.f32.mrf.mxu0 }
 0x2da   : > { %v4612_v52 = vpop.eup %4611  ;;  %4623 = vpow2.f32 %v3717_v6  ;;  %v3876_v20 = vpack.c.bf16 %v4610_v5, %v4608_v0  ;;  %v4105_v38 = vadd.f32 %v4104_v46, %v3963_v54  ;;  %v6795_v3 = vunpack.c.l.bf16 %v2898_v8  ;;  %v6820_v32 = vpop.f32.mrf.mxu3 }
 0x2db   : > { %v4614_v34 = vpop.eup %4613  ;;  %v4100_v28 = vrot.slane %v4099_v40, 2  ;;  %4625 = vpow2.f32 %v3719_v53  ;;  %v3965_v45 = vunpack.c.l.bf16 %v3875_v58  ;;  %v6803_v61 = vunpack.c.l.bf16 %v2929_v60 }
 0x2dc   : > { %v4616_v51 = vpop.eup %4615  ;;  %v6801_v55 = vpack.c.bf16 %v4614_v34, %v4612_v52  ;;  %v2786_v29 = vmul.f32 %v6647_v36, %v7638_v50  ;;  %v4106_v1 = vadd.f32 %v4105_v38, %v3964_v33  ;;  %v3173_v39 = vmax.f32 %v6762_v14, %v6795_v3 }
 0x2dd   : > { %7643 = vst [vmem:[#allocation8_spill] sm:$0xff] %v6803_v61  ;;  %v4618_v48 = vpop.eup %4617  ;;  %v4101_v22 = vadd.f32 %v4100_v28, %v4099_v40  ;;  %v2802_v4 = vmul.f32 %v6694_v7, %v7641_v12  ;;  %v3966_v18 = vunpack.c.h.bf16 %v3875_v58  ;;  %v3967_v11 = vunpack.c.l.bf16 %v3876_v20  ;;  %v6839_v28 = vpop.f32.mrf.mxu1 }
 0x2de   : > { %v4620_v42 = vpop.eup %4619  ;;  %v6811_v10 = vunpack.c.l.bf16 %v2945_v26  ;;  %v2914_v31 = vpack.c.bf16 %v2786_v29, %v2786_v29  ;;  %v4107_v56 = vadd.f32 %v4106_v1, %v3965_v45  ;;  %v2818_v36 = vmul.f32 %v6710_v44, %v7642_v57  ;;  %v6831_v46 = vpop.f32.mrf.mxu2 }
 0x2df   : > { %v4622_v59 = vpop.eup %4621  ;;  %v4102_v6 = vrot.slane %v4101_v22, 1  ;;  %v2930_v63 = vpack.c.bf16 %v2802_v4, %v2802_v4  ;;  %v6815_v19 = vpack.c.bf16 %v4618_v48, %v4616_v51  ;;  %v3968_v27 = vunpack.c.h.bf16 %v3876_v20 }
 0x2e0   : > { %7644 = vst [vmem:[#allocation4_spill] sm:$0xff] %v6811_v10  ;;  %v4624_v21 = vpop.eup %4623  ;;  %v3969_v43 = vunpack.c.l.bf16 %v6801_v55  ;;  %v6818_v7 = vunpack.c.l.bf16 %v2914_v31  ;;  %v4108_v0 = vadd.f32 %v4107_v56, %v3966_v18  ;;  %v2946_v60 = vpack.c.bf16 %v2818_v36, %v2818_v36 }
 0x2e1   : > { %v4626_v53 = vpop.eup %4625  ;;  %v4103_v8 = vadd.f32 %v4102_v6, %v4101_v22  ;;  %v6822_v58 = vunpack.c.l.bf16 %v2930_v63  ;;  %v6824_v5 = vpack.c.bf16 %v4622_v59, %v4620_v42  ;;  %v3970_v44 = vunpack.c.h.bf16 %v6801_v55  ;;  %v6837_v34 = vpop.f32.mrf.mxu0 }
 0x2e2   : > { %v6826_v40 = vpack.c.bf16 %v4626_v53, %v4624_v21  ;;  %v3194_v54 = vmax.f32 %v6791_v35, %v6818_v7  ;;  %v4109_v20 = vadd.f32 %v4108_v0, %v3967_v11  ;;  %v6835_v26 = vunpack.c.l.bf16 %v2946_v60 }
 0x2e3   : > { %7645 = vst [vmem:[#allocation12_spill] sm:$0xff] %v6822_v58  ;;  %v4211_v52 = vpack.c.bf16 %v4103_v8, %v4103_v8  ;;  %v3215_v33 = vmax.f32 %v6803_v61, %v6822_v58  ;;  %v3971_v38 = vunpack.c.l.bf16 %v6815_v19  ;;  %v3972_v51 = vunpack.c.h.bf16 %v6815_v19  ;;  %v6871_v8 = vpop.f32.mrf.mxu3 }
 0x2e4   : > { %7646 = vst [vmem:[#allocation14_spill] sm:$0xff] %v6835_v26  ;;  %v2771_v55 = vmul.f32 %v6716_v25, %v7636_v16  ;;  %v2787_v45 = vmul.f32 %v6718_v23, %v7638_v50  ;;  %v4110_v48 = vadd.f32 %v4109_v20, %v3968_v27  ;;  %v3236_v22 = vmax.f32 %v6811_v10, %v6835_v26 }
 0x2e5   : > { %v6847_v29 = vunpack.c.l.bf16 %v4211_v52  ;;  %v2803_v1 = vmul.f32 %v6743_v15, %v7641_v12  ;;  %v2819_v18 = vmul.f32 %v6753_v17, %v7642_v57  ;;  %v2772_v25 = vmul.f32 %v6747_v62, %v7636_v16 }
 0x2e6   : > { %v2899_v4 = vpack.c.bf16 %v2771_v55, %v2771_v55  ;;  %v2915_v42 = vpack.c.bf16 %v2787_v45, %v2787_v45  ;;  %v3973_v23 = vunpack.c.l.bf16 %v6824_v5  ;;  %v3974_v11 = vunpack.c.h.bf16 %v6824_v5  ;;  %v6890_v45 = vpop.f32.mrf.mxu2 }
 0x2e7   : > { %4627 = vrcp.f32 %v6847_v29  ;;  %v3975_v31 = vunpack.c.l.bf16 %v6826_v40  ;;  %v4111_v59 = vadd.f32 %v4110_v48, %v3969_v43  ;;  %v2931_v56 = vpack.c.bf16 %v2803_v1, %v2803_v1 }
 0x2e8   : > { %v6861_v6 = vunpack.c.l.bf16 %v2899_v4  ;;  %v6863_v15 = vunpack.c.l.bf16 %v2915_v42  ;;  %v4262_v63 = vand.u32 2147483647, %v6847_v29  ;;  %v4264_v17 = vand.u32 2147483648, %v6847_v29 }
 0x2e9   : > { %v2947_v36 = vpack.c.bf16 %v2819_v18, %v2819_v18  ;;  %v2900_v62 = vpack.c.bf16 %v2772_v25, %v2772_v25  ;;  %v4112_v21 = vadd.f32 %v4111_v59, %v3970_v44  ;;  %v6869_v53 = vunpack.c.l.bf16 %v2931_v56  ;;  %v6881_v52 = vpop.f32.mrf.mxu0  ;;  %v6883_v44 = vpop.f32.mrf.mxu1 }
 0x2ea   : > { %v3174_v19 = vmax.f32 %v3173_v39, %v6861_v6  ;;  %v3195_v27 = vmax.f32 %v3194_v54, %v6863_v15  ;;  %v2788_v60 = vmul.f32 %v6749_v24, %v7638_v50  ;;  %v2804_v5 = vmul.f32 %v6767_v2, %v7641_v12 }
 0x2eb   : > { %7647 = vst [vmem:[#allocation19_spill] sm:$0xff] %v6869_v53  ;;  %v6873_v43 = vunpack.c.l.bf16 %v2947_v36  ;;  %v6875_v0 = vunpack.c.l.bf16 %v2900_v62  ;;  %v4113_v39 = vadd.f32 %v4112_v21, %v3971_v38  ;;  %v3216_v54 = vmax.f32 %v3215_v33, %v6869_v53 }
 0x2ec   : > { %v2820_v20 = vmul.f32 %v6789_v37, %v7642_v57  ;;  %v2773_v55 = vmul.f32 %v6777_v49, %v7636_v16  ;;  %v2916_v1 = vpack.c.bf16 %v2788_v60, %v2788_v60  ;;  %v2932_v4 = vpack.c.bf16 %v2804_v5, %v2804_v5 }
 0x2ed   : > { %7648 = vst [vmem:[#allocation21_spill] sm:$0xff] %v6873_v43  ;;  %v4628_v48 = vpop.eup %4627  ;;  %v3237_v24 = vmax.f32 %v3236_v22, %v6873_v43  ;;  %v3175_v2 = vmax.f32 %v3174_v19, %v6875_v0  ;;  %v4114_v38 = vadd.f32 %v4113_v39, %v3972_v51  ;;  %v2789_v49 = vmul.f32 %v6779_v13, %v7638_v50 }
 0x2ee   : > { %v4254_v42 = vmul.f32 %v4628_v48, %v6847_v29  ;;  %vm4259_vm9 = vweird.f32 %v4628_v48  ;;  %v2948_v33 = vpack.c.bf16 %v2820_v20, %v2820_v20  ;;  %v6895_v18 = vunpack.c.l.bf16 %v2916_v1 }
 0x2ef   : > { %v6897_v37 = vunpack.c.l.bf16 %v2932_v4  ;;  %v2901_v25 = vpack.c.bf16 %v2773_v55, %v2773_v55  ;;  %v4115_v56 = vadd.f32 %v4114_v38, %v3973_v23  ;;  %v2805_v36 = vmul.f32 %v6793_v41, %v7641_v12  ;;  %v6925_v4 = vpop.f32.mrf.mxu3 }
 0x2f0   : > { %v4255_v59 = vsub.f32 1.0, %v4254_v42  ;;  %v6901_v22 = vunpack.c.l.bf16 %v2948_v33  ;;  %v3196_v62 = vmax.f32 %v3195_v27, %v6895_v18  ;;  %v2917_v19 = vpack.c.bf16 %v2789_v49, %v2789_v49 }
 0x2f1   : > { %7649 = vst [vmem:[#allocation23_spill] sm:$0xff] %v6897_v37  ;;  %v3217_v51 = vmax.f32 %v3216_v54, %v6897_v37  ;;  %v6907_v21 = vunpack.c.l.bf16 %v2901_v25  ;;  %v4116_v5 = vadd.f32 %v4115_v56, %v3974_v11  ;;  %v2933_v20 = vpack.c.bf16 %v2805_v36, %v2805_v36  ;;  %v6918_v27 = vpop.f32.mrf.mxu0  ;;  %v6920_v54 = vpop.f32.mrf.mxu1 }
 0x2f2   : > { %7650 = vst [vmem:[#allocation3_spill] sm:$0xff] %v6901_v22  ;;  %v4256_v60 = vmul.f32 %v4628_v48, %v4255_v59  ;;  %v3238_v39 = vmax.f32 %v3237_v24, %v6901_v22  ;;  %v3976_v13 = vunpack.c.h.bf16 %v6826_v40  ;;  %v6914_v55 = vunpack.c.l.bf16 %v2917_v19  ;;  %v6934_v25 = vpop.f32.mrf.mxu2 }
 0x2f3   : > { %v6912_v23 = vmax.f32 %v3175_v2, %v6907_v21  ;;  %v2821_v41 = vmul.f32 %v6820_v32, %v7642_v57  ;;  %vm4258_vm10 = vweird.f32 %v6847_v29  ;;  %v4117_v11 = vadd.f32 %v4116_v5, %v3975_v31 }
 0x2f4   : > { %v4257_v1 = vadd.f32 %v4628_v48, %v4256_v60  ;;  %v6923_v24 = vunpack.c.l.bf16 %v2933_v20  ;;  %vm4260_vm11 = vmor %vm4258_vm10, %vm4259_vm9  ;;  %v4265_v40 = vor.u32 1.1754944e-38, %v4264_v17  ;;  %v6929_v2 = vmax.f32 %v3196_v62, %v6914_v55 }
 0x2f5   : > { %v2949_v42 = vpack.c.bf16 %v2821_v41, %v2821_v41  ;;  %vm4263_vm12 = vcmp.eq.f32.partialorder %v4262_v63, 8.507059e+37  ;;  %v4118_v38 = vadd.f32 %v4117_v11, %v3976_v13  ;;  %vm4359_vm4 = vcmask 1044484  }
 0x2f6   : > { %7651 = vst [vmem:[#allocation24_spill] sm:$0xff] %v6923_v24  ;;  %v4261_v32 = vsel %vm4260_vm11, %v4628_v48, %v4257_v1  ;;  %v6932_v33 = vmax.f32 %v3217_v51, %v6923_v24  ;;  %vm4361_vm9 = vcmask 1045509  }
 0x2f7   : > { %v4266_v31 = vsel %vm4263_vm12, %v4265_v40, %v4261_v32  ;;  %v6936_v49 = vunpack.c.l.bf16 %v2949_v42  ;;  %v4119_v56 = vrot.slane %v4118_v38, 4  ;;  %v6943_v60 = vpop.f32.mrf.mxu3 }
 0x2f8   : > { %v4339_v59 = vmul.f32 %v4266_v31, %v6847_v29 }
 0x2f9   : > { %7652 = vst [vmem:[#allocation26_spill] sm:$0xff] %v6936_v49  ;;  %v6940_v17 = vmax.f32 %v3238_v39, %v6936_v49  ;;  %v4120_v48 = vadd.f32 %v4119_v56, %v4118_v38  ;;  %v2252_v63 = vpop.f32.mrf.mxu0  ;;  %v2397_v62 = vpop.f32.mrf.mxu1  ;;  %v2774_v38 = vmul.f32 %v6797_v9, %v7636_v16 }
 0x2fa   : > { %v4356_v36 = vsel %vm4355_vm13, %v4339_v59, %v6771_v47  ;;  %v6945_v20 = vpop.f32.mrf.mxu2  ;;  %v2790_v59 = vmul.f32 %v6799_v30, %v7638_v50  ;;  %v2776_v30 = vmul.f32 %v6881_v52, %v7636_v16 }
 0x2fb   : > { %v4121_v19 = vrot.slane %v4120_v48, 2 }
 0x2fc   : > { %v2918_v22 = vpack.c.bf16 %v2790_v59, %v2790_v59  ;;  %v2793_v59 = vmul.f32 %v6920_v54, %v7638_v50 }
 0x2fd   : > { %v4122_v51 = vadd.f32 %v4121_v19, %v4120_v48  ;;  %v2775_v48 = vmul.f32 %v6837_v34, %v7636_v16 }
 0x2fe   : > { %v6973_v37 = vunpack.c.l.bf16 %v2918_v22 }
 0x2ff   : > { %v4123_v5 = vrot.slane %v4122_v51, 1  ;;  %v6947_v39 = vpop.f32.mrf.mxu3  ;;  %v2903_v26 = vpack.c.bf16 %v2775_v48, %v2775_v48 }
 0x301   : > { %v4124_v13 = vadd.f32 %v4123_v5, %v4122_v51  ;;  %v2255_v41 = vpop.f32.mrf.mxu0  ;;  %v2400_v1 = vpop.f32.mrf.mxu1  ;;  %v2902_v51 = vpack.c.bf16 %v2774_v38, %v2774_v38  ;;  %v2791_v5 = vmul.f32 %v6839_v28, %v7638_v50  ;;  %v6977_v58 = vunpack.c.l.bf16 %v2903_v26 }
 0x302   : > { %v6949_v40 = vpop.f32.mrf.mxu2  ;;  %v2779_v22 = vmul.f32 %v2255_v41, %v7636_v16 }
 0x303   : > { %v4212_v29 = vpack.c.bf16 %v4124_v13, %v4124_v13  ;;  %v2919_v10 = vpack.c.bf16 %v2791_v5, %v2791_v5  ;;  %v6971_v52 = vunpack.c.l.bf16 %v2902_v51  ;;  %v2794_v5 = vmul.f32 %v2397_v62, %v7638_v50 }
 0x305   : > { %v4220_v11 = vunpack.c.l.bf16 %v4212_v29 }
 0x307   : > { %4629 = vrcp.f32 %v4220_v11  ;;  %v4278_v19 = vand.u32 2147483648, %v4220_v11  ;;  %v6959_v13 = vpop.f32.mrf.mxu3  ;;  %v4276_v49 = vand.u32 2147483647, %v4220_v11  ;;  %vm4272_vm15 = vweird.f32 %v4220_v11 }
 0x309   : > { %v2257_v47 = vpop.f32.mrf.mxu0  ;;  %v2402_v42 = vpop.f32.mrf.mxu1  ;;  %v4279_v28 = vor.u32 1.1754944e-38, %v4278_v19  ;;  %vm4277_vm1 = vcmp.eq.f32.partialorder %v4276_v49, 8.507059e+37  ;;  %v2778_v19 = vmul.f32 %v2252_v63, %v7636_v16  ;;  %v3198_v63 = vmax.f32 %v6929_v2, %v6973_v37 }
 0x30a   : > { %v6965_v34 = vpop.f32.mrf.mxu2  ;;  %v2780_v41 = vmul.f32 %v2257_v47, %v7636_v16  ;;  %v2806_v47 = vmul.f32 %v6831_v46, %v7641_v12 }
 0x30d   : > { %v4630_v32 = vpop.eup %4629 }
 0x30e   : > { %v4268_v31 = vmul.f32 %v4630_v32, %v4220_v11  ;;  %vm4273_vm14 = vweird.f32 %v4630_v32 }
 0x30f   : > { %vm4274_vm0 = vmor %vm4272_vm15, %vm4273_vm14  ;;  %v6993_v62 = vpop.f32.mrf.mxu3 }
 0x310   : > { %v4269_v56 = vsub.f32 1.0, %v4268_v31  ;;  %v2792_v31 = vmul.f32 %v6883_v44, %v7638_v50 }
 0x311   : > { %v2260_v9 = vpop.f32.mrf.mxu0  ;;  %v2405_v43 = vpop.f32.mrf.mxu1 }
 0x312   : > { %v4270_v29 = vmul.f32 %v4630_v32, %v4269_v56  ;;  %v2777_v56 = vmul.f32 %v6918_v27, %v7636_v16  ;;  %v2920_v53 = vpack.c.bf16 %v2792_v31, %v2792_v31  ;;  %v6979_v27 = vunpack.c.l.bf16 %v2919_v10  ;;  %v7003_v2 = vpop.f32.mrf.mxu2 }
 0x313   : > { %v2922_v31 = vpack.c.bf16 %v2794_v5, %v2794_v5 }
 0x314   : > { %v4271_v38 = vadd.f32 %v4630_v32, %v4270_v29  ;;  %v2904_v29 = vpack.c.bf16 %v2776_v30, %v2776_v30  ;;  %v2905_v54 = vpack.c.bf16 %v2777_v56, %v2777_v56  ;;  %v6991_v10 = vunpack.c.l.bf16 %v2920_v53 }
 0x315   : > { %v2907_v53 = vpack.c.bf16 %v2779_v22, %v2779_v22  ;;  %v7013_v5 = vunpack.c.l.bf16 %v2922_v31  ;;  %v2822_v31 = vmul.f32 %v6871_v8, %v7642_v57 }
 0x316   : > { %v4275_v24 = vsel %vm4274_vm0, %v4630_v32, %v4271_v38  ;;  %v2921_v32 = vpack.c.bf16 %v2793_v59, %v2793_v59  ;;  %v6989_v26 = vunpack.c.l.bf16 %v2904_v29  ;;  %v2797_v29 = vmul.f32 %v2405_v43, %v7638_v50 }
 0x317   : > { %v4280_v44 = vsel %vm4277_vm1, %v4279_v28, %v4275_v24  ;;  %v2795_v24 = vmul.f32 %v2400_v1, %v7638_v50  ;;  %v2796_v1 = vmul.f32 %v2402_v42, %v7638_v50  ;;  %v3199_v28 = vmax.f32 %v3198_v63, %v6979_v27 }
 0x318   : > { %v4340_v48 = vmul.f32 %v4280_v44, %v4220_v11  ;;  %v3177_v11 = vmax.f32 %v6912_v23, %v6971_v52  ;;  %v6999_v23 = vunpack.c.l.bf16 %v2905_v54  ;;  %v7001_v56 = vunpack.c.l.bf16 %v2921_v32 }
 0x319   : > { %v2262_v51 = vpop.f32.mrf.mxu0  ;;  %v2407_v30 = vpop.f32.mrf.mxu1  ;;  %v2923_v59 = vpack.c.bf16 %v2795_v24, %v2795_v24  ;;  %v2781_v44 = vmul.f32 %v2260_v9, %v7636_v16  ;;  %v2908_v54 = vpack.c.bf16 %v2780_v41, %v2780_v41  ;;  %v2924_v32 = vpack.c.bf16 %v2796_v1, %v2796_v1 }
 0x31a   : > { %v6981_v49 = vsel %vm4357_vm2, %v4340_v48, %v4356_v36  ;;  %v2906_v36 = vpack.c.bf16 %v2778_v19, %v2778_v19  ;;  %v3178_v38 = vmax.f32 %v3177_v11, %v6977_v58  ;;  %v3200_v48 = vmax.f32 %v3199_v28, %v6991_v10 }
 0x31b   : > { %7653 = vst [vmem:[#allocation15_spill] sm:$0xff] %v6981_v49  ;;  %v2782_v9 = vmul.f32 %v2262_v51, %v7636_v16  ;;  %v2798_v43 = vmul.f32 %v2407_v30, %v7638_v50  ;;  %v7019_v11 = vunpack.c.l.bf16 %v2907_v53  ;;  %v7021_v46 = vunpack.c.l.bf16 %v2923_v59 }
 0x31c   : > { %v3179_v42 = vmax.f32 %v3178_v38, %v6989_v26  ;;  %v7011_v19 = vunpack.c.l.bf16 %v2906_v36  ;;  %v3201_v24 = vmax.f32 %v3200_v48, %v7001_v56  ;;  %v2909_v63 = vpack.c.bf16 %v2781_v44, %v2781_v44 }
 0x31d   : > { %7654 = vst [vmem:[#allocation20_spill] sm:$0xff] %v7021_v46  ;;  %v2925_v38 = vpack.c.bf16 %v2797_v29, %v2797_v29  ;;  %v7029_v30 = vunpack.c.l.bf16 %v2908_v54  ;;  %v7031_v53 = vunpack.c.l.bf16 %v2924_v32  ;;  %v2934_v59 = vpack.c.bf16 %v2806_v47, %v2806_v47  ;;  %v7035_v29 = vpop.f32.mrf.mxu3 }
 0x31e   : > { %v3180_v22 = vmax.f32 %v3179_v42, %v6999_v23  ;;  %v3202_v51 = vmax.f32 %v3201_v24, %v7013_v5  ;;  %v2807_v44 = vmul.f32 %v6890_v45, %v7641_v12  ;;  %v2910_v48 = vpack.c.bf16 %v2782_v9, %v2782_v9  ;;  %v7043_v24 = vpop.f32.mrf.mxu2 }
 0x31f   : > { %7655 = vst [vmem:[#allocation22_spill] sm:$0xff] %v7031_v53  ;;  %v2926_v8 = vpack.c.bf16 %v2798_v43, %v2798_v43  ;;  %v7039_v49 = vunpack.c.l.bf16 %v2909_v63  ;;  %v2950_v54 = vpack.c.bf16 %v2822_v31, %v2822_v31  ;;  %v2823_v45 = vmul.f32 %v6925_v4, %v7642_v57 }
 0x320   : > { %v3181_v42 = vmax.f32 %v3180_v22, %v7011_v19  ;;  %v7041_v22 = vunpack.c.l.bf16 %v2925_v38  ;;  %v2808_v9 = vmul.f32 %v6934_v25, %v7641_v12  ;;  %v7053_v63 = vunpack.c.l.bf16 %v2910_v48 }
 0x321   : > { %v2265_v36 = vpop.f32.mrf.mxu0  ;;  %v2410_v28 = vpop.f32.mrf.mxu1  ;;  %v7055_v38 = vunpack.c.l.bf16 %v2926_v8  ;;  %v2935_v31 = vpack.c.bf16 %v2807_v44, %v2807_v44  ;;  %v7067_v8 = vunpack.c.l.bf16 %v2950_v54  ;;  %v2951_v44 = vpack.c.bf16 %v2823_v45, %v2823_v45 }
 0x322   : > { %v2783_v41 = vmul.f32 %v2265_v36, %v7636_v16  ;;  %v2799_v1 = vmul.f32 %v2410_v28, %v7638_v50  ;;  %v3182_v36 = vmax.f32 %v3181_v42, %v7019_v11  ;;  %v3203_v28 = vmax.f32 %v3202_v51, %v7021_v46  ;;  %7656 = vst [vmem:[#allocation2_spill] sm:$0xff] %v7041_v22 }
 0x323   : > { %v7051_v51 = vunpack.c.l.bf16 %v2934_v59  ;;  %7657 = vst [vmem:[#allocation17_spill] sm:$0xff] %v7067_v8  ;;  %vm4363_vm1 = vcmask 1046534  }
 0x324   : > { %v2911_v32 = vpack.c.bf16 %v2783_v41, %v2783_v41  ;;  %v2927_v47 = vpack.c.bf16 %v2799_v1, %v2799_v1  ;;  %v3183_v43 = vmax.f32 %v3182_v36, %v7029_v30  ;;  %v3204_v42 = vmax.f32 %v3203_v28, %v7031_v53 }
 0x325   : > { %v2824_v41 = vmul.f32 %v6943_v60, %v7642_v57  ;;  %v2936_v28 = vpack.c.bf16 %v2808_v9, %v2808_v9  ;;  %v2809_v60 = vmul.f32 %v6945_v20, %v7641_v12  ;;  %v7073_v53 = vunpack.c.l.bf16 %v2935_v31 }
 0x326   : > { %v3184_v1 = vmax.f32 %v3183_v43, %v7039_v49  ;;  %v3205_v4 = vmax.f32 %v3204_v42, %v7041_v22  ;;  %v7061_v46 = vunpack.c.l.bf16 %v2911_v32  ;;  %v7063_v36 = vunpack.c.l.bf16 %v2927_v47 }
 0x327   : > { %v2952_v47 = vpack.c.bf16 %v2824_v41, %v2824_v41  ;;  %v3219_v31 = vmax.f32 %v6932_v33, %v7051_v51  ;;  %v7091_v41 = vunpack.c.l.bf16 %v2936_v28  ;;  %v2811_v33 = vmul.f32 %v6965_v34, %v7641_v12 }
 0x328   : > { %v3185_v43 = vmax.f32 %v3184_v1, %v7053_v63  ;;  %v3206_v42 = vmax.f32 %v3205_v4, %v7055_v38  ;;  %v7087_v1 = vunpack.c.l.bf16 %v2951_v44  ;;  %v2552_v4 = vpop.f32.mrf.mxu2 }
 0x329   : > { %v2267_v61 = vpop.f32.mrf.mxu0  ;;  %v2412_v25 = vpop.f32.mrf.mxu1  ;;  %7659 = vst [vmem:[#allocation13_spill] sm:$0xff] %v7091_v41  ;;  %v7100_v44 = vunpack.c.l.bf16 %v2952_v47 }
 0x32a   : > { %v2784_v59 = vmul.f32 %v2267_v61, %v7636_v16  ;;  %v2800_v48 = vmul.f32 %v2412_v25, %v7638_v50  ;;  %v2825_v16 = vmul.f32 %v6947_v39, %v7642_v57  ;;  %v2810_v50 = vmul.f32 %v6949_v40, %v7641_v12  ;;  %v2695_v61 = vpop.f32.mrf.mxu3  ;;  %7658 = vst [vmem:[#allocation25_spill] sm:$0xff] %v7087_v1 }
 0x32b   : > { %v3186_v54 = vmax.f32 %v3185_v43, %v7061_v46  ;;  %v3207_v20 = vmax.f32 %v3206_v42, %v7063_v36  ;;  %v2826_v39 = vmul.f32 %v6959_v13, %v7642_v57  ;;  %v2937_v40 = vpack.c.bf16 %v2809_v60, %v2809_v60  ;;  %7660 = vst [vmem:[#allocation6_spill] sm:$0xff] %v7100_v44 }
 0x32c   : > { %v2912_v22 = vpack.c.bf16 %v2784_v59, %v2784_v59  ;;  %v2928_v32 = vpack.c.bf16 %v2800_v48, %v2800_v48  ;;  %v3220_v48 = vmax.f32 %v3219_v31, %v7073_v53  ;;  %v2953_v43 = vpack.c.bf16 %v2825_v16, %v2825_v16 }
 0x32d   : > { %v2938_v13 = vpack.c.bf16 %v2810_v50, %v2810_v50  ;;  %v7108_v16 = vunpack.c.l.bf16 %v2937_v40  ;;  %v2939_v50 = vpack.c.bf16 %v2811_v33, %v2811_v33  ;;  %v2814_v33 = vmul.f32 %v2552_v4, %v7641_v12 }
 0x32e   : > { %v7081_v45 = vunpack.c.l.bf16 %v2912_v22  ;;  %v7083_v9 = vunpack.c.l.bf16 %v2928_v32  ;;  %v3240_v22 = vmax.f32 %v6940_v17, %v7067_v8  ;;  %v2954_v32 = vpack.c.bf16 %v2826_v39, %v2826_v39 }
 0x32f   : > { %v2812_v17 = vmul.f32 %v7003_v2, %v7641_v12  ;;  %7661 = vst [vmem:[#allocation7_spill] sm:$0xff] %v7108_v16  ;;  %v7110_v47 = vunpack.c.l.bf16 %v2953_v43  ;;  %v2828_v8 = vmul.f32 %v7035_v29, %v7642_v57  ;;  %v2813_v39 = vmul.f32 %v7043_v24, %v7641_v12 }
 0x330   : > { %v3187_v25 = vmax.f32 %v3186_v54, %v7081_v45  ;;  %v3208_v59 = vmax.f32 %v3207_v20, %v7083_v9  ;;  %v3241_v60 = vmax.f32 %v3240_v22, %v7087_v1  ;;  %v2827_v54 = vmul.f32 %v6993_v62, %v7642_v57 }
 0x331   : > { %v3221_v20 = vmax.f32 %v3220_v48, %v7091_v41  ;;  %v7117_v22 = vunpack.c.l.bf16 %v2938_v13  ;;  %v7119_v48 = vunpack.c.l.bf16 %v2954_v32  ;;  %v2956_v13 = vpack.c.bf16 %v2828_v8, %v2828_v8  ;;  %v2555_v41 = vpop.f32.mrf.mxu2 }
 0x332   : > { %v3188_v28 = vrot.slane %v3187_v25, 4  ;;  %v3209_v42 = vrot.slane %v3208_v59, 4  ;;  %v3242_v62 = vmax.f32 %v3241_v60, %v7100_v44  ;;  %v2955_v40 = vpack.c.bf16 %v2827_v54, %v2827_v54  ;;  %v2697_v29 = vpop.f32.mrf.mxu3 }
 0x333   : > { %v3222_v43 = vmax.f32 %v3221_v20, %v7108_v16  ;;  %v7125_v60 = vunpack.c.l.bf16 %v2939_v50  ;;  %v2941_v44 = vpack.c.bf16 %v2813_v39, %v2813_v39  ;;  %v2942_v16 = vpack.c.bf16 %v2814_v33, %v2814_v33 }
 0x334   : > { %v3189_v31 = vmax.f32 %v3187_v25, %v3188_v28  ;;  %v3210_v34 = vmax.f32 %v3208_v59, %v3209_v42  ;;  %v2940_v25 = vpack.c.bf16 %v2812_v17, %v2812_v17  ;;  %v2829_v59 = vmul.f32 %v2695_v61, %v7642_v57 }
 0x335   : > { %v3243_v24 = vmax.f32 %v3242_v62, %v7110_v47  ;;  %v3223_v32 = vmax.f32 %v3222_v43, %v7117_v22  ;;  %v7129_v61 = vunpack.c.l.bf16 %v2955_v40  ;;  %v7135_v8 = vunpack.c.l.bf16 %v2956_v13 }
 0x336   : > { %v3190_v2 = vrot.slane %v3189_v31, 2  ;;  %v3211_v1 = vrot.slane %v3210_v34, 2  ;;  %v7131_v20 = vunpack.c.l.bf16 %v2940_v25  ;;  %v2957_v4 = vpack.c.bf16 %v2829_v59, %v2829_v59 }
 0x337   : > { %v3244_v17 = vmax.f32 %v3243_v24, %v7119_v48  ;;  %v3224_v50 = vmax.f32 %v3223_v32, %v7125_v60  ;;  %v7137_v39 = vunpack.c.l.bf16 %v2941_v44  ;;  %v2815_v62 = vmul.f32 %v2555_v41, %v7641_v12 }
 0x338   : > { %v3191_v28 = vmax.f32 %v3189_v31, %v3190_v2  ;;  %v3212_v42 = vmax.f32 %v3210_v34, %v3211_v1  ;;  %v2830_v1 = vmul.f32 %v2697_v29, %v7642_v57  ;;  %v7142_v43 = vunpack.c.l.bf16 %v2957_v4 }
 0x339   : > { %v3245_v40 = vmax.f32 %v3244_v17, %v7129_v61  ;;  %v3225_v25 = vmax.f32 %v3224_v50, %v7131_v20  ;;  %v7144_v59 = vunpack.c.l.bf16 %v2942_v16  ;;  %v2943_v44 = vpack.c.bf16 %v2815_v62, %v2815_v62 }
 0x33a   : > { %v3192_v54 = vrot.slane %v3191_v28, 1  ;;  %v3213_v34 = vrot.slane %v3212_v42, 1  ;;  %7662 = vst [vmem:[#allocation18_spill] sm:$0xff] %v7142_v43  ;;  %v2958_v33 = vpack.c.bf16 %v2830_v1, %v2830_v1  ;;  %v2700_v32 = vpop.f32.mrf.mxu3 }
 0x33b   : > { %v3246_v24 = vmax.f32 %v3245_v40, %v7135_v8  ;;  %v3226_v13 = vmax.f32 %v3225_v25, %v7137_v39  ;;  %v7162_v62 = vunpack.c.l.bf16 %v2943_v44  ;;  %v2557_v40 = vpop.f32.mrf.mxu2 }
 0x33c   : > { %v3193_v31 = vmax.f32 %v3191_v28, %v3192_v54  ;;  %v3214_v28 = vmax.f32 %v3212_v42, %v3213_v34 }
 0x33d   : > { %v7157_v34 = vmax.f32 %v3246_v24, %v7142_v43  ;;  %v3227_v50 = vmax.f32 %v3226_v13, %v7144_v59 }
 0x33e   : > { %v3261_v2 = vpack.c.bf16 %v3193_v31, %v3193_v31 }
 0x340   : > { %v3269_v29 = vunpack.c.l.bf16 %v3261_v2 }
 0x342   : > { %v3337_v41 = vsub.f32 %v6762_v14, %v3269_v29  ;;  %v3338_v54 = vsub.f32 %v6795_v3, %v3269_v29  ;;  %v3339_v17 = vsub.f32 %v6861_v6, %v3269_v29  ;;  %v3340_v4 = vsub.f32 %v6875_v0, %v3269_v29 }
 0x343   : > { %v3341_v16 = vsub.f32 %v6907_v21, %v3269_v29  ;;  %v3342_v1 = vsub.f32 %v6971_v52, %v3269_v29  ;;  %v3343_v42 = vsub.f32 %v6977_v58, %v3269_v29  ;;  %v3344_v31 = vsub.f32 %v6989_v26, %v3269_v29 }
 0x344   : > { %v7160_v14 = vunpack.c.l.bf16 %v2958_v33  ;;  %v3262_v3 = vpack.c.bf16 %v3214_v28, %v3214_v28  ;;  %v7165_v6 = vmul.f32 %v2700_v32, %v7642_v57  ;;  %v3345_v0 = vsub.f32 %v6999_v23, %v3269_v29 }
 0x345   : > { %v3346_v21 = vsub.f32 %v7011_v19, %v3269_v29  ;;  %v3347_v58 = vsub.f32 %v7019_v11, %v3269_v29  ;;  %v3433_v52 = vpack.c.bf16 %v3338_v54, %v3337_v41  ;;  %v3434_v26 = vpack.c.bf16 %v3340_v4, %v3339_v17 }
 0x346   : > { %v3435_v2 = vpack.c.bf16 %v3342_v1, %v3341_v16  ;;  %v3348_v25 = vsub.f32 %v7029_v30, %v3269_v29  ;;  %v3349_v33 = vsub.f32 %v7039_v49, %v3269_v29  ;;  %v3350_v28 = vsub.f32 %v7053_v63, %v3269_v29 }
 0x347   : > { %v3436_v24 = vpack.c.bf16 %v3344_v31, %v3343_v42  ;;  %v3529_v13 = vunpack.c.l.bf16 %v3433_v52  ;;  %v3530_v44 = vunpack.c.h.bf16 %v3433_v52  ;;  %v3531_v32 = vunpack.c.l.bf16 %v3434_v26 }
 0x348   : > { %v7173_v43 = vunpack.c.l.bf16 %v3262_v3  ;;  %v7176_v23 = vmax.f32 %v3227_v50, %v7162_v62  ;;  %v2959_v19 = vpack.c.bf16 %v7165_v6, %v7165_v6  ;;  %v3532_v11 = vunpack.c.h.bf16 %v3434_v26 }
 0x349   : > { %v2816_v41 = vmul.f32 %v2557_v40, %v7641_v12  ;;  %v3351_v30 = vsub.f32 %v7061_v46, %v3269_v29  ;;  %v3352_v49 = vsub.f32 %v7081_v45, %v3269_v29  ;;  %v3437_v63 = vpack.c.bf16 %v3346_v21, %v3345_v0 }
 0x34a   : > { %v3533_v54 = vunpack.c.l.bf16 %v3435_v2  ;;  %v3438_v17 = vpack.c.bf16 %v3348_v25, %v3347_v58  ;;  %v7183_v4 = vpack.c.bf16 %v3350_v28, %v3349_v33  ;;  %v3534_v16 = vunpack.c.h.bf16 %v3435_v2 }
 0x34b   : > { %v3535_v1 = vunpack.c.l.bf16 %v3436_v24  ;;  %v3721_v42 = vmul.f32 1.442695, %v3529_v13  ;;  %v3723_v31 = vmul.f32 1.442695, %v3530_v44  ;;  %v3725_v50 = vmul.f32 1.442695, %v3531_v32 }
 0x34c   : > { %v3353_v3 = vsub.f32 %v6791_v35, %v7173_v43  ;;  %v3536_v52 = vunpack.c.h.bf16 %v3436_v24  ;;  %v3727_v26 = vmul.f32 1.442695, %v3532_v11  ;;  %v3354_v12 = vsub.f32 %v6818_v7, %v7173_v43 }
 0x34d   : > { %v2944_v46 = vpack.c.bf16 %v2816_v41, %v2816_v41  ;;  %v7189_v45 = vpack.c.bf16 %v3352_v49, %v3351_v30  ;;  %v3537_v29 = vunpack.c.l.bf16 %v3437_v63  ;;  %4631 = vpow2.f32 %v3721_v42 }
 0x34e   : > { %v3729_v0 = vmul.f32 1.442695, %v3533_v54  ;;  %v3538_v21 = vunpack.c.h.bf16 %v3437_v63  ;;  %v3539_v58 = vunpack.c.l.bf16 %v3438_v17  ;;  %4633 = vpow2.f32 %v3723_v31 }
 0x34f   : > { %v3731_v2 = vmul.f32 1.442695, %v3534_v16  ;;  %v3540_v40 = vunpack.c.h.bf16 %v3438_v17  ;;  %v3541_v25 = vunpack.c.l.bf16 %v7183_v4  ;;  %4635 = vpow2.f32 %v3725_v50 }
 0x350   : > { %v3733_v35 = vmul.f32 1.442695, %v3535_v1  ;;  %4637 = vpow2.f32 %v3727_v26  ;;  %v3735_v33 = vmul.f32 1.442695, %v3536_v52  ;;  %v3355_v7 = vsub.f32 %v6863_v15, %v7173_v43 }
 0x351   : > { %v3356_v28 = vsub.f32 %v6895_v18, %v7173_v43  ;;  %4639 = vpow2.f32 %v3729_v0  ;;  %v3737_v24 = vmul.f32 1.442695, %v3537_v29  ;;  %v3357_v13 = vsub.f32 %v6914_v55, %v7173_v43  ;;  %v7663_v29 = vld [vmem:[#allocation20_spill] sm:$0xff] }
 0x352   : > { %v7198_v44 = vunpack.c.l.bf16 %v2944_v46  ;;  %v3542_v32 = vunpack.c.h.bf16 %v7183_v4  ;;  %4641 = vpow2.f32 %v3731_v2  ;;  %v3739_v11 = vmul.f32 1.442695, %v3538_v21  ;;  %v7664_v21 = vld [vmem:[#allocation22_spill] sm:$0xff] }
 0x353   : > { %v3358_v41 = vsub.f32 %v6973_v37, %v7173_v43  ;;  %v4632_v30 = vpop.eup %4631  ;;  %v3543_v15 = vunpack.c.l.bf16 %v7189_v45  ;;  %v3544_v49 = vunpack.c.h.bf16 %v7189_v45  ;;  %4643 = vpow2.f32 %v3733_v35 }
 0x354   : > { %v3741_v18 = vmul.f32 1.442695, %v3539_v58  ;;  %v4634_v63 = vpop.eup %4633  ;;  %4645 = vpow2.f32 %v3735_v33  ;;  %v3743_v54 = vmul.f32 1.442695, %v3540_v40  ;;  %v3745_v55 = vmul.f32 1.442695, %v3541_v25 }
 0x355   : > { %v3359_v17 = vsub.f32 %v6979_v27, %v7173_v43  ;;  %v4636_v4 = vpop.eup %4635  ;;  %4647 = vpow2.f32 %v3737_v24  ;;  %v3881_v16 = vpack.c.bf16 %v4634_v63, %v4632_v30  ;;  %v7207_v1 = vpack.c.bf16 %v3354_v12, %v3353_v3  ;;  %v7665_v58 = vld [vmem:[#allocation2_spill] sm:$0xff] }
 0x356   : > { %v7209_v37 = vpack.c.bf16 %v3356_v28, %v3355_v7  ;;  %v4638_v42 = vpop.eup %4637  ;;  %4649 = vpow2.f32 %v3739_v11  ;;  %v3360_v31 = vsub.f32 %v6991_v10, %v7173_v43  ;;  %v3361_v50 = vsub.f32 %v7001_v56, %v7173_v43 }
 0x357   : > { %v7215_v52 = vpack.c.bf16 %v3358_v41, %v3357_v13  ;;  %v4640_v26 = vpop.eup %4639  ;;  %v3882_v46 = vpack.c.bf16 %v4638_v42, %v4636_v4  ;;  %v3977_v27 = vunpack.c.l.bf16 %v3881_v16  ;;  %v3978_v45 = vunpack.c.h.bf16 %v3881_v16 }
 0x358   : > { %v3362_v3 = vsub.f32 %v7013_v5, %v7173_v43  ;;  %v4642_v12 = vpop.eup %4641  ;;  %4651 = vpow2.f32 %v3741_v18  ;;  %v3363_v0 = vsub.f32 %v7663_v29, %v7173_v43  ;;  %v3364_v10 = vsub.f32 %v7664_v21, %v7173_v43 }
 0x359   : > { %v3365_v56 = vsub.f32 %v7665_v58, %v7173_v43  ;;  %v4644_v2 = vpop.eup %4643  ;;  %4653 = vpow2.f32 %v3743_v54  ;;  %v3366_v40 = vsub.f32 %v7055_v38, %v7173_v43  ;;  %v3367_v25 = vsub.f32 %v7063_v36, %v7173_v43 }
 0x35a   : > { %v3368_v5 = vsub.f32 %v7083_v9, %v7173_v43  ;;  %v4646_v35 = vpop.eup %4645  ;;  %v3747_v33 = vmul.f32 1.442695, %v3542_v32  ;;  %v3883_v7 = vpack.c.bf16 %v4642_v12, %v4640_v26  ;;  %v3979_v28 = vunpack.c.l.bf16 %v3882_v46 }
 0x35b   : > { %v4125_v24 = vadd.f32 %v3978_v45, %v3977_v27  ;;  %v4648_v13 = vpop.eup %4647  ;;  %v3749_v11 = vmul.f32 1.442695, %v3543_v15  ;;  %v3751_v41 = vmul.f32 1.442695, %v3544_v49  ;;  %v3444_v30 = vpack.c.bf16 %v3360_v31, %v3359_v17 }
 0x35c   : > { %v7233_v18 = vmax.f32 %v7176_v23, %v7198_v44  ;;  %v4650_v38 = vpop.eup %4649  ;;  %v3980_v63 = vunpack.c.h.bf16 %v3882_v46  ;;  %v7235_v36 = vpack.c.bf16 %v3362_v3, %v3361_v50  ;;  %v7237_v4 = vpack.c.bf16 %v3364_v10, %v3363_v0 }
 0x35d   : > { %v4126_v54 = vadd.f32 %v4125_v24, %v3979_v28  ;;  %4655 = vpow2.f32 %v3745_v55  ;;  %v3884_v9 = vpack.c.bf16 %v4646_v35, %v4644_v2  ;;  %v7239_v43 = vpack.c.bf16 %v3366_v40, %v3365_v56 }
 0x35e   : > { %v7241_v32 = vpack.c.bf16 %v3368_v5, %v3367_v25  ;;  %v4652_v15 = vpop.eup %4651  ;;  %4657 = vpow2.f32 %v3747_v33  ;;  %v3981_v49 = vunpack.c.l.bf16 %v3883_v7  ;;  %v3545_v23 = vunpack.c.l.bf16 %v7207_v1 }
 0x35f   : > { %v4127_v17 = vadd.f32 %v4126_v54, %v3980_v63  ;;  %v4654_v16 = vpop.eup %4653  ;;  %4659 = vpow2.f32 %v3749_v11  ;;  %v3885_v42 = vpack.c.bf16 %v4650_v38, %v4648_v13  ;;  %v3982_v31 = vunpack.c.h.bf16 %v3883_v7 }
 0x360   : > { %v3546_v50 = vunpack.c.h.bf16 %v7207_v1  ;;  %4661 = vpow2.f32 %v3751_v41  ;;  %v3547_v55 = vunpack.c.l.bf16 %v7209_v37  ;;  %v3548_v46 = vunpack.c.h.bf16 %v7209_v37 }
 0x361   : > { %v4128_v26 = vadd.f32 %v4127_v17, %v3981_v49  ;;  %v3983_v27 = vunpack.c.l.bf16 %v3884_v9  ;;  %v3984_v45 = vunpack.c.h.bf16 %v3884_v9  ;;  %v3549_v3 = vunpack.c.l.bf16 %v7215_v52 }
 0x362   : > { %v3550_v12 = vunpack.c.h.bf16 %v7215_v52  ;;  %v3886_v29 = vpack.c.bf16 %v4654_v16, %v4652_v15  ;;  %v3551_v21 = vunpack.c.l.bf16 %v3444_v30  ;;  %v3552_v10 = vunpack.c.h.bf16 %v3444_v30 }
 0x363   : > { %v4129_v0 = vadd.f32 %v4128_v26, %v3982_v31  ;;  %v4656_v58 = vpop.eup %4655  ;;  %v3985_v56 = vunpack.c.l.bf16 %v3885_v42  ;;  %v3986_v2 = vunpack.c.h.bf16 %v3885_v42  ;;  %v3553_v1 = vunpack.c.l.bf16 %v7235_v36 }
 0x364   : > { %v3753_v40 = vmul.f32 1.442695, %v3545_v23  ;;  %v4658_v25 = vpop.eup %4657  ;;  %v3755_v35 = vmul.f32 1.442695, %v3546_v50  ;;  %v3757_v37 = vmul.f32 1.442695, %v3547_v55  ;;  %v3554_v28 = vunpack.c.h.bf16 %v7235_v36 }
 0x365   : > { %v4130_v5 = vadd.f32 %v4129_v0, %v3983_v27  ;;  %v3759_v33 = vmul.f32 1.442695, %v3548_v46  ;;  %v4660_v7 = vpop.eup %4659  ;;  %v3555_v52 = vunpack.c.l.bf16 %v7237_v4  ;;  %v3761_v24 = vmul.f32 1.442695, %v3549_v3  ;;  %v2702_v46 = vpop.f32.mrf.mxu3 }
 0x366   : > { %4663 = vpow2.f32 %v3753_v40  ;;  %v4662_v13 = vpop.eup %4661  ;;  %v3556_v41 = vunpack.c.h.bf16 %v7237_v4  ;;  %v3763_v30 = vmul.f32 1.442695, %v3550_v12  ;;  %v3887_v38 = vpack.c.bf16 %v4658_v25, %v4656_v58 }
 0x367   : > { %v4131_v11 = vadd.f32 %v4130_v5, %v3984_v45  ;;  %4665 = vpow2.f32 %v3755_v35  ;;  %v3987_v63 = vunpack.c.l.bf16 %v3886_v29  ;;  %v3765_v54 = vmul.f32 1.442695, %v3551_v21 }
 0x368   : > { %4667 = vpow2.f32 %v3757_v37  ;;  %v3988_v9 = vunpack.c.h.bf16 %v3886_v29  ;;  %v3767_v49 = vmul.f32 1.442695, %v3552_v10  ;;  %v3557_v36 = vunpack.c.l.bf16 %v7239_v43 }
 0x369   : > { %v4132_v15 = vadd.f32 %v4131_v11, %v3985_v56  ;;  %4669 = vpow2.f32 %v3759_v33  ;;  %v3558_v17 = vunpack.c.h.bf16 %v7239_v43  ;;  %v3559_v23 = vunpack.c.l.bf16 %v7241_v32 }
 0x36a   : > { %4671 = vpow2.f32 %v3761_v24  ;;  %v3769_v4 = vmul.f32 1.442695, %v3553_v1  ;;  %v3230_v42 = vrot.slane %v7233_v18, 4  ;;  %v3888_v50 = vpack.c.bf16 %v4662_v13, %v4660_v7 }
 0x36b   : > { %v4133_v16 = vadd.f32 %v4132_v15, %v3986_v2  ;;  %4673 = vpow2.f32 %v3763_v30  ;;  %v3560_v26 = vunpack.c.h.bf16 %v7241_v32  ;;  %v3771_v55 = vmul.f32 1.442695, %v3554_v28 }
 0x36c   : > { %v4664_v31 = vpop.eup %4663  ;;  %4675 = vpow2.f32 %v3765_v54  ;;  %v3773_v3 = vmul.f32 1.442695, %v3555_v52  ;;  %v3231_v43 = vmax.f32 %v7233_v18, %v3230_v42  ;;  %v3989_v29 = vunpack.c.l.bf16 %v3887_v38 }
 0x36d   : > { %v4666_v27 = vpop.eup %4665  ;;  %v4134_v45 = vadd.f32 %v4133_v16, %v3987_v63  ;;  %4677 = vpow2.f32 %v3767_v49  ;;  %v3775_v0 = vmul.f32 1.442695, %v3556_v41  ;;  %v3777_v21 = vmul.f32 1.442695, %v3557_v36 }
 0x36e   : > { %v4668_v12 = vpop.eup %4667  ;;  %v3889_v10 = vpack.c.bf16 %v4666_v27, %v4664_v31  ;;  %4679 = vpow2.f32 %v3769_v4  ;;  %v3232_v2 = vrot.slane %v3231_v43, 2  ;;  %v2832_v32 = vmul.f32 %v2702_v46, %v7642_v57 }
 0x36f   : > { %v4670_v58 = vpop.eup %4669  ;;  %v4135_v56 = vadd.f32 %v4134_v45, %v3988_v9  ;;  %4681 = vpow2.f32 %v3771_v55  ;;  %v3990_v37 = vunpack.c.h.bf16 %v3887_v38  ;;  %v3991_v28 = vunpack.c.l.bf16 %v3888_v50 }
 0x370   : > { %v4672_v1 = vpop.eup %4671  ;;  %v3890_v40 = vpack.c.bf16 %v4670_v58, %v4668_v12  ;;  %v3993_v25 = vunpack.c.l.bf16 %v3889_v10  ;;  %v3994_v5 = vunpack.c.h.bf16 %v3889_v10  ;;  %4683 = vpow2.f32 %v3773_v3 }
 0x371   : > { %v4674_v35 = vpop.eup %4673  ;;  %v4136_v33 = vadd.f32 %v4135_v56, %v3989_v29  ;;  %v3233_v18 = vmax.f32 %v3231_v43, %v3232_v2  ;;  %4685 = vpow2.f32 %v3775_v0  ;;  %v3779_v52 = vmul.f32 1.442695, %v3558_v17  ;;  %v7666_v2 = vld [vmem:[#allocation8_spill] sm:$0xff] }
 0x372   : > { %v4676_v7 = vpop.eup %4675  ;;  %v3891_v24 = vpack.c.bf16 %v4674_v35, %v4672_v1  ;;  %v3995_v41 = vunpack.c.l.bf16 %v3890_v40  ;;  %v4146_v30 = vadd.f32 %v3994_v5, %v3993_v25  ;;  %v3992_v63 = vunpack.c.h.bf16 %v3888_v50  ;;  %v7668_v35 = vld [vmem:[#allocation19_spill] sm:$0xff] }
 0x373   : > { %v4678_v13 = vpop.eup %4677  ;;  %v4137_v11 = vadd.f32 %v4136_v33, %v3990_v37  ;;  %v3234_v57 = vrot.slane %v3233_v18, 1  ;;  %4687 = vpow2.f32 %v3777_v21  ;;  %v3781_v54 = vmul.f32 1.442695, %v3559_v23 }
 0x374   : > { %v2960_v9 = vpack.c.bf16 %v2832_v32, %v2832_v32  ;;  %v4680_v15 = vpop.eup %4679  ;;  %v3996_v38 = vunpack.c.h.bf16 %v3890_v40  ;;  %v4147_v36 = vadd.f32 %v4146_v30, %v3995_v41  ;;  %v7263_v17 = vunpack.c.l.bf16 %v2959_v19 }
 0x375   : > { %v4138_v49 = vadd.f32 %v4137_v11, %v3991_v28  ;;  %v3235_v16 = vmax.f32 %v3233_v18, %v3234_v57  ;;  %v4682_v4 = vpop.eup %4681  ;;  %4689 = vpow2.f32 %v3779_v52  ;;  %v3783_v42 = vmul.f32 1.442695, %v3560_v26  ;;  %v7669_v28 = vld [vmem:[#allocation23_spill] sm:$0xff] }
 0x376   : > { %v3892_v31 = vpack.c.bf16 %v4678_v13, %v4676_v7  ;;  %v4684_v55 = vpop.eup %4683  ;;  %v3997_v50 = vunpack.c.l.bf16 %v3891_v24  ;;  %v4148_v27 = vadd.f32 %v4147_v36, %v3996_v38  ;;  %v3248_v3 = vmax.f32 %v7157_v34, %v7160_v14  ;;  %v7667_v34 = vld [vmem:[#allocation12_spill] sm:$0xff] }
 0x377   : > { %v4139_v46 = vadd.f32 %v4138_v49, %v3992_v63  ;;  %v3263_v23 = vpack.c.bf16 %v3235_v16, %v3235_v16  ;;  %v4686_v45 = vpop.eup %4685  ;;  %4691 = vpow2.f32 %v3781_v54  ;;  %v7267_v43 = vunpack.c.l.bf16 %v2960_v9 }
 0x378   : > { %v3998_v29 = vunpack.c.h.bf16 %v3891_v24  ;;  %v4149_v6 = vadd.f32 %v4148_v27, %v3997_v50  ;;  %v3249_v26 = vmax.f32 %v3248_v3, %v7263_v17  ;;  %4693 = vpow2.f32 %v3783_v42  ;;  %v7670_v24 = vld [vmem:[#allocation24_spill] sm:$0xff] }
 0x379   : > { %v4140_v12 = vrot.slane %v4139_v46, 4  ;;  %v7269_v19 = vunpack.c.l.bf16 %v3263_v23  ;;  %v4688_v0 = vpop.eup %4687  ;;  %v3893_v21 = vpack.c.bf16 %v4682_v4, %v4680_v15  ;;  %v3999_v10 = vunpack.c.l.bf16 %v3892_v31 }
 0x37a   : > { %v4150_v56 = vadd.f32 %v4149_v6, %v3998_v29  ;;  %v3894_v25 = vpack.c.bf16 %v4686_v45, %v4684_v55  ;;  %v4000_v5 = vunpack.c.h.bf16 %v3892_v31  ;;  %v7279_v33 = vmax.f32 %v3249_v26, %v7267_v43  ;;  %v7671_v31 = vld [vmem:[#allocation13_spill] sm:$0xff] }
 0x37b   : > { %v4141_v58 = vadd.f32 %v4140_v12, %v4139_v46  ;;  %v3369_v32 = vsub.f32 %v7666_v2, %v7269_v19  ;;  %v3370_v1 = vsub.f32 %v7667_v34, %v7269_v19  ;;  %v4690_v40 = vpop.eup %4689  ;;  %v3371_v37 = vsub.f32 %v7668_v35, %v7269_v19  ;;  %v7672_v12 = vld [vmem:[#allocation7_spill] sm:$0xff] }
 0x37c   : > { %v4151_v7 = vadd.f32 %v4150_v56, %v3999_v10  ;;  %v3372_v52 = vsub.f32 %v7669_v28, %v7269_v19  ;;  %v3373_v13 = vsub.f32 %v7670_v24, %v7269_v19  ;;  %v3374_v41 = vsub.f32 %v7051_v51, %v7269_v19 }
 0x37d   : > { %v4142_v18 = vrot.slane %v4141_v58, 2  ;;  %v4692_v11 = vpop.eup %4691  ;;  %v3895_v57 = vpack.c.bf16 %v4690_v40, %v4688_v0  ;;  %v4001_v63 = vunpack.c.l.bf16 %v3893_v21  ;;  %v4002_v15 = vunpack.c.h.bf16 %v3893_v21 }
 0x37e   : > { %v4152_v54 = vadd.f32 %v4151_v7, %v4000_v5  ;;  %v4694_v9 = vpop.eup %4693  ;;  %v4003_v49 = vunpack.c.l.bf16 %v3894_v25  ;;  %v3251_v38 = vrot.slane %v7279_v33, 4  ;;  %v4004_v16 = vunpack.c.h.bf16 %v3894_v25 }
 0x37f   : > { %v4143_v30 = vadd.f32 %v4142_v18, %v4141_v58  ;;  %v3375_v42 = vsub.f32 %v7073_v53, %v7269_v19  ;;  %v3376_v55 = vsub.f32 %v7671_v31, %v7269_v19  ;;  %v3449_v46 = vpack.c.bf16 %v3370_v1, %v3369_v32 }
 0x380   : > { %v4153_v4 = vadd.f32 %v4152_v54, %v4001_v63  ;;  %v3450_v51 = vpack.c.bf16 %v3372_v52, %v3371_v37  ;;  %v3451_v50 = vpack.c.bf16 %v3374_v41, %v3373_v13  ;;  %v3896_v23 = vpack.c.bf16 %v4694_v9, %v4692_v11 }
 0x381   : > { %v4144_v36 = vrot.slane %v4143_v30, 1  ;;  %v4005_v45 = vunpack.c.l.bf16 %v3895_v57  ;;  %v3377_v29 = vsub.f32 %v7672_v12, %v7269_v19  ;;  %v3378_v6 = vsub.f32 %v7117_v22, %v7269_v19 }
 0x382   : > { %v4154_v3 = vadd.f32 %v4153_v4, %v4002_v15  ;;  %v3379_v0 = vsub.f32 %v7125_v60, %v7269_v19  ;;  %v3380_v53 = vsub.f32 %v7131_v20, %v7269_v19  ;;  %v3381_v10 = vsub.f32 %v7137_v39, %v7269_v19 }
 0x383   : > { %v4145_v27 = vadd.f32 %v4144_v36, %v4143_v30  ;;  %v3382_v58 = vsub.f32 %v7144_v59, %v7269_v19  ;;  %v4006_v56 = vunpack.c.h.bf16 %v3895_v57  ;;  %v3383_v2 = vsub.f32 %v7162_v62, %v7269_v19 }
 0x384   : > { %v4155_v21 = vadd.f32 %v4154_v3, %v4003_v49  ;;  %v3384_v22 = vsub.f32 %v7198_v44, %v7269_v19  ;;  %v3452_v32 = vpack.c.bf16 %v3376_v55, %v3375_v42  ;;  %v3561_v20 = vunpack.c.l.bf16 %v3449_v46 }
 0x385   : > { %v4213_v26 = vpack.c.bf16 %v4145_v27, %v4145_v27  ;;  %v3562_v1 = vunpack.c.h.bf16 %v3449_v46  ;;  %v4007_v40 = vunpack.c.l.bf16 %v3896_v23  ;;  %v3453_v25 = vpack.c.bf16 %v3378_v6, %v3377_v29 }
 0x386   : > { %v4156_v34 = vadd.f32 %v4155_v21, %v4004_v16  ;;  %v3563_v5 = vunpack.c.l.bf16 %v3450_v51  ;;  %v3564_v39 = vunpack.c.h.bf16 %v3450_v51  ;;  %v4008_v59 = vunpack.c.h.bf16 %v3896_v23 }
 0x387   : > { %v7308_v60 = vunpack.c.l.bf16 %v4213_v26  ;;  %v7311_v35 = vpack.c.bf16 %v3380_v53, %v3379_v0  ;;  %v7313_v37 = vpack.c.bf16 %v3382_v58, %v3381_v10  ;;  %v7315_v18 = vpack.c.bf16 %v3384_v22, %v3383_v2 }
 0x388   : > { %v4157_v62 = vadd.f32 %v4156_v34, %v4005_v45  ;;  %v3565_v44 = vunpack.c.l.bf16 %v3451_v50  ;;  %v3566_v19 = vunpack.c.h.bf16 %v3451_v50  ;;  %v3567_v7 = vunpack.c.l.bf16 %v3452_v32 }
 0x389   : > { %4695 = vrcp.f32 %v7308_v60  ;;  %v3568_v28 = vunpack.c.h.bf16 %v3452_v32  ;;  %v3785_v52 = vmul.f32 1.442695, %v3561_v20  ;;  %v3787_v24 = vmul.f32 1.442695, %v3562_v1 }
 0x38a   : > { %v4158_v13 = vadd.f32 %v4157_v62, %v4006_v56  ;;  %v3569_v11 = vunpack.c.l.bf16 %v3453_v25  ;;  %v3789_v41 = vmul.f32 1.442695, %v3563_v5  ;;  %v3791_v30 = vmul.f32 1.442695, %v3564_v39 }
 0x38b   : > { %v3570_v57 = vunpack.c.h.bf16 %v3453_v25  ;;  %v3571_v63 = vunpack.c.l.bf16 %v7311_v35  ;;  %v3572_v54 = vunpack.c.h.bf16 %v7311_v35  ;;  %4697 = vpow2.f32 %v3785_v52 }
 0x38c   : > { %vm4286_vm3 = vweird.f32 %v7308_v60  ;;  %v4159_v9 = vadd.f32 %v4158_v13, %v4007_v40  ;;  %v3573_v15 = vunpack.c.l.bf16 %v7313_v37  ;;  %4699 = vpow2.f32 %v3787_v24 }
 0x38d   : > { %v4290_v36 = vand.u32 2147483647, %v7308_v60  ;;  %v4292_v16 = vand.u32 2147483648, %v7308_v60  ;;  %4701 = vpow2.f32 %v3789_v41  ;;  %v3793_v4 = vmul.f32 1.442695, %v3565_v44 }
 0x38e   : > { %v4160_v31 = vadd.f32 %v4159_v9, %v4008_v59  ;;  %4703 = vpow2.f32 %v3791_v30  ;;  %v3795_v55 = vmul.f32 1.442695, %v3566_v19  ;;  %v3574_v46 = vunpack.c.h.bf16 %v7313_v37 }
 0x38f   : > { %v4696_v49 = vpop.eup %4695  ;;  %v3575_v51 = vunpack.c.l.bf16 %v7315_v18  ;;  %v3576_v50 = vunpack.c.h.bf16 %v7315_v18  ;;  %v3797_v27 = vmul.f32 1.442695, %v3567_v7  ;;  %v3799_v3 = vmul.f32 1.442695, %v3568_v28 }
 0x390   : > { %v4282_v42 = vmul.f32 %v4696_v49, %v7308_v60  ;;  %v4161_v45 = vrot.slane %v4160_v31, 4  ;;  %v3252_v12 = vmax.f32 %v7279_v33, %v3251_v38  ;;  %vm4287_vm5 = vweird.f32 %v4696_v49 }
 0x391   : > { %v4698_v29 = vpop.eup %4697  ;;  %vm7330_vm6 = vcmp.eq.f32.partialorder %v4290_v36, 8.507059e+37  ;;  %4705 = vpow2.f32 %v3793_v4  ;;  %v3801_v0 = vmul.f32 1.442695, %v3569_v11  ;;  %v3803_v56 = vmul.f32 1.442695, %v3570_v57  ;;  %vm4288_vm7 = vmor %vm4286_vm3, %vm4287_vm5  ;;  %v7675_v11 = vld [vmem:[#allocation15_spill] sm:$0xff] }
 0x392   : > { %v4283_v23 = vsub.f32 1.0, %v4282_v42  ;;  %v4700_v53 = vpop.eup %4699  ;;  %v4162_v21 = vadd.f32 %v4161_v45, %v4160_v31  ;;  %4707 = vpow2.f32 %v3795_v55  ;;  %v3253_v10 = vrot.slane %v3252_v12, 2 }
 0x393   : > { %v4702_v58 = vpop.eup %4701  ;;  %4709 = vpow2.f32 %v3797_v27  ;;  %v3805_v2 = vmul.f32 1.442695, %v3571_v63  ;;  %v3897_v22 = vpack.c.bf16 %v4700_v53, %v4698_v29  ;;  %v4293_v20 = vor.u32 1.1754944e-38, %v4292_v16  ;;  %v7676_v53 = vld [vmem:[#allocation4_spill] sm:$0xff] }
 0x394   : > { %v4284_v26 = vmul.f32 %v4696_v49, %v4283_v23  ;;  %v4704_v32 = vpop.eup %4703  ;;  %v4163_v38 = vrot.slane %v4162_v21, 2  ;;  %4711 = vpow2.f32 %v3799_v3  ;;  %v3254_v34 = vmax.f32 %v3252_v12, %v3253_v10 }
 0x395   : > { %4713 = vpow2.f32 %v3801_v0  ;;  %v3807_v1 = vmul.f32 1.442695, %v3572_v54  ;;  %v3898_v40 = vpack.c.bf16 %v4704_v32, %v4702_v58  ;;  %v4009_v39 = vunpack.c.l.bf16 %v3897_v22 }
 0x396   : > { %v4285_v33 = vadd.f32 %v4696_v49, %v4284_v26  ;;  %v4164_v5 = vadd.f32 %v4163_v38, %v4162_v21  ;;  %v4010_v59 = vunpack.c.h.bf16 %v3897_v22  ;;  %4715 = vpow2.f32 %v3803_v56  ;;  %v7677_v21 = vld [vmem:[#allocation14_spill] sm:$0xff] }
 0x397   : > { %v4706_v35 = vpop.eup %4705  ;;  %v3809_v62 = vmul.f32 1.442695, %v3573_v15  ;;  %v3255_v18 = vrot.slane %v3254_v34, 1  ;;  %4717 = vpow2.f32 %v3805_v2  ;;  %v3811_v28 = vmul.f32 1.442695, %v3574_v46  ;;  %v7678_v2 = vld [vmem:[#allocation21_spill] sm:$0xff] }
 0x398   : > { %v4289_v25 = vsel %vm4288_vm7, %v4696_v49, %v4285_v33  ;;  %v4708_v44 = vpop.eup %4707  ;;  %v4165_v7 = vrot.slane %v4164_v5, 1  ;;  %4719 = vpow2.f32 %v3807_v1  ;;  %v3813_v24 = vmul.f32 1.442695, %v3575_v51  ;;  %v7679_v33 = vld [vmem:[#allocation3_spill] sm:$0xff]  ;;  %v7681_v1 = vld [vmem:[#allocation17_spill] sm:$0xff] }
 0x399   : > { %v4294_v37 = vsel %vm7330_vm6, %v4293_v20, %v4289_v25  ;;  %v4710_v52 = vpop.eup %4709  ;;  %v4011_v57 = vunpack.c.l.bf16 %v3898_v40  ;;  %v4167_v63 = vadd.f32 %v4010_v59, %v4009_v39  ;;  %4721 = vpow2.f32 %v3809_v62 }
 0x39a   : > { %v4341_v19 = vmul.f32 %v4294_v37, %v7308_v60  ;;  %v4712_v13 = vpop.eup %4711  ;;  %v4166_v30 = vadd.f32 %v4165_v7, %v4164_v5  ;;  %v3815_v9 = vmul.f32 1.442695, %v3576_v50  ;;  %v3899_v15 = vpack.c.bf16 %v4708_v44, %v4706_v35 }
 0x39b   : > { %v4714_v54 = vpop.eup %4713  ;;  %v3256_v49 = vmax.f32 %v3254_v34, %v3255_v18  ;;  %4723 = vpow2.f32 %v3811_v28  ;;  %v4012_v36 = vunpack.c.h.bf16 %v3898_v40  ;;  %v4168_v16 = vadd.f32 %v4167_v63, %v4011_v57  ;;  %v7680_v34 = vld [vmem:[#allocation26_spill] sm:$0xff] }
 0x39c   : > { %v7342_v41 = vsel %vm4359_vm4, %v4341_v19, %v7675_v11  ;;  %v4214_v60 = vpack.c.bf16 %v4166_v30, %v4166_v30  ;;  %v4716_v4 = vpop.eup %4715  ;;  %4725 = vpow2.f32 %v3813_v24  ;;  %v3900_v27 = vpack.c.bf16 %v4712_v13, %v4710_v52 }
 0x39d   : > { %v3264_v42 = vpack.c.bf16 %v3256_v49, %v3256_v49  ;;  %v4718_v31 = vpop.eup %4717  ;;  %v4169_v46 = vadd.f32 %v4168_v16, %v4012_v36  ;;  %4727 = vpow2.f32 %v3815_v9  ;;  %v4013_v23 = vunpack.c.l.bf16 %v3899_v15  ;;  %v7684_v49 = vld [vmem:[#allocation25_spill] sm:$0xff]  ;;  %v7685_v36 = vld [vmem:[#allocation6_spill] sm:$0xff] }
 0x39e   : > { %v7344_v55 = vunpack.c.l.bf16 %v4214_v60  ;;  %v4720_v51 = vpop.eup %4719  ;;  %v4014_v3 = vunpack.c.h.bf16 %v3899_v15  ;;  %v3901_v6 = vpack.c.bf16 %v4716_v4, %v4714_v54  ;;  %v4015_v58 = vunpack.c.l.bf16 %v3900_v27 }
 0x39f   : > { %v7346_v45 = vunpack.c.l.bf16 %v3264_v42  ;;  %v4722_v50 = vpop.eup %4721  ;;  %v4170_v12 = vadd.f32 %v4169_v46, %v4013_v23  ;;  %v3902_v0 = vpack.c.bf16 %v4720_v51, %v4718_v31  ;;  %v4016_v39 = vunpack.c.h.bf16 %v3900_v27 }
 0x3a0   : > { %4729 = vrcp.f32 %v7344_v55  ;;  %v4304_v37 = vand.u32 2147483647, %v7344_v55  ;;  %v4017_v62 = vunpack.c.l.bf16 %v3901_v6  ;;  %v4018_v18 = vunpack.c.h.bf16 %v3901_v6 }
 0x3a1   : > { %v4724_v29 = vpop.eup %4723  ;;  %v3385_v26 = vsub.f32 %v7676_v53, %v7346_v45  ;;  %v3386_v10 = vsub.f32 %v7677_v21, %v7346_v45  ;;  %v4171_v56 = vadd.f32 %v4170_v12, %v4014_v3  ;;  %v3387_v22 = vsub.f32 %v7678_v2, %v7346_v45 }
 0x3a2   : > { %v4726_v32 = vpop.eup %4725  ;;  %v3388_v38 = vsub.f32 %v7679_v33, %v7346_v45  ;;  %v3389_v20 = vsub.f32 %v7680_v34, %v7346_v45  ;;  %v3390_v40 = vsub.f32 %v7681_v1, %v7346_v45  ;;  %v3903_v5 = vpack.c.bf16 %v4724_v29, %v4722_v50 }
 0x3a3   : > { %v4728_v25 = vpop.eup %4727  ;;  %v4172_v59 = vadd.f32 %v4171_v56, %v4015_v58  ;;  %v4019_v44 = vunpack.c.l.bf16 %v3902_v0  ;;  %v4306_v7 = vand.u32 2147483648, %v7344_v55  ;;  %v4020_v28 = vunpack.c.h.bf16 %v3902_v0 }
 0x3a4   : > { %vm4300_vm8 = vweird.f32 %v7344_v55  ;;  %v3457_v24 = vpack.c.bf16 %v3386_v10, %v3385_v26  ;;  %v3458_v13 = vpack.c.bf16 %v3388_v38, %v3387_v22  ;;  %v3459_v11 = vpack.c.bf16 %v3390_v40, %v3389_v20 }
 0x3a5   : > { %v4173_v52 = vadd.f32 %v4172_v59, %v4016_v39  ;;  %v3904_v57 = vpack.c.bf16 %v4728_v25, %v4726_v32  ;;  %v4021_v63 = vunpack.c.l.bf16 %v3903_v5  ;;  %vm7365_vm10 = vcmp.eq.f32.partialorder %v4304_v37, 8.507059e+37  ;;  %v7686_v39 = vld [vmem:[#allocation18_spill] sm:$0xff] }
 0x3a6   : > { %v4730_v35 = vpop.eup %4729  ;;  %v4022_v15 = vunpack.c.h.bf16 %v3903_v5  ;;  %v3391_v60 = vsub.f32 %v7684_v49, %v7346_v45  ;;  %v3392_v16 = vsub.f32 %v7685_v36, %v7346_v45  ;;  %v4307_v42 = vor.u32 1.1754944e-38, %v4306_v7 }
 0x3a7   : > { %v4296_v19 = vmul.f32 %v4730_v35, %v7344_v55  ;;  %v4174_v54 = vadd.f32 %v4173_v52, %v4017_v62  ;;  %vm4301_vm11 = vweird.f32 %v4730_v35  ;;  %v3393_v46 = vsub.f32 %v7110_v47, %v7346_v45 }
 0x3a8   : > { %v3394_v51 = vsub.f32 %v7119_v48, %v7346_v45  ;;  %v3577_v27 = vunpack.c.l.bf16 %v3457_v24  ;;  %v3578_v23 = vunpack.c.h.bf16 %v3457_v24  ;;  %v3579_v12 = vunpack.c.l.bf16 %v3458_v13  ;;  %vm4302_vm12 = vmor %vm4300_vm8, %vm4301_vm11 }
 0x3a9   : > { %v4297_v30 = vsub.f32 1.0, %v4296_v19  ;;  %v4175_v31 = vadd.f32 %v4174_v54, %v4018_v18  ;;  %v3580_v29 = vunpack.c.h.bf16 %v3458_v13  ;;  %v4023_v6 = vunpack.c.l.bf16 %v3904_v57 }
 0x3aa   : > { %v3395_v0 = vsub.f32 %v7129_v61, %v7346_v45  ;;  %v3460_v53 = vpack.c.bf16 %v3392_v16, %v3391_v60  ;;  %v3581_v26 = vunpack.c.l.bf16 %v3459_v11  ;;  %v3396_v48 = vsub.f32 %v7135_v8, %v7346_v45 }
 0x3ab   : > { %v4298_v4 = vmul.f32 %v4730_v35, %v4297_v30  ;;  %v4176_v3 = vadd.f32 %v4175_v31, %v4019_v44  ;;  %v3582_v10 = vunpack.c.h.bf16 %v3459_v11  ;;  %v3461_v56 = vpack.c.bf16 %v3394_v51, %v3393_v46 }
 0x3ac   : > { %v3817_v2 = vmul.f32 1.442695, %v3577_v27  ;;  %v3819_v22 = vmul.f32 1.442695, %v3578_v23  ;;  %v3821_v38 = vmul.f32 1.442695, %v3579_v12  ;;  %v3583_v61 = vunpack.c.l.bf16 %v3460_v53 }
 0x3ad   : > { %v4299_v50 = vadd.f32 %v4730_v35, %v4298_v4  ;;  %v4177_v47 = vadd.f32 %v4176_v3, %v4020_v28  ;;  %v3823_v34 = vmul.f32 1.442695, %v3580_v29  ;;  %v3584_v20 = vunpack.c.h.bf16 %v3460_v53 }
 0x3ae   : > { %4731 = vpow2.f32 %v3817_v2  ;;  %v3825_v1 = vmul.f32 1.442695, %v3581_v26  ;;  %v3827_v25 = vmul.f32 1.442695, %v3582_v10  ;;  %v4024_v5 = vunpack.c.h.bf16 %v3904_v57 }
 0x3af   : > { %v4303_v21 = vsel %vm4302_vm12, %v4730_v35, %v4299_v50  ;;  %v4178_v33 = vadd.f32 %v4177_v47, %v4021_v63  ;;  %4733 = vpow2.f32 %v3819_v22  ;;  %v3397_v59 = vsub.f32 %v7686_v39, %v7346_v45 }
 0x3b0   : > { %v4308_v58 = vsel %vm7365_vm10, %v4307_v42, %v4303_v21  ;;  %4735 = vpow2.f32 %v3821_v38  ;;  %v3462_v37 = vpack.c.bf16 %v3396_v48, %v3395_v0  ;;  %v3585_v62 = vunpack.c.l.bf16 %v3461_v56 }
 0x3b1   : > { %v4342_v32 = vmul.f32 %v4308_v58, %v7344_v55  ;;  %v4179_v8 = vadd.f32 %v4178_v33, %v4022_v15  ;;  %v3398_v55 = vsub.f32 %v7160_v14, %v7346_v45  ;;  %4737 = vpow2.f32 %v3823_v34 }
 0x3b2   : > { %v3586_v18 = vunpack.c.h.bf16 %v3461_v56  ;;  %4739 = vpow2.f32 %v3825_v1  ;;  %v3829_v44 = vmul.f32 1.442695, %v3583_v61  ;;  %v3831_v19 = vmul.f32 1.442695, %v3584_v20 }
 0x3b3   : > { %v7388_v40 = vsel %vm4361_vm9, %v4342_v32, %v7342_v41  ;;  %v4180_v35 = vadd.f32 %v4179_v8, %v4023_v6  ;;  %4741 = vpow2.f32 %v3827_v25  ;;  %v3399_v28 = vsub.f32 %v7263_v17, %v7346_v45 }
 0x3b4   : > { %v4732_v7 = vpop.eup %4731  ;;  %v3400_v52 = vsub.f32 %v7267_v43, %v7346_v45  ;;  %v3463_v13 = vpack.c.bf16 %v3398_v55, %v3397_v59  ;;  %v3587_v11 = vunpack.c.l.bf16 %v3462_v37  ;;  %v3833_v30 = vmul.f32 1.442695, %v3585_v62 }
 0x3b5   : > { %v4181_v41 = vadd.f32 %v4180_v35, %v4024_v5  ;;  %v4734_v24 = vpop.eup %4733  ;;  %v3588_v63 = vunpack.c.h.bf16 %v3462_v37  ;;  %4743 = vpow2.f32 %v3829_v44  ;;  %v3835_v54 = vmul.f32 1.442695, %v3586_v18 }
 0x3b6   : > { %v4736_v57 = vpop.eup %4735  ;;  %v3905_v9 = vpack.c.bf16 %v4734_v24, %v4732_v7  ;;  %4745 = vpow2.f32 %v3831_v19  ;;  %v3464_v36 = vpack.c.bf16 %v3400_v52, %v3399_v28  ;;  %v3589_v45 = vunpack.c.l.bf16 %v3463_v13 }
 0x3b7   : > { %v4182_v14 = vrot.slane %v4181_v41, 4  ;;  %v4738_v15 = vpop.eup %4737  ;;  %4747 = vpow2.f32 %v3833_v30  ;;  %v3590_v31 = vunpack.c.h.bf16 %v3463_v13  ;;  %v3837_v46 = vmul.f32 1.442695, %v3587_v11 }
 0x3b8   : > { %v4740_v60 = vpop.eup %4739  ;;  %v3906_v16 = vpack.c.bf16 %v4738_v15, %v4736_v57  ;;  %v4025_v17 = vunpack.c.l.bf16 %v3905_v9  ;;  %v4026_v4 = vunpack.c.h.bf16 %v3905_v9  ;;  %4749 = vpow2.f32 %v3835_v54 }
 0x3b9   : > { %v4183_v49 = vadd.f32 %v4182_v14, %v4181_v41  ;;  %v4742_v42 = vpop.eup %4741  ;;  %v3839_v51 = vmul.f32 1.442695, %v3588_v63  ;;  %v3591_v29 = vunpack.c.l.bf16 %v3464_v36  ;;  %v3841_v53 = vmul.f32 1.442695, %v3589_v45 }
 0x3ba   : > { %v3907_v23 = vpack.c.bf16 %v4742_v42, %v4740_v60  ;;  %v4027_v50 = vunpack.c.l.bf16 %v3906_v16  ;;  %v4188_v3 = vadd.f32 %v4026_v4, %v4025_v17  ;;  %v4028_v26 = vunpack.c.h.bf16 %v3906_v16 }
 0x3bb   : > { %v4184_v43 = vrot.slane %v4183_v49, 2  ;;  %v4744_v12 = vpop.eup %4743  ;;  %v3592_v47 = vunpack.c.h.bf16 %v3464_v36  ;;  %4751 = vpow2.f32 %v3837_v46  ;;  %v3843_v48 = vmul.f32 1.442695, %v3590_v31 }
 0x3bc   : > { %v4746_v6 = vpop.eup %4745  ;;  %v4189_v21 = vadd.f32 %v4188_v3, %v4027_v50  ;;  %4753 = vpow2.f32 %v3839_v51  ;;  %v4029_v56 = vunpack.c.l.bf16 %v3907_v23  ;;  %v3845_v32 = vmul.f32 1.442695, %v3591_v29 }
 0x3bd   : > { %v4185_v27 = vadd.f32 %v4184_v43, %v4183_v49  ;;  %v4748_v10 = vpop.eup %4747  ;;  %v3908_v33 = vpack.c.bf16 %v4746_v6, %v4744_v12  ;;  %4755 = vpow2.f32 %v3841_v53  ;;  %v4030_v34 = vunpack.c.h.bf16 %v3907_v23 }
 0x3be   : > { %v4190_v2 = vadd.f32 %v4189_v21, %v4028_v26  ;;  %v4750_v22 = vpop.eup %4749  ;;  %4757 = vpow2.f32 %v3843_v48  ;;  %v3847_v20 = vmul.f32 1.442695, %v3592_v47  ;;  %vm4365_vm6 = vcmask 1047559  }
 0x3bf   : > { %v4186_v0 = vrot.slane %v4185_v27, 1  ;;  %4759 = vpow2.f32 %v3845_v32  ;;  %v3909_v5 = vpack.c.bf16 %v4750_v22, %v4748_v10  ;;  %v4031_v39 = vunpack.c.l.bf16 %v3908_v33 }
 0x3c0   : > { %v4191_v61 = vadd.f32 %v4190_v2, %v4029_v56  ;;  %v4032_v55 = vunpack.c.h.bf16 %v3908_v33 }
 0x3c1   : > { %v4187_v58 = vadd.f32 %v4186_v0, %v4185_v27  ;;  %v4752_v25 = vpop.eup %4751  ;;  %v4033_v44 = vunpack.c.l.bf16 %v3909_v5  ;;  %v4034_v7 = vunpack.c.h.bf16 %v3909_v5 }
 0x3c2   : > { %v4192_v8 = vadd.f32 %v4191_v61, %v4030_v34  ;;  %v4754_v59 = vpop.eup %4753 }
 0x3c3   : > { %v4215_v38 = vpack.c.bf16 %v4187_v58, %v4187_v58  ;;  %v4756_v37 = vpop.eup %4755  ;;  %v3910_v18 = vpack.c.bf16 %v4754_v59, %v4752_v25 }
 0x3c4   : > { %v4193_v35 = vadd.f32 %v4192_v8, %v4031_v39  ;;  %v4758_v62 = vpop.eup %4757 }
 0x3c5   : > { %v4223_v1 = vunpack.c.l.bf16 %v4215_v38  ;;  %v4760_v19 = vpop.eup %4759  ;;  %v3911_v24 = vpack.c.bf16 %v4758_v62, %v4756_v37  ;;  %v4035_v11 = vunpack.c.l.bf16 %v3910_v18  ;;  %v4036_v63 = vunpack.c.h.bf16 %v3910_v18 }
 0x3c6   : > { %v4194_v41 = vadd.f32 %v4193_v35, %v4032_v55 }
 0x3c7   : > { %4761 = vrcp.f32 %v4223_v1  ;;  %v4320_v9 = vand.u32 2147483648, %v4223_v1  ;;  %v4037_v49 = vunpack.c.l.bf16 %v3911_v24  ;;  %v4318_v36 = vand.u32 2147483647, %v4223_v1 }
 0x3c8   : > { %4763 = vpow2.f32 %v3847_v20  ;;  %v4195_v28 = vadd.f32 %v4194_v41, %v4033_v44  ;;  %vm4314_vm14 = vweird.f32 %v4223_v1  ;;  %v4038_v4 = vunpack.c.h.bf16 %v3911_v24 }
 0x3c9   : > { %v4321_v43 = vor.u32 1.1754944e-38, %v4320_v9  ;;  %vm4319_vm0 = vcmp.eq.f32.partialorder %v4318_v36, 8.507059e+37 }
 0x3ca   : > { %v4196_v30 = vadd.f32 %v4195_v28, %v4034_v7 }
 0x3cc   : > { %v4197_v54 = vadd.f32 %v4196_v30, %v4035_v11 }
 0x3cd   : > { %v4762_v52 = vpop.eup %4761 }
 0x3ce   : > { %v4764_v14 = vpop.eup %4763  ;;  %v4310_v13 = vmul.f32 %v4762_v52, %v4223_v1  ;;  %vm4315_vm13 = vweird.f32 %v4762_v52  ;;  %v4198_v16 = vadd.f32 %v4197_v54, %v4036_v63 }
 0x3cf   : > { %v3912_v15 = vpack.c.bf16 %v4764_v14, %v4760_v19  ;;  %vm4316_vm15 = vmor %vm4314_vm14, %vm4315_vm13 }
 0x3d0   : > { %v4311_v57 = vsub.f32 1.0, %v4310_v13  ;;  %v4199_v42 = vadd.f32 %v4198_v16, %v4037_v49 }
 0x3d1   : > { %v4039_v31 = vunpack.c.l.bf16 %v3912_v15  ;;  %v4040_v23 = vunpack.c.h.bf16 %v3912_v15 }
 0x3d2   : > { %v4312_v60 = vmul.f32 %v4762_v52, %v4311_v57  ;;  %v4200_v46 = vadd.f32 %v4199_v42, %v4038_v4 }
 0x3d4   : > { %v4313_v17 = vadd.f32 %v4762_v52, %v4312_v60  ;;  %v4201_v50 = vadd.f32 %v4200_v46, %v4039_v31 }
 0x3d6   : > { %v4317_v45 = vsel %vm4316_vm15, %v4762_v52, %v4313_v17  ;;  %v4202_v12 = vadd.f32 %v4201_v50, %v4040_v23 }
 0x3d7   : > { %v4322_v51 = vsel %vm4319_vm0, %v4321_v43, %v4317_v45 }
 0x3d8   : > { %v4343_v27 = vmul.f32 %v4322_v51, %v4223_v1  ;;  %v4203_v29 = vrot.slane %v4202_v12, 4 }
 0x3da   : > { %v4364_v3 = vsel %vm4363_vm1, %v4343_v27, %v7388_v40  ;;  %v4204_v6 = vadd.f32 %v4203_v29, %v4202_v12 }
 0x3dc   : > { %v4205_v0 = vrot.slane %v4204_v6, 2 }
 0x3de   : > { %v4206_v53 = vadd.f32 %v4205_v0, %v4204_v6 }
 0x3e0   : > { %v4207_v26 = vrot.slane %v4206_v53, 1 }
 0x3e2   : > { %v4208_v21 = vadd.f32 %v4207_v26, %v4206_v53 }
 0x3e4   : > { %v4216_v47 = vpack.c.bf16 %v4208_v21, %v4208_v21 }
 0x3e6   : > { %v4224_v48 = vunpack.c.l.bf16 %v4216_v47 }
 0x3e8   : > { %4765 = vrcp.f32 %v4224_v48  ;;  %v4334_v2 = vand.u32 2147483648, %v4224_v48  ;;  %v4332_v32 = vand.u32 2147483647, %v4224_v48  ;;  %vm4328_vm3 = vweird.f32 %v4224_v48 }
 0x3ea   : > { %v4335_v40 = vor.u32 1.1754944e-38, %v4334_v2  ;;  %vm4333_vm5 = vcmp.eq.f32.partialorder %v4332_v32, 8.507059e+37 }
 0x3ee   : > { %v4766_v10 = vpop.eup %4765 }
 0x3ef   : > { %v4324_v58 = vmul.f32 %v4766_v10, %v4224_v48  ;;  %vm4329_vm2 = vweird.f32 %v4766_v10 }
 0x3f0   : > { %vm4330_vm4 = vmor %vm4328_vm3, %vm4329_vm2 }
 0x3f1   : > { %v4325_v56 = vsub.f32 1.0, %v4324_v58 }
 0x3f3   : > { %v4326_v22 = vmul.f32 %v4766_v10, %v4325_v56 }
 0x3f5   : > { %v4327_v33 = vadd.f32 %v4766_v10, %v4326_v22 }
 0x3f7   : > { %v4331_v38 = vsel %vm4330_vm4, %v4766_v10, %v4327_v33 }
 0x3f8   : > { %v4336_v34 = vsel %vm4333_vm5, %v4335_v40, %v4331_v38 }
 0x3f9   : > { %v4344_v61 = vmul.f32 %v4336_v34, %v4224_v48 }
 0x3fb   : > { %v4366_v20 = vsel %vm4365_vm6, %v4344_v61, %v4364_v3 }
 0x3fc   : > { %4368 = vst [vmem:[%s182_s4] sm:$0xff] %v4366_v20 }
 0x3fd PF: > { %s13_s12 = sadd.s32 1, %s4775_s12  }
 0x3fe   : > { %p10_p4 = scmp.ge.s32.totalorder %s13_s12, 4  }
 0x400   :  { %12 = sbr.rel (!%p10_p4) target bundleno = 1 (0x1), region = 65 }

</bundles_post_ra>
